<compile_context>
chip_gen: v6e
topology: v6e:2x2x1
jax: 0.10.0
libtpu: 0.0.40
codegen_flags: <defaults>
</compile_context>

<pallas_src>
import jax
import jax.numpy as jnp
from jax.experimental import pallas as pl
from jax.experimental.pallas import tpu as pltpu

BN_EPS = 1e-5
LEAKY_SLOPE = 0.2
OUT_PAD = 128   # lane-dense padded width of the final layer (true width = 10)

D_IN, D_H1, D_H2, D_H3 = 28 * 28, 1024, 512, 128


def clasnet_kernel(x_ref, w1_ref, b1_ref, g_ref, beta_ref,
                   w2_hbm, b2_ref, w3_hbm, b3_ref, w4_hbm, b4_ref,
                   out_ref,
                   w2_vmem, w3_vmem, w4_vmem, sem):
    # ---- kick off DMA of the later-layer weights; overlaps with layer-1 matmul + BN ----
    cp2 = pltpu.make_async_copy(w2_hbm, w2_vmem, sem.at[0])
    cp3 = pltpu.make_async_copy(w3_hbm, w3_vmem, sem.at[1])
    cp4 = pltpu.make_async_copy(w4_hbm, w4_vmem, sem.at[2])
    cp2.start(); cp3.start(); cp4.start()

    # ---- hidden: Linear(784, 1024), bf16 operands -> f32 accumulate ----
    x = x_ref[...].astype(jnp.bfloat16)                          # (B, 784)
    h = jnp.dot(x, w1_ref[...], preferred_element_type=jnp.float32) + b1_ref[...]

    # ---- BatchNorm1d(1024), training mode, one-pass batch stats, fused affine (f32) ----
    inv_b = 1.0 / h.shape[0]
    s = jnp.sum(h, axis=0, keepdims=True)                        # (1, 1024)
    s2 = jnp.sum(h * h, axis=0, keepdims=True)                   # (1, 1024)
    mean = s * inv_b
    var = jnp.maximum(s2 * inv_b - mean * mean, 0.0)             # clamp: one-pass cancellation
    scale = g_ref[...] * jax.lax.rsqrt(var + BN_EPS)             # (1, 1024)
    shift = beta_ref[...] - mean * scale                         # (1, 1024)
    h = h * scale + shift

    # ---- LeakyReLU(0.2) ----
    h = jnp.where(h > 0, h, LEAKY_SLOPE * h)

    # ---- output head: bf16 matmuls, f32 accumulate + f32 activations ----
    cp2.wait()
    h = jnp.dot(h.astype(jnp.bfloat16), w2_vmem[...],
                preferred_element_type=jnp.float32) + b2_ref[...]
    h = jnp.maximum(h, 0.0)                                      # ReLU

    cp3.wait()
    h = jnp.dot(h.astype(jnp.bfloat16), w3_vmem[...],
                preferred_element_type=jnp.float32) + b3_ref[...]
    h = jnp.maximum(h, 0.0)                                      # ReLU

    cp4.wait()
    # Lane-dense (B, 128) writeback; columns 10..127 are zero-padded weights/bias.
    out_ref[...] = jnp.dot(h.astype(jnp.bfloat16), w4_vmem[...],
                           preferred_element_type=jnp.float32) + b4_ref[...]


def make_params(key):
    """Deterministic f32 parameter init matching the module's __init__ shapes."""
    ks = jax.random.split(key, 8)

    def linear(kw, kb, fan_in, fan_out):
        bound = 1.0 / jnp.sqrt(fan_in)
        w = jax.random.uniform(kw, (fan_in, fan_out), jnp.float32, -bound, bound)
        b = jax.random.uniform(kb, (1, fan_out), jnp.float32, -bound, bound)
        return w, b

    w1, b1 = linear(ks[0], ks[1], D_IN, D_H1)
    w2, b2 = linear(ks[2], ks[3], D_H1, D_H2)
    w3, b3 = linear(ks[4], ks[5], D_H2, D_H3)
    w4, b4 = linear(ks[6], ks[7], D_H3, 10)
    gamma = jnp.ones((1, D_H1), jnp.float32)    # BatchNorm1d default weight
    beta = jnp.zeros((1, D_H1), jnp.float32)    # BatchNorm1d default bias
    return dict(w1=w1, b1=b1, gamma=gamma, beta=beta,
                w2=w2, b2=b2, w3=w3, b3=b3, w4=w4, b4=b4)


def prepare_params(params):
    """One-time device-side prep: bf16 weights, f32 biases/BN, lane-dense final layer."""
    w4_pad = jnp.zeros((D_H3, OUT_PAD), jnp.float32).at[:, :10].set(params["w4"])
    b4_pad = jnp.zeros((1, OUT_PAD), jnp.float32).at[:, :10].set(params["b4"])
    return dict(
        w1=params["w1"].astype(jnp.bfloat16), b1=params["b1"],
        gamma=params["gamma"], beta=params["beta"],
        w2=params["w2"].astype(jnp.bfloat16), b2=params["b2"],
        w3=params["w3"].astype(jnp.bfloat16), b3=params["b3"],
        w4=w4_pad.astype(jnp.bfloat16), b4=b4_pad,
    )


def clasnet_forward(x, dev_params):
    """x: (B, 1, 28, 28) or (B, 784) f32 -> (B, 10) f32 logits."""
    B = x.shape[0]
    x_flat = x.reshape(B, D_IN)                        # glue: x.view(-1, 784), stays f32

    args = (x_flat,
            dev_params["w1"], dev_params["b1"], dev_params["gamma"], dev_params["beta"],
            dev_params["w2"], dev_params["b2"], dev_params["w3"], dev_params["b3"],
            dev_params["w4"], dev_params["b4"])

    vmem = pl.BlockSpec(memory_space=pltpu.MemorySpace.VMEM)
    hbm = pl.BlockSpec(memory_space=pl.ANY)            # manual overlapped DMA in-kernel
    in_specs = [vmem,            # x
                vmem, vmem,      # w1, b1
                vmem, vmem,      # gamma, beta
                hbm, vmem,       # w2 (manual DMA), b2
                hbm, vmem,       # w3 (manual DMA), b3
                hbm, vmem]       # w4 (manual DMA), b4

    # Advisory cost hint so XLA can overlap neighbors with this DMA-dominated call.
    flops = 2 * B * (D_IN * D_H1 + D_H1 * D_H2 + D_H2 * D_H3 + D_H3 * OUT_PAD)
    w_bytes = 2 * (D_IN * D_H1 + D_H1 * D_H2 + D_H2 * D_H3 + D_H3 * OUT_PAD)     # bf16 weights
    act_bytes = 4 * (B * D_IN + B * OUT_PAD + 4 * D_H1 + D_H2 + D_H3 + OUT_PAD)  # f32 x/out/bias
    cost = pl.CostEstimate(flops=flops, transcendentals=D_H1,
                           bytes_accessed=w_bytes + act_bytes)

    out_pad = pl.pallas_call(
        clasnet_kernel,
        out_shape=jax.ShapeDtypeStruct((B, OUT_PAD), jnp.float32),
        in_specs=in_specs,
        out_specs=vmem,
        scratch_shapes=[
            pltpu.VMEM((D_H1, D_H2), jnp.bfloat16),    # w2 staging
            pltpu.VMEM((D_H2, D_H3), jnp.bfloat16),    # w3 staging
            pltpu.VMEM((D_H3, OUT_PAD), jnp.bfloat16), # w4 staging
            pltpu.SemaphoreType.DMA((3,)),
        ],
        cost_estimate=cost,
    )(*args)
    return out_pad[:, :10]


def clasnet_reference(x, params):
    """Pure-JAX reference using the same bf16-weight / f32-accumulate precision policy."""
    B = x.shape[0]
    h = x.reshape(B, D_IN).astype(jnp.bfloat16)
    h = jnp.dot(h, params["w1"].astype(jnp.bfloat16),
                preferred_element_type=jnp.float32) + params["b1"]
    mean = jnp.mean(h, axis=0, keepdims=True)
    var = jnp.mean((h - mean) ** 2, axis=0, keepdims=True)
    h = (h - mean) * jax.lax.rsqrt(var + BN_EPS)
    h = h * params["gamma"] + params["beta"]
    h = jnp.where(h > 0, h, LEAKY_SLOPE * h)
    h = jnp.maximum(jnp.dot(h.astype(jnp.bfloat16), params["w2"].astype(jnp.bfloat16),
                            preferred_element_type=jnp.float32) + params["b2"], 0.0)
    h = jnp.maximum(jnp.dot(h.astype(jnp.bfloat16), params["w3"].astype(jnp.bfloat16),
                            preferred_element_type=jnp.float32) + params["b3"], 0.0)
    return jnp.dot(h.astype(jnp.bfloat16), params["w4"].astype(jnp.bfloat16),
                   preferred_element_type=jnp.float32) + params["b4"]


if __name__ == "__main__":
    key = jax.random.PRNGKey(0)
    k_params, k_x = jax.random.split(key)

    params = make_params(k_params)
    dev_params = prepare_params(params)

    # Small batch of MNIST-shaped inputs (NCHW), flattened to 784 in the wrapper.
    x = jax.random.normal(k_x, (8, 1, 28, 28), dtype=jnp.float32)

    out = clasnet_forward(x, dev_params)
    out = jax.block_until_ready(out)

    ref = clasnet_reference(x, params)
    assert out.shape == (8, 10)
    # bf16 weights/activations on the MXU (f32 accumulate) -> slightly relaxed tolerance
    # vs. the matching-precision reference (which uses two-pass BN variance).
    assert jnp.allclose(out, ref, atol=5e-3, rtol=5e-3), "mismatch vs reference"

    print("KERNEL_OK")
</pallas_src>

<mosaic_0001>
module attributes {stable_mosaic.version = 11 : i64} {
  func.func @clasnet_kernel(%arg0: memref<8x784xf32, #tpu.memory_space<vmem>>, %arg1: memref<784x1024xbf16, #tpu.memory_space<vmem>>, %arg2: memref<1x1024xf32, #tpu.memory_space<vmem>>, %arg3: memref<1x1024xf32, #tpu.memory_space<vmem>>, %arg4: memref<1x1024xf32, #tpu.memory_space<vmem>>, %arg5: memref<1024x512xbf16, #tpu.memory_space<any>>, %arg6: memref<1x512xf32, #tpu.memory_space<vmem>>, %arg7: memref<512x128xbf16, #tpu.memory_space<any>>, %arg8: memref<1x128xf32, #tpu.memory_space<vmem>>, %arg9: memref<128x128xbf16, #tpu.memory_space<any>>, %arg10: memref<1x128xf32, #tpu.memory_space<vmem>>, %arg11: memref<8x128xf32, #tpu.memory_space<vmem>>, %arg12: memref<1024x512xbf16, #tpu.memory_space<vmem>>, %arg13: memref<512x128xbf16, #tpu.memory_space<vmem>>, %arg14: memref<128x128xbf16, #tpu.memory_space<vmem>>, %arg15: memref<3x!tpu.dma_semaphore, #tpu.memory_space<semaphore_mem>>) attributes {dimension_semantics = [], scalar_prefetch = 0 : i64, scratch_operands = 4 : i64, tpu.core_type = #tpu.core_type<tc>} {
    %c0_i32 = arith.constant 0 : i32
    %0 = tpu.memref_slice %arg15[%c0_i32] : memref<3x!tpu.dma_semaphore, #tpu.memory_space<semaphore_mem>> -> memref<1x!tpu.dma_semaphore, #tpu.memory_space<semaphore_mem>>
    %1 = tpu.memref_squeeze %0 : memref<1x!tpu.dma_semaphore, #tpu.memory_space<semaphore_mem>> -> memref<!tpu.dma_semaphore, #tpu.memory_space<semaphore_mem>>
    tpu.enqueue_dma source(%arg5 : memref<1024x512xbf16, #tpu.memory_space<any>>) target(%arg12 : memref<1024x512xbf16, #tpu.memory_space<vmem>>) target_semaphore(%1 : memref<!tpu.dma_semaphore, #tpu.memory_space<semaphore_mem>>)
    %c1_i32 = arith.constant 1 : i32
    %2 = tpu.memref_slice %arg15[%c1_i32] : memref<3x!tpu.dma_semaphore, #tpu.memory_space<semaphore_mem>> -> memref<1x!tpu.dma_semaphore, #tpu.memory_space<semaphore_mem>>
    %3 = tpu.memref_squeeze %2 : memref<1x!tpu.dma_semaphore, #tpu.memory_space<semaphore_mem>> -> memref<!tpu.dma_semaphore, #tpu.memory_space<semaphore_mem>>
    tpu.enqueue_dma source(%arg7 : memref<512x128xbf16, #tpu.memory_space<any>>) target(%arg13 : memref<512x128xbf16, #tpu.memory_space<vmem>>) target_semaphore(%3 : memref<!tpu.dma_semaphore, #tpu.memory_space<semaphore_mem>>)
    %c2_i32 = arith.constant 2 : i32
    %4 = tpu.memref_slice %arg15[%c2_i32] : memref<3x!tpu.dma_semaphore, #tpu.memory_space<semaphore_mem>> -> memref<1x!tpu.dma_semaphore, #tpu.memory_space<semaphore_mem>>
    %5 = tpu.memref_squeeze %4 : memref<1x!tpu.dma_semaphore, #tpu.memory_space<semaphore_mem>> -> memref<!tpu.dma_semaphore, #tpu.memory_space<semaphore_mem>>
    tpu.enqueue_dma source(%arg9 : memref<128x128xbf16, #tpu.memory_space<any>>) target(%arg14 : memref<128x128xbf16, #tpu.memory_space<vmem>>) target_semaphore(%5 : memref<!tpu.dma_semaphore, #tpu.memory_space<semaphore_mem>>)
    %c0 = arith.constant 0 : index
    %c0_0 = arith.constant 0 : index
    %6 = vector.load %arg0[%c0, %c0_0] : memref<8x784xf32, #tpu.memory_space<vmem>>, vector<8x784xf32>
    %7 = arith.truncf %6 : vector<8x784xf32> to vector<8x784xbf16>
    %c0_1 = arith.constant 0 : index
    %c0_2 = arith.constant 0 : index
    %8 = vector.load %arg1[%c0_1, %c0_2] : memref<784x1024xbf16, #tpu.memory_space<vmem>>, vector<784x1024xbf16>
    %cst = arith.constant dense<0.000000e+00> : vector<8x1024xf32>
    %9 = tpu.matmul %7, %8, %cst {dimension_numbers = #tpu.dot_dimension_numbers<[1], [0], [0], [1], [0, 0, 1, 1], [], []>} : vector<8x784xbf16>, vector<784x1024xbf16>, vector<8x1024xf32> -> vector<8x1024xf32>
    %c0_3 = arith.constant 0 : index
    %c0_4 = arith.constant 0 : index
    %10 = vector.load %arg2[%c0_3, %c0_4] : memref<1x1024xf32, #tpu.memory_space<vmem>>, vector<1x1024xf32>
    %11 = vector.broadcast %10 : vector<1x1024xf32> to vector<8x1024xf32>
    %12 = arith.addf %9, %11 : vector<8x1024xf32>
    %cst_5 = arith.constant dense<0.000000e+00> : vector<1024xf32>
    %13 = vector.multi_reduction <add>, %12, %cst_5 [0] : vector<8x1024xf32> to vector<1024xf32>
    %14 = vector.shape_cast %13 : vector<1024xf32> to vector<1x1024xf32>
    %15 = arith.mulf %12, %12 : vector<8x1024xf32>
    %cst_6 = arith.constant dense<0.000000e+00> : vector<1024xf32>
    %16 = vector.multi_reduction <add>, %15, %cst_6 [0] : vector<8x1024xf32> to vector<1024xf32>
    %17 = vector.shape_cast %16 : vector<1024xf32> to vector<1x1024xf32>
    %cst_7 = arith.constant 1.250000e-01 : f32
    %18 = vector.broadcast %cst_7 : f32 to vector<1x1024xf32>
    %19 = arith.mulf %14, %18 : vector<1x1024xf32>
    %cst_8 = arith.constant 1.250000e-01 : f32
    %20 = vector.broadcast %cst_8 : f32 to vector<1x1024xf32>
    %21 = arith.mulf %17, %20 : vector<1x1024xf32>
    %22 = arith.mulf %19, %19 : vector<1x1024xf32>
    %23 = arith.subf %21, %22 : vector<1x1024xf32>
    %cst_9 = arith.constant 0.000000e+00 : f32
    %24 = vector.broadcast %cst_9 : f32 to vector<1x1024xf32>
    %25 = arith.maximumf %23, %24 : vector<1x1024xf32>
    %c0_10 = arith.constant 0 : index
    %c0_11 = arith.constant 0 : index
    %26 = vector.load %arg3[%c0_10, %c0_11] : memref<1x1024xf32, #tpu.memory_space<vmem>>, vector<1x1024xf32>
    %cst_12 = arith.constant 9.99999974E-6 : f32
    %27 = vector.broadcast %cst_12 : f32 to vector<1x1024xf32>
    %28 = arith.addf %25, %27 : vector<1x1024xf32>
    %29 = math.rsqrt %28 : vector<1x1024xf32>
    %30 = arith.mulf %26, %29 : vector<1x1024xf32>
    %c0_13 = arith.constant 0 : index
    %c0_14 = arith.constant 0 : index
    %31 = vector.load %arg4[%c0_13, %c0_14] : memref<1x1024xf32, #tpu.memory_space<vmem>>, vector<1x1024xf32>
    %32 = arith.mulf %19, %30 : vector<1x1024xf32>
    %33 = arith.subf %31, %32 : vector<1x1024xf32>
    %34 = vector.broadcast %30 : vector<1x1024xf32> to vector<8x1024xf32>
    %35 = arith.mulf %12, %34 : vector<8x1024xf32>
    %36 = vector.broadcast %33 : vector<1x1024xf32> to vector<8x1024xf32>
    %37 = arith.addf %35, %36 : vector<8x1024xf32>
    %cst_15 = arith.constant 0.000000e+00 : f32
    %38 = vector.broadcast %cst_15 : f32 to vector<8x1024xf32>
    %39 = arith.cmpf ogt, %37, %38 : vector<8x1024xf32>
    %cst_16 = arith.constant 2.000000e-01 : f32
    %40 = vector.broadcast %cst_16 : f32 to vector<8x1024xf32>
    %41 = arith.mulf %40, %37 : vector<8x1024xf32>
    %42 = arith.select %39, %37, %41 : vector<8x1024xi1>, vector<8x1024xf32>
    %c0_i32_17 = arith.constant 0 : i32
    %43 = tpu.memref_slice %arg15[%c0_i32_17] : memref<3x!tpu.dma_semaphore, #tpu.memory_space<semaphore_mem>> -> memref<1x!tpu.dma_semaphore, #tpu.memory_space<semaphore_mem>>
    %44 = tpu.memref_squeeze %43 : memref<1x!tpu.dma_semaphore, #tpu.memory_space<semaphore_mem>> -> memref<!tpu.dma_semaphore, #tpu.memory_space<semaphore_mem>>
    tpu.wait_dma2 semaphore(%44 : memref<!tpu.dma_semaphore, #tpu.memory_space<semaphore_mem>>) src(%arg5 : memref<1024x512xbf16, #tpu.memory_space<any>>) dst(%arg12 : memref<1024x512xbf16, #tpu.memory_space<vmem>>)
    %45 = arith.truncf %42 : vector<8x1024xf32> to vector<8x1024xbf16>
    %c0_18 = arith.constant 0 : index
    %c0_19 = arith.constant 0 : index
    %46 = vector.load %arg12[%c0_18, %c0_19] : memref<1024x512xbf16, #tpu.memory_space<vmem>>, vector<1024x512xbf16>
    %cst_20 = arith.constant dense<0.000000e+00> : vector<8x512xf32>
    %47 = tpu.matmul %45, %46, %cst_20 {dimension_numbers = #tpu.dot_dimension_numbers<[1], [0], [0], [1], [0, 0, 1, 1], [], []>} : vector<8x1024xbf16>, vector<1024x512xbf16>, vector<8x512xf32> -> vector<8x512xf32>
    %c0_21 = arith.constant 0 : index
    %c0_22 = arith.constant 0 : index
    %48 = vector.load %arg6[%c0_21, %c0_22] : memref<1x512xf32, #tpu.memory_space<vmem>>, vector<1x512xf32>
    %49 = vector.broadcast %48 : vector<1x512xf32> to vector<8x512xf32>
    %50 = arith.addf %47, %49 : vector<8x512xf32>
    %cst_23 = arith.constant 0.000000e+00 : f32
    %51 = vector.broadcast %cst_23 : f32 to vector<8x512xf32>
    %52 = arith.maximumf %50, %51 : vector<8x512xf32>
    %c1_i32_24 = arith.constant 1 : i32
    %53 = tpu.memref_slice %arg15[%c1_i32_24] : memref<3x!tpu.dma_semaphore, #tpu.memory_space<semaphore_mem>> -> memref<1x!tpu.dma_semaphore, #tpu.memory_space<semaphore_mem>>
    %54 = tpu.memref_squeeze %53 : memref<1x!tpu.dma_semaphore, #tpu.memory_space<semaphore_mem>> -> memref<!tpu.dma_semaphore, #tpu.memory_space<semaphore_mem>>
    tpu.wait_dma2 semaphore(%54 : memref<!tpu.dma_semaphore, #tpu.memory_space<semaphore_mem>>) src(%arg7 : memref<512x128xbf16, #tpu.memory_space<any>>) dst(%arg13 : memref<512x128xbf16, #tpu.memory_space<vmem>>)
    %55 = arith.truncf %52 : vector<8x512xf32> to vector<8x512xbf16>
    %c0_25 = arith.constant 0 : index
    %c0_26 = arith.constant 0 : index
    %56 = vector.load %arg13[%c0_25, %c0_26] : memref<512x128xbf16, #tpu.memory_space<vmem>>, vector<512x128xbf16>
    %cst_27 = arith.constant dense<0.000000e+00> : vector<8x128xf32>
    %57 = tpu.matmul %55, %56, %cst_27 {dimension_numbers = #tpu.dot_dimension_numbers<[1], [0], [0], [1], [0, 0, 1, 1], [], []>} : vector<8x512xbf16>, vector<512x128xbf16>, vector<8x128xf32> -> vector<8x128xf32>
    %c0_28 = arith.constant 0 : index
    %c0_29 = arith.constant 0 : index
    %58 = vector.load %arg8[%c0_28, %c0_29] : memref<1x128xf32, #tpu.memory_space<vmem>>, vector<1x128xf32>
    %59 = vector.broadcast %58 : vector<1x128xf32> to vector<8x128xf32>
    %60 = arith.addf %57, %59 : vector<8x128xf32>
    %cst_30 = arith.constant 0.000000e+00 : f32
    %61 = vector.broadcast %cst_30 : f32 to vector<8x128xf32>
    %62 = arith.maximumf %60, %61 : vector<8x128xf32>
    %c2_i32_31 = arith.constant 2 : i32
    %63 = tpu.memref_slice %arg15[%c2_i32_31] : memref<3x!tpu.dma_semaphore, #tpu.memory_space<semaphore_mem>> -> memref<1x!tpu.dma_semaphore, #tpu.memory_space<semaphore_mem>>
    %64 = tpu.memref_squeeze %63 : memref<1x!tpu.dma_semaphore, #tpu.memory_space<semaphore_mem>> -> memref<!tpu.dma_semaphore, #tpu.memory_space<semaphore_mem>>
    tpu.wait_dma2 semaphore(%64 : memref<!tpu.dma_semaphore, #tpu.memory_space<semaphore_mem>>) src(%arg9 : memref<128x128xbf16, #tpu.memory_space<any>>) dst(%arg14 : memref<128x128xbf16, #tpu.memory_space<vmem>>)
    %65 = arith.truncf %62 : vector<8x128xf32> to vector<8x128xbf16>
    %c0_32 = arith.constant 0 : index
    %c0_33 = arith.constant 0 : index
    %66 = vector.load %arg14[%c0_32, %c0_33] : memref<128x128xbf16, #tpu.memory_space<vmem>>, vector<128x128xbf16>
    %cst_34 = arith.constant dense<0.000000e+00> : vector<8x128xf32>
    %67 = tpu.matmul %65, %66, %cst_34 {dimension_numbers = #tpu.dot_dimension_numbers<[1], [0], [0], [1], [0, 0, 1, 1], [], []>} : vector<8x128xbf16>, vector<128x128xbf16>, vector<8x128xf32> -> vector<8x128xf32>
    %c0_35 = arith.constant 0 : index
    %c0_36 = arith.constant 0 : index
    %68 = vector.load %arg10[%c0_35, %c0_36] : memref<1x128xf32, #tpu.memory_space<vmem>>, vector<1x128xf32>
    %69 = vector.broadcast %68 : vector<1x128xf32> to vector<8x128xf32>
    %70 = arith.addf %67, %69 : vector<8x128xf32>
    %c0_37 = arith.constant 0 : index
    %c0_38 = arith.constant 0 : index
    %71 = vector.load %arg11[%c0_37, %c0_38] : memref<8x128xf32, #tpu.memory_space<vmem>>, vector<8x128xf32>
    tpu.vector_store %arg11[%c0_37, %c0_38], %70 {strides = array<i32>} : memref<8x128xf32, #tpu.memory_space<vmem>>, vector<8x128xf32>,
    return
  }
}

</mosaic_0001>

<bundles_post_ra>
// kernel: tpu_custom_call.1
= control target key start
LH: loop header
LB: loop body
LE: loop exit
PB: predicated region body
PF: predicated region fallthrough
CT: control target
= control target key end

     0   :  { %16 = vsyncpa [#allocation7], 0  ;;  %s7991_s0 = inlined_call_operand.hbm [shape: f32[8,784], index: 0, kind: input, shape index: {}]   ;;  %s7992_s1 = inlined_call_operand.hbm [shape: bf16[784,1024], index: 1, kind: input, shape index: {}]   ;;  %s7993_s2 = inlined_call_operand.hbm [shape: f32[1,1024], index: 2, kind: input, shape index: {}]   ;;  %s7994_s3 = inlined_call_operand.hbm [shape: f32[1,1024], index: 3, kind: input, shape index: {}]   ;;  %s7995_s4 = inlined_call_operand.hbm [shape: f32[1,1024], index: 4, kind: input, shape index: {}]   ;;  %s7996_s5 = inlined_call_operand.hbm [shape: bf16[1024,512], index: 5, kind: input, shape index: {}]   ;;  %s7997_s6 = inlined_call_operand.hbm [shape: f32[1,512], index: 6, kind: input, shape index: {}]   ;;  %s7998_s7 = inlined_call_operand.hbm [shape: bf16[512,128], index: 7, kind: input, shape index: {}]   ;;  %s7999_s8 = inlined_call_operand.hbm [shape: f32[1,128], index: 8, kind: input, shape index: {}]   ;;  %s8000_s9 = inlined_call_operand.hbm [shape: bf16[128,128], index: 9, kind: input, shape index: {}]   ;;  %s8001_s10 = inlined_call_operand.hbm [shape: f32[1,128], index: 10, kind: input, shape index: {}]   ;;  %s8002_s11 = inlined_call_operand.hbm [shape: f32[8,128], index: 11, kind: output, shape index: {}]  }
   0x1   :  { %17 = vsyncpa [#allocation10], 0 }
   0x2   :  { %18 = vsyncpa [#allocation13], 0 }
   0x3   :  { %19 = vsyncpa [#allocation16], 0 }
   0x4   :  { %20 = vsyncpa [#allocation19], 0 }
   0x5   :  { %21 = vsyncpa [#allocation8], 0  ;;  %s7539_s17 = smov [#allocation9]  }
   0x6   :  { %s37_s18 = sshll.u32 %s7539_s17, 4  ;;  %s38_s18 = int_to_ptr.vmem [resolvable:$true] %s37_s18 }
   0x7   :  { %s7289_s19 = scalar_lea.vmem %s38_s18, 50176  ;;  %p7294_p1 = scmp.lt.s32.totalorder %s38_s18, %s38_s18 }
   0x8   :  { %p7290_p0 = scmp.ne.s32.totalorder %s38_s18, %s7289_s19  ;;  %p7295_p2 = scmp.lt.s32.totalorder %s7289_s19, %s7289_s19 }
   0xa   :  { %p7296_p3 = por %p7295_p2, %p7294_p1 }
   0xc   :  { %p7297_p4 = pnand %p7296_p3, %p7290_p0 }
   0xe   :  { %7300 = shalt.err (!%p7297_p4)
}
   0xf   :  { %s7540_s20 = smov 512   ;;  %s7541_s21 = smov 32  }
  0x10   :  { %43 = dma.hbm_to_vmem [thread:$0]  %s7992_s1, 50176, %s38_s18, [#allocation10], %s7540_s20, %s7540_s20, %s7541_s21  }
  0x11   :  { %s7542_s24 = smov [#allocation12]   ;;  %s7543_s26 = smov [#allocation15]  }
  0x12   :  { %s60_s25 = sshll.u32 %s7542_s24, 4  ;;  %s80_s27 = sshll.u32 %s7543_s26, 4  ;;  %s61_s25 = int_to_ptr.vmem [resolvable:$true] %s60_s25  ;;  %s81_s27 = int_to_ptr.vmem [resolvable:$true] %s80_s27 }
  0x13   :  { %s7309_s28 = scalar_lea.vmem %s61_s25, 128  ;;  %p7314_p6 = scmp.lt.s32.totalorder %s61_s25, %s61_s25 }
  0x14   :  { %p7310_p5 = scmp.ne.s32.totalorder %s61_s25, %s7309_s28  ;;  %p7315_p7 = scmp.lt.s32.totalorder %s7309_s28, %s7309_s28 }
  0x16   :  { %p7316_p8 = por %p7315_p7, %p7314_p6 }
  0x18   :  { %p7317_p9 = pnand %p7316_p8, %p7310_p5 }
  0x1a   :  { %7320 = shalt.err (!%p7317_p9)
}
  0x1b   :  { %63 = dma.hbm_to_vmem [thread:$0]  %s7994_s3, 128, %s61_s25, [#allocation13]  }
  0x1c   :  { %s7329_s12 = scalar_lea.vmem %s81_s27, 64  ;;  %p7334_p11 = scmp.lt.s32.totalorder %s81_s27, %s81_s27 }
  0x1d   :  { %p7330_p10 = scmp.ne.s32.totalorder %s81_s27, %s7329_s12  ;;  %p7335_p12 = scmp.lt.s32.totalorder %s7329_s12, %s7329_s12 }
  0x1f   :  { %p7336_p13 = por %p7335_p12, %p7334_p11 }
  0x21   :  { %p7337_p0 = pnand %p7336_p13, %p7330_p10 }
  0x23   :  { %7340 = shalt.err (!%p7337_p0)
}
  0x24   :  { %83 = dma.hbm_to_vmem [thread:$0]  %s7997_s6, 64, %s81_s27, [#allocation16]  }
  0x25   :  { %s7544_s14 = smov [#allocation6]   ;;  %s7545_s16 = smov [#allocation11]  }
  0x26   :  { %s28_s15 = sshll.u32 %s7544_s14, 4  ;;  %s50_s17 = sshll.u32 %s7545_s16, 4  ;;  %s29_s15 = int_to_ptr.vmem [resolvable:$true] %s28_s15  ;;  %s51_s17 = int_to_ptr.vmem [resolvable:$true] %s50_s17 }
  0x27   :  { %s7349_s18 = scalar_lea.vmem %s29_s15, 896  ;;  %p7354_p2 = scmp.lt.s32.totalorder %s29_s15, %s29_s15 }
  0x28   :  { %p7350_p1 = scmp.ne.s32.totalorder %s29_s15, %s7349_s18  ;;  %p7355_p3 = scmp.lt.s32.totalorder %s7349_s18, %s7349_s18 }
  0x2a   :  { %p7356_p4 = por %p7355_p3, %p7354_p2 }
  0x2c   :  { %p7357_p5 = pnand %p7356_p4, %p7350_p1 }
  0x2e   :  { %7360 = shalt.err (!%p7357_p5)
}
  0x2f   :  { %31 = dma.hbm_to_vmem [thread:$0]  %s7991_s0, 896, %s29_s15, [#allocation7]  }
  0x30   :  { %s7369_s20 = scalar_lea.vmem %s51_s17, 128  ;;  %p7374_p7 = scmp.lt.s32.totalorder %s51_s17, %s51_s17 }
  0x31   :  { %p7370_p6 = scmp.ne.s32.totalorder %s51_s17, %s7369_s20  ;;  %p7375_p8 = scmp.lt.s32.totalorder %s7369_s20, %s7369_s20 }
  0x33   :  { %p7376_p9 = por %p7375_p8, %p7374_p7 }
  0x35   :  { %p7377_p10 = pnand %p7376_p9, %p7370_p6 }
  0x37   :  { %7380 = shalt.err (!%p7377_p10)
}
  0x38   :  { %53 = dma.hbm_to_vmem [thread:$0]  %s7993_s2, 128, %s51_s17, [#allocation10]  }
  0x39   :  { %s7546_s22 = smov [#allocation14]   ;;  %s7547_s24 = smov [#allocation17]  }
  0x3a   :  { %s70_s23 = sshll.u32 %s7546_s22, 4  ;;  %s90_s25 = sshll.u32 %s7547_s24, 4  ;;  %s71_s23 = int_to_ptr.vmem [resolvable:$true] %s70_s23  ;;  %s91_s25 = int_to_ptr.vmem [resolvable:$true] %s90_s25 }
  0x3b   :  { %s7389_s26 = scalar_lea.vmem %s71_s23, 128  ;;  %p7394_p12 = scmp.lt.s32.totalorder %s71_s23, %s71_s23 }
  0x3c   :  { %p7390_p11 = scmp.ne.s32.totalorder %s71_s23, %s7389_s26  ;;  %p7395_p13 = scmp.lt.s32.totalorder %s7389_s26, %s7389_s26 }
  0x3e   :  { %p7396_p0 = por %p7395_p13, %p7394_p12 }
  0x40   :  { %p7397_p1 = pnand %p7396_p0, %p7390_p11 }
  0x42   :  { %7400 = shalt.err (!%p7397_p1)
}
  0x43   :  { %73 = dma.hbm_to_vmem [thread:$0]  %s7995_s4, 128, %s71_s23, [#allocation13]  }
  0x44   :  { %s7409_s28 = scalar_lea.vmem %s91_s25, 16  ;;  %s7413_s2 = scalar_lea.vmem %s91_s25, 32 }
  0x45   :  { %p7410_p2 = scmp.ne.s32.totalorder %s91_s25, %s7409_s28  ;;  %p7414_p3 = scmp.lt.s32.totalorder %s91_s25, %s91_s25 }
  0x46   :  { %p7415_p4 = scmp.lt.s32.totalorder %s7413_s2, %s7409_s28 }
  0x48   :  { %p7416_p5 = por %p7415_p4, %p7414_p3 }
  0x4a   :  { %p7417_p6 = pnand %p7416_p5, %p7410_p2 }
  0x4c   :  { %7420 = shalt.err (!%p7417_p6)
}
  0x4d   :  { %93 = dma.hbm_to_vmem [thread:$0]  %s7999_s8, 16, %s91_s25, [#allocation16]  }
  0x4e   :  { %s7548_s12 = smov [#allocation18]  }
  0x4f   :  { %s100_s1 = sshll.u32 %s7548_s12, 4  ;;  %s101_s1 = int_to_ptr.vmem [resolvable:$true] %s100_s1 }
  0x50   :  { %s7429_s13 = scalar_lea.vmem %s101_s1, 16  ;;  %s7433_s14 = scalar_lea.vmem %s101_s1, 32 }
  0x51   :  { %p7430_p7 = scmp.ne.s32.totalorder %s101_s1, %s7429_s13  ;;  %p7434_p8 = scmp.lt.s32.totalorder %s101_s1, %s101_s1 }
  0x52   :  { %p7435_p9 = scmp.lt.s32.totalorder %s7433_s14, %s7429_s13 }
  0x54   :  { %p7436_p10 = por %p7435_p9, %p7434_p8 }
  0x56   :  { %p7437_p11 = pnand %p7436_p10, %p7430_p7 }
  0x58   :  { %7440 = shalt.err (!%p7437_p11)
}
  0x59   :  { %103 = dma.hbm_to_vmem [thread:$0]  %s8001_s10, 16, %s101_s1, [#allocation19]  }
  0x5a   :  { %7521 = dma.done.wait [#allocation7], 896  }
  0x5b   :  { %7522 = vsyncadd [#allocation7], 4294966400 }
  0x5c   :  { %7523 = dma.done.wait [#allocation10], 50304  }
  0x5d   :  { %7524 = vsyncadd [#allocation10], 4294916992 }
  0x5e   :  { %7525 = dma.done.wait [#allocation13], 256  }
  0x5f   :  { %7526 = vsyncadd [#allocation13], 4294967040 }
  0x60   :  { %7527 = dma.done.wait [#allocation16], 80  }
  0x61   :  { %7528 = vsyncadd [#allocation16], 4294967216 }
  0x62   :  { %7529 = dma.done.wait [#allocation19], 16  }
  0x63   :  { %7530 = vsyncadd [#allocation19], 4294967280  ;;  %v234_v0 = vld [vmem:[#allocation9 + $0x1c0] sm:$0xff]  ;;  %v165_v53 = vld [vmem:[#allocation6 + $0x8] sm:$0xff]  ;;  %vm2572_vm0 = vcmask 130048   ;;  %s7551_s8 = smov [#allocation2]  }
  0x64   :  { %v238_v1 = vld [vmem:[#allocation9 + $0x1e0] sm:$0xff]  ;;  %v7641_v58 = vpack.c.bf16 %v165_v53, %v165_v53  ;;  %s136_s10 = sshll.u32 %s7551_s8, 4  ;;  %s7552_s16 = smov [#allocation3]   ;;  %s137_s10 = int_to_ptr.vmem [resolvable:$true] %s136_s10 }
  0x65   :  { %v362_v2 = vld [vmem:[#allocation9 + $0x5c0] sm:$0xff]  ;;  %v6109_v3 = vcombine.high %v234_v0, %v238_v1  ;;  %v6108_v5 = vcombine.low %v234_v0, %v238_v1  ;;  %s148_s17 = sshll.u32 %s7552_s16, 4  ;;  %s7449_s18 = scalar_lea.vmem %s137_s10, 32768  ;;  %s149_s17 = int_to_ptr.vmem [resolvable:$true] %s148_s17 }
  0x66   :  { %v366_v4 = vld [vmem:[#allocation9 + $0x5e0] sm:$0xff]  ;;  %2608 = vmatprep.mubr.bf16.mxu0 %v7641_v58  ;;  %p7450_p12 = scmp.ne.s32.totalorder %s137_s10, %s7449_s18  ;;  %p7454_p13 = scmp.lt.s32.totalorder %s137_s10, %s137_s10 }
  0x67   :  { %v226_v6 = vld [vmem:[#allocation9 + $0x180] sm:$0xff]  ;;  %v6237_v8 = vcombine.high %v362_v2, %v366_v4  ;;  %v6236_v9 = vcombine.low %v362_v2, %v366_v4  ;;  %2576 = vmatprep.subr.bf16.mxu0 %v6109_v3  ;;  %p7455_p0 = scmp.lt.s32.totalorder %s7449_s18, %s7449_s18 }
  0x68   :  { %v230_v7 = vld [vmem:[#allocation9 + $0x1a0] sm:$0xff]  ;;  %2577 = vmatpush1.bf16.msra.mxu0 %v6108_v5 }
  0x69   :  { %v6101_v10 = vcombine.high %v226_v6, %v230_v7  ;;  %v354_v11 = vld [vmem:[#allocation9 + $0x580] sm:$0xff]  ;;  %2617 = vmatprep.subr.bf16.mxu1 %v6237_v8  ;;  %v6100_v18 = vcombine.low %v226_v6, %v230_v7  ;;  %p7456_p1 = por %p7455_p0, %p7454_p13 }
  0x6a   :  { %v358_v12 = vld [vmem:[#allocation9 + $0x5a0] sm:$0xff]  ;;  %2618 = vmatpush1.bf16.msra.mxu1 %v6236_v9 }
  0x6b   :  { %v218_v13 = vld [vmem:[#allocation9 + $0x140] sm:$0xff]  ;;  %v6229_v14 = vcombine.high %v354_v11, %v358_v12  ;;  %2578 = vmatprep.subr.bf16.mxu0 %v6101_v10  ;;  %v6228_v19 = vcombine.low %v354_v11, %v358_v12  ;;  %p7457_p2 = pnand %p7456_p1, %p7450_p12 }
  0x6c   :  { %v222_v15 = vld [vmem:[#allocation9 + $0x160] sm:$0xff]  ;;  %2579 = vmatpush1.bf16.msra.mxu0 %v6100_v18 }
  0x6d   :  { %v346_v16 = vld [vmem:[#allocation9 + $0x540] sm:$0xff]  ;;  %v6093_v20 = vcombine.high %v218_v13, %v222_v15  ;;  %2619 = vmatprep.subr.bf16.mxu1 %v6229_v14  ;;  %v6092_v26 = vcombine.low %v218_v13, %v222_v15 }
  0x6e   :  { %v350_v17 = vld [vmem:[#allocation9 + $0x560] sm:$0xff]  ;;  %2620 = vmatpush1.bf16.msra.mxu1 %v6228_v19 }
  0x6f   :  { %v6221_v21 = vcombine.high %v346_v16, %v350_v17  ;;  %v210_v22 = vld [vmem:[#allocation9 + $0x100] sm:$0xff]  ;;  %2580 = vmatprep.subr.bf16.mxu0 %v6093_v20  ;;  %v6220_v27 = vcombine.low %v346_v16, %v350_v17 }
  0x70   :  { %v214_v23 = vld [vmem:[#allocation9 + $0x120] sm:$0xff]  ;;  %2581 = vmatpush1.bf16.msra.mxu0 %v6092_v26 }
  0x71   :  { %v338_v24 = vld [vmem:[#allocation9 + $0x500] sm:$0xff]  ;;  %v6085_v28 = vcombine.high %v210_v22, %v214_v23  ;;  %2621 = vmatprep.subr.bf16.mxu1 %v6221_v21  ;;  %v6084_v34 = vcombine.low %v210_v22, %v214_v23 }
  0x72   :  { %v342_v25 = vld [vmem:[#allocation9 + $0x520] sm:$0xff]  ;;  %2622 = vmatpush1.bf16.msra.mxu1 %v6220_v27 }
  0x73   :  { %v6213_v29 = vcombine.high %v338_v24, %v342_v25  ;;  %v202_v30 = vld [vmem:[#allocation9 + $0xc0] sm:$0xff]  ;;  %2582 = vmatprep.subr.bf16.mxu0 %v6085_v28  ;;  %v6212_v35 = vcombine.low %v338_v24, %v342_v25 }
  0x74   :  { %v206_v31 = vld [vmem:[#allocation9 + $0xe0] sm:$0xff]  ;;  %2583 = vmatpush1.bf16.msra.mxu0 %v6084_v34 }
  0x75   :  { %v330_v32 = vld [vmem:[#allocation9 + $0x4c0] sm:$0xff]  ;;  %v6077_v36 = vcombine.high %v202_v30, %v206_v31  ;;  %2623 = vmatprep.subr.bf16.mxu1 %v6213_v29  ;;  %v6076_v42 = vcombine.low %v202_v30, %v206_v31 }
  0x76   :  { %v334_v33 = vld [vmem:[#allocation9 + $0x4e0] sm:$0xff]  ;;  %2624 = vmatpush1.bf16.msra.mxu1 %v6212_v35 }
  0x77   :  { %v6205_v37 = vcombine.high %v330_v32, %v334_v33  ;;  %v194_v38 = vld [vmem:[#allocation9 + $0x80] sm:$0xff]  ;;  %2584 = vmatprep.subr.bf16.mxu0 %v6077_v36  ;;  %v6204_v43 = vcombine.low %v330_v32, %v334_v33 }
  0x78   :  { %v198_v39 = vld [vmem:[#allocation9 + $0xa0] sm:$0xff]  ;;  %2585 = vmatpush1.bf16.msra.mxu0 %v6076_v42 }
  0x79   :  { %v322_v40 = vld [vmem:[#allocation9 + $0x480] sm:$0xff]  ;;  %v6069_v44 = vcombine.high %v194_v38, %v198_v39  ;;  %2625 = vmatprep.subr.bf16.mxu1 %v6205_v37  ;;  %v6068_v50 = vcombine.low %v194_v38, %v198_v39 }
  0x7a   :  { %v326_v41 = vld [vmem:[#allocation9 + $0x4a0] sm:$0xff]  ;;  %2626 = vmatpush1.bf16.msra.mxu1 %v6204_v43 }
  0x7b   :  { %v6197_v45 = vcombine.high %v322_v40, %v326_v41  ;;  %v186_v46 = vld [vmem:[#allocation9 + $0x40] sm:$0xff]  ;;  %2586 = vmatprep.subr.bf16.mxu0 %v6069_v44  ;;  %v6196_v51 = vcombine.low %v322_v40, %v326_v41 }
  0x7c   :  { %v190_v47 = vld [vmem:[#allocation9 + $0x60] sm:$0xff]  ;;  %2587 = vmatpush1.bf16.msra.mxu0 %v6068_v50 }
  0x7d   :  { %v314_v48 = vld [vmem:[#allocation9 + $0x440] sm:$0xff]  ;;  %v6061_v52 = vcombine.high %v186_v46, %v190_v47  ;;  %2627 = vmatprep.subr.bf16.mxu1 %v6197_v45  ;;  %v6060_v62 = vcombine.low %v186_v46, %v190_v47 }
  0x7e   :  { %v318_v49 = vld [vmem:[#allocation9 + $0x460] sm:$0xff]  ;;  %2628 = vmatpush1.bf16.msra.mxu1 %v6196_v51 }
  0x7f   :  { %v167_v54 = vld [vmem:[#allocation6 + $0x18] sm:$0xff]  ;;  %v6189_v55 = vcombine.high %v314_v48, %v318_v49  ;;  %2588 = vmatprep.subr.bf16.mxu0 %v6061_v52  ;;  %v6188_v63 = vcombine.low %v314_v48, %v318_v49 }
  0x80   :  { %v178_v56 = vld [vmem:[#allocation9] sm:$0xff]  ;;  %v7643_v59 = vpack.c.bf16 %v167_v54, %v167_v54  ;;  %2589 = vmatpush1.bf16.msra.mxu0 %v6060_v62 }
  0x81   :  { %v182_v57 = vld [vmem:[#allocation9 + $0x20] sm:$0xff]  ;;  %2629 = vmatprep.subr.bf16.mxu1 %v6189_v55 }
  0x82   :  { %v306_v60 = vld [vmem:[#allocation9 + $0x400] sm:$0xff]  ;;  %v6053_v0 = vcombine.high %v178_v56, %v182_v57  ;;  %2649 = vmatprep.mubr.bf16.mxu1 %v7643_v59  ;;  %v6052_v6 = vcombine.low %v178_v56, %v182_v57  ;;  %2630 = vmatpush1.bf16.msra.mxu1 %v6188_v63 }
  0x83   :  { %v310_v61 = vld [vmem:[#allocation9 + $0x420] sm:$0xff] }
  0x84   :  { %v6181_v1 = vcombine.high %v306_v60, %v310_v61  ;;  %v298_v2 = vld [vmem:[#allocation9 + $0x3c0] sm:$0xff]  ;;  %2590 = vmatprep.subr.bf16.mxu0 %v6053_v0  ;;  %v6180_v7 = vcombine.low %v306_v60, %v310_v61 }
  0x85   :  { %v302_v3 = vld [vmem:[#allocation9 + $0x3e0] sm:$0xff]  ;;  %2591 = vmatpush1.bf16.msra.mxu0 %v6052_v6 }
  0x86   :  { %v426_v4 = vld [vmem:[#allocation9 + $0x7c0] sm:$0xff]  ;;  %v6173_v8 = vcombine.high %v298_v2, %v302_v3  ;;  %2631 = vmatprep.subr.bf16.mxu1 %v6181_v1  ;;  %v6172_v14 = vcombine.low %v298_v2, %v302_v3 }
  0x87   :  { %v430_v5 = vld [vmem:[#allocation9 + $0x7e0] sm:$0xff]  ;;  %2632 = vmatpush1.bf16.msra.mxu1 %v6180_v7 }
  0x88   :  { %v6301_v9 = vcombine.high %v426_v4, %v430_v5  ;;  %v290_v10 = vld [vmem:[#allocation9 + $0x380] sm:$0xff]  ;;  %2592 = vmatprep.subr.bf16.mxu0 %v6173_v8  ;;  %v6300_v15 = vcombine.low %v426_v4, %v430_v5 }
  0x89   :  { %v294_v11 = vld [vmem:[#allocation9 + $0x3a0] sm:$0xff]  ;;  %2593 = vmatpush2.bf16.msra.mxu0 %v6172_v14 }
  0x8a   :  { %v418_v12 = vld [vmem:[#allocation9 + $0x780] sm:$0xff]  ;;  %v6165_v16 = vcombine.high %v290_v10, %v294_v11  ;;  %2633 = vmatprep.subr.bf16.mxu1 %v6301_v9  ;;  %v6164_v22 = vcombine.low %v290_v10, %v294_v11  ;;  %v164_v9 = vld [vmem:[#allocation6] sm:$0xff]  ;;  %v166_v11 = vld [vmem:[#allocation6 + $0x10] sm:$0xff] }
  0x8b   :  { %v422_v13 = vld [vmem:[#allocation9 + $0x7a0] sm:$0xff]  ;;  %2634 = vmatpush2.bf16.msra.mxu1 %v6300_v15 }
  0x8c   :  { %v6293_v17 = vcombine.high %v418_v12, %v422_v13  ;;  %v282_v18 = vld [vmem:[#allocation9 + $0x340] sm:$0xff]  ;;  %2594 = vmatprep.subr.bf16.mxu0 %v6165_v16  ;;  %v6292_v23 = vcombine.low %v418_v12, %v422_v13  ;;  %v7647_v16 = vpack.c.bf16 %v164_v9, %v164_v9 }
  0x8d   :  { %v286_v19 = vld [vmem:[#allocation9 + $0x360] sm:$0xff]  ;;  %2595 = vmatpush2.bf16.msra.mxu0 %v6164_v22 }
  0x8e   :  { %v410_v20 = vld [vmem:[#allocation9 + $0x740] sm:$0xff]  ;;  %v6157_v24 = vcombine.high %v282_v18, %v286_v19  ;;  %2635 = vmatprep.subr.bf16.mxu1 %v6293_v17  ;;  %v6156_v30 = vcombine.low %v282_v18, %v286_v19  ;;  %v235_v17 = vld [vmem:[#allocation9 + $0x1c8] sm:$0xff]  ;;  %v7649_v19 = vpack.c.bf16 %v166_v11, %v166_v11 }
  0x8f   :  { %v414_v21 = vld [vmem:[#allocation9 + $0x760] sm:$0xff]  ;;  %2636 = vmatpush2.bf16.msra.mxu1 %v6292_v23  ;;  %v239_v18 = vld [vmem:[#allocation9 + $0x1e8] sm:$0xff] }
  0x90   :  { %v6285_v25 = vcombine.high %v410_v20, %v414_v21  ;;  %v274_v26 = vld [vmem:[#allocation9 + $0x300] sm:$0xff]  ;;  %2596 = vmatprep.subr.bf16.mxu0 %v6157_v24  ;;  %v6284_v31 = vcombine.low %v410_v20, %v414_v21  ;;  %v169_v21 = vld [vmem:[#allocation6 + $0x28] sm:$0xff]  ;;  %v6111_v24 = vcombine.high %v235_v17, %v239_v18 }
  0x91   :  { %v278_v27 = vld [vmem:[#allocation9 + $0x320] sm:$0xff]  ;;  %2597 = vmatpush2.bf16.msra.mxu0 %v6156_v30  ;;  %v170_v30 = vld [vmem:[#allocation6 + $0x30] sm:$0xff] }
  0x92   :  { %v402_v28 = vld [vmem:[#allocation9 + $0x700] sm:$0xff]  ;;  %v6149_v32 = vcombine.high %v274_v26, %v278_v27  ;;  %2637 = vmatprep.subr.bf16.mxu1 %v6285_v25  ;;  %v6148_v38 = vcombine.low %v274_v26, %v278_v27  ;;  %v7652_v27 = vpack.c.bf16 %v169_v21, %v169_v21 }
  0x93   :  { %v406_v29 = vld [vmem:[#allocation9 + $0x720] sm:$0xff]  ;;  %2638 = vmatpush2.bf16.msra.mxu1 %v6284_v31  ;;  %v7549_v31 = vmov 0  }
  0x94   :  { %v6277_v33 = vcombine.high %v402_v28, %v406_v29  ;;  %v266_v34 = vld [vmem:[#allocation9 + $0x2c0] sm:$0xff]  ;;  %2598 = vmatprep.subr.bf16.mxu0 %v6149_v32  ;;  %v6276_v39 = vcombine.low %v402_v28, %v406_v29 }
  0x95   :  { %v270_v35 = vld [vmem:[#allocation9 + $0x2e0] sm:$0xff]  ;;  %2599 = vmatpush2.bf16.msra.mxu0 %v6148_v38  ;;  %v6110_v38 = vcombine.low %v235_v17, %v239_v18 }
  0x96   :  { %v394_v36 = vld [vmem:[#allocation9 + $0x6c0] sm:$0xff]  ;;  %v6141_v40 = vcombine.high %v266_v34, %v270_v35  ;;  %2639 = vmatprep.subr.bf16.mxu1 %v6277_v33  ;;  %v6140_v46 = vcombine.low %v266_v34, %v270_v35  ;;  %v227_v34 = vld [vmem:[#allocation9 + $0x188] sm:$0xff] }
  0x97   :  { %v398_v37 = vld [vmem:[#allocation9 + $0x6e0] sm:$0xff]  ;;  %2640 = vmatpush2.bf16.msra.mxu1 %v6276_v39  ;;  %v231_v35 = vld [vmem:[#allocation9 + $0x1a8] sm:$0xff] }
  0x98   :  { %v6269_v41 = vcombine.high %v394_v36, %v398_v37  ;;  %v258_v42 = vld [vmem:[#allocation9 + $0x280] sm:$0xff]  ;;  %2600 = vmatprep.subr.bf16.mxu0 %v6141_v40  ;;  %v6268_v47 = vcombine.low %v394_v36, %v398_v37  ;;  %v7657_v37 = vpack.c.bf16 %v170_v30, %v170_v30  ;;  %v6103_v40 = vcombine.high %v227_v34, %v231_v35 }
  0x99   :  { %v262_v43 = vld [vmem:[#allocation9 + $0x2a0] sm:$0xff]  ;;  %2601 = vmatpush2.bf16.msra.mxu0 %v6140_v46  ;;  %v6102_v46 = vcombine.low %v227_v34, %v231_v35  ;;  %v303_v34 = vld [vmem:[#allocation9 + $0x3e8] sm:$0xff] }
  0x9a   :  { %v386_v44 = vld [vmem:[#allocation9 + $0x680] sm:$0xff]  ;;  %v6133_v48 = vcombine.high %v258_v42, %v262_v43  ;;  %2641 = vmatprep.subr.bf16.mxu1 %v6269_v41  ;;  %v6132_v54 = vcombine.low %v258_v42, %v262_v43  ;;  %v219_v43 = vld [vmem:[#allocation9 + $0x148] sm:$0xff] }
  0x9b   :  { %v390_v45 = vld [vmem:[#allocation9 + $0x6a0] sm:$0xff]  ;;  %2642 = vmatpush2.bf16.msra.mxu1 %v6268_v47 }
  0x9c   :  { %v6261_v49 = vcombine.high %v386_v44, %v390_v45  ;;  %v250_v50 = vld [vmem:[#allocation9 + $0x240] sm:$0xff]  ;;  %2602 = vmatprep.subr.bf16.mxu0 %v6133_v48  ;;  %v6260_v55 = vcombine.low %v386_v44, %v390_v45  ;;  %v223_v44 = vld [vmem:[#allocation9 + $0x168] sm:$0xff] }
  0x9d   :  { %v254_v51 = vld [vmem:[#allocation9 + $0x260] sm:$0xff]  ;;  %2603 = vmatpush2.bf16.msra.mxu0 %v6132_v54  ;;  %v6095_v48 = vcombine.high %v219_v43, %v223_v44  ;;  %v6094_v54 = vcombine.low %v219_v43, %v223_v44  ;;  %v295_v43 = vld [vmem:[#allocation9 + $0x3a8] sm:$0xff] }
  0x9e   :  { %v378_v52 = vld [vmem:[#allocation9 + $0x640] sm:$0xff]  ;;  %v6125_v56 = vcombine.high %v250_v50, %v254_v51  ;;  %2643 = vmatprep.subr.bf16.mxu1 %v6261_v49  ;;  %v6124_v0 = vcombine.low %v250_v50, %v254_v51  ;;  %v211_v51 = vld [vmem:[#allocation9 + $0x108] sm:$0xff] }
  0x9f   :  { %v382_v53 = vld [vmem:[#allocation9 + $0x660] sm:$0xff]  ;;  %2644 = vmatpush2.bf16.msra.mxu1 %v6260_v55 }
  0xa0   :  { %v6253_v57 = vcombine.high %v378_v52, %v382_v53  ;;  %v242_v60 = vld [vmem:[#allocation9 + $0x200] sm:$0xff]  ;;  %2604 = vmatprep.subr.bf16.mxu0 %v6125_v56  ;;  %v6252_v1 = vcombine.low %v378_v52, %v382_v53  ;;  %v215_v52 = vld [vmem:[#allocation9 + $0x128] sm:$0xff] }
  0xa1   :  { %v246_v61 = vld [vmem:[#allocation9 + $0x220] sm:$0xff]  ;;  %2605 = vmatpush2.bf16.msra.mxu0 %v6124_v0  ;;  %v6087_v56 = vcombine.high %v211_v51, %v215_v52  ;;  %v6086_v0 = vcombine.low %v211_v51, %v215_v52  ;;  %v287_v51 = vld [vmem:[#allocation9 + $0x368] sm:$0xff] }
  0xa2   :  { %v370_v62 = vld [vmem:[#allocation9 + $0x600] sm:$0xff]  ;;  %v6117_v2 = vcombine.high %v242_v60, %v246_v61  ;;  %2645 = vmatprep.subr.bf16.mxu1 %v6253_v57  ;;  %v6116_v8 = vcombine.low %v242_v60, %v246_v61  ;;  %v203_v61 = vld [vmem:[#allocation9 + $0xc8] sm:$0xff] }
  0xa3   :  { %v374_v63 = vld [vmem:[#allocation9 + $0x620] sm:$0xff]  ;;  %2646 = vmatpush2.bf16.msra.mxu1 %v6252_v1 }
  0xa4   :  { %v6245_v3 = vcombine.high %v370_v62, %v374_v63  ;;  %v490_v4 = vld [vmem:[#allocation9 + $0x9c0] sm:$0xff]  ;;  %2606 = vmatprep.subr.bf16.mxu0 %v6117_v2  ;;  %v6244_v10 = vcombine.low %v370_v62, %v374_v63  ;;  %v207_v62 = vld [vmem:[#allocation9 + $0xe8] sm:$0xff] }
  0xa5   :  { %v494_v5 = vld [vmem:[#allocation9 + $0x9e0] sm:$0xff]  ;;  %2607 = vmatpush2.bf16.msra.mxu0 %v6116_v8  ;;  %v6079_v2 = vcombine.high %v203_v61, %v207_v62  ;;  %v6078_v8 = vcombine.low %v203_v61, %v207_v62  ;;  %v279_v61 = vld [vmem:[#allocation9 + $0x328] sm:$0xff] }
  0xa6   :  { %v562_v6 = vld [vmem:[#allocation9 + $0xc00] sm:$0xff]  ;;  %v6365_v12 = vcombine.high %v490_v4, %v494_v5  ;;  %2647 = vmatprep.subr.bf16.mxu1 %v6245_v3  ;;  %v6364_v20 = vcombine.low %v490_v4, %v494_v5  ;;  %v195_v5 = vld [vmem:[#allocation9 + $0x88] sm:$0xff] }
  0xa7   :  { %v566_v7 = vld [vmem:[#allocation9 + $0xc20] sm:$0xff]  ;;  %2648 = vmatpush2.bf16.msra.mxu1 %v6244_v10 }
  0xa8   :  { %v6437_v13 = vcombine.high %v562_v6, %v566_v7  ;;  %v482_v14 = vld [vmem:[#allocation9 + $0x980] sm:$0xff]  ;;  %2658 = vmatprep.subr.bf16.mxu0 %v6365_v12  ;;  %v6436_v22 = vcombine.low %v562_v6, %v566_v7  ;;  %2609 = vmatmul.mubr.bf16.vlgmr.msra.gmra.mxu0 %v7647_v16  ;;  %v199_v6 = vld [vmem:[#allocation9 + $0xa8] sm:$0xff] }
  0xa9   :  { %v486_v15 = vld [vmem:[#allocation9 + $0x9a0] sm:$0xff]  ;;  %2659 = vmatpush1.bf16.msra.mxu0 %v6364_v20  ;;  %2690 = vmatprep.mubr.bf16.mxu0 %v7652_v27  ;;  %v6071_v10 = vcombine.high %v195_v5, %v199_v6  ;;  %v6070_v17 = vcombine.low %v195_v5, %v199_v6  ;;  %v271_v5 = vld [vmem:[#allocation9 + $0x2e8] sm:$0xff] }
  0xaa   :  { %v6357_v23 = vcombine.high %v482_v14, %v486_v15  ;;  %2713 = vmatprep.subr.bf16.mxu1 %v6437_v13  ;;  %v474_v25 = vld [vmem:[#allocation9 + $0x940] sm:$0xff]  ;;  %2650 = vmatmul.mubr.bf16.vlgmr.msra.gmra.mxu1 %v7649_v19  ;;  %v6356_v28 = vcombine.low %v482_v14, %v486_v15  ;;  %v187_v13 = vld [vmem:[#allocation9 + $0x48] sm:$0xff] }
  0xab   :  { %v478_v26 = vld [vmem:[#allocation9 + $0x960] sm:$0xff]  ;;  %2714 = vmatpush1.bf16.msra.mxu1 %v6436_v22  ;;  %2731 = vmatprep.mubr.bf16.mxu1 %v7549_v31  ;;  %v191_v14 = vld [vmem:[#allocation9 + $0x68] sm:$0xff] }
  0xac   :  { %2660 = vmatprep.subr.bf16.mxu0 %v6357_v23  ;;  %v6349_v29 = vcombine.high %v474_v25, %v478_v26  ;;  %2740 = vmatprep.subr.bf16.mxu1 %v6111_v24  ;;  %v466_v32 = vld [vmem:[#allocation9 + $0x900] sm:$0xff]  ;;  %v6348_v36 = vcombine.low %v474_v25, %v478_v26  ;;  %v6063_v20 = vcombine.high %v187_v13, %v191_v14  ;;  %v179_v23 = vld [vmem:[#allocation9 + $0x8] sm:$0xff] }
  0xad   :  { %v470_v33 = vld [vmem:[#allocation9 + $0x920] sm:$0xff]  ;;  %2661 = vmatpush1.bf16.msra.mxu0 %v6356_v28  ;;  %v183_v24 = vld [vmem:[#allocation9 + $0x28] sm:$0xff]  ;;  %v6062_v26 = vcombine.low %v187_v13, %v191_v14 }
  0xae   :  { %2662 = vmatprep.subr.bf16.mxu0 %v6349_v29  ;;  %v6341_v39 = vcombine.high %v466_v32, %v470_v33  ;;  %v458_v41 = vld [vmem:[#allocation9 + $0x8c0] sm:$0xff]  ;;  %v6340_v45 = vcombine.low %v466_v32, %v470_v33  ;;  %v6055_v29 = vcombine.high %v179_v23, %v183_v24  ;;  %v299_v33 = vld [vmem:[#allocation9 + $0x3c8] sm:$0xff] }
  0xaf   :  { %v462_v42 = vld [vmem:[#allocation9 + $0x8e0] sm:$0xff]  ;;  %v263_v13 = vld [vmem:[#allocation9 + $0x2a8] sm:$0xff] }
  0xb0   :  { %v6333_v47 = vcombine.high %v458_v41, %v462_v42  ;;  %v450_v49 = vld [vmem:[#allocation9 + $0x880] sm:$0xff]  ;;  %v6332_v53 = vcombine.low %v458_v41, %v462_v42  ;;  %v291_v42 = vld [vmem:[#allocation9 + $0x388] sm:$0xff] }
  0xb1   :  { %2663 = vmatpush1.bf16.msra.mxu0 %v6348_v36  ;;  %v454_v50 = vld [vmem:[#allocation9 + $0x8a0] sm:$0xff]  ;;  %v6054_v36 = vcombine.low %v179_v23, %v183_v24  ;;  %v255_v23 = vld [vmem:[#allocation9 + $0x268] sm:$0xff] }
  0xb2   :  { %6444 = vmatmul.mubr.msk.bf16.vlgmr.msra.gmra.mxu1 %vm2572_vm0, %v7657_v37  ;;  %2664 = vmatprep.subr.bf16.mxu0 %v6341_v39  ;;  %v6325_v55 = vcombine.high %v450_v49, %v454_v50  ;;  %v442_v57 = vld [vmem:[#allocation9 + $0x840] sm:$0xff]  ;;  %v6324_v63 = vcombine.low %v450_v49, %v454_v50  ;;  %v6175_v39 = vcombine.high %v299_v33, %v303_v34  ;;  %v283_v50 = vld [vmem:[#allocation9 + $0x348] sm:$0xff] }
  0xb3   :  { %2741 = vmatpush1.bf16.msra.mxu1 %v6110_v38  ;;  %2772 = vmatprep.mubr.bf16.mxu1 %v7641_v58  ;;  %v446_v60 = vld [vmem:[#allocation9 + $0x860] sm:$0xff] }
  0xb4   :  { %2742 = vmatprep.subr.bf16.mxu1 %v6103_v40  ;;  %v6317_v1 = vcombine.high %v442_v57, %v446_v60  ;;  %v434_v3 = vld [vmem:[#allocation9 + $0x800] sm:$0xff]  ;;  %v6316_v7 = vcombine.low %v442_v57, %v446_v60  ;;  %v275_v60 = vld [vmem:[#allocation9 + $0x308] sm:$0xff] }
  0xb5   :  { %2665 = vmatpush1.bf16.msra.mxu0 %v6340_v45  ;;  %v438_v4 = vld [vmem:[#allocation9 + $0x820] sm:$0xff]  ;;  %v6174_v45 = vcombine.low %v299_v33, %v303_v34  ;;  %v243_v34 = vld [vmem:[#allocation9 + $0x208] sm:$0xff] }
  0xb6   :  { %2666 = vmatprep.subr.bf16.mxu0 %v6333_v47  ;;  %v6309_v9 = vcombine.high %v434_v3, %v438_v4  ;;  %v554_v11 = vld [vmem:[#allocation9 + $0xbc0] sm:$0xff]  ;;  %v6308_v15 = vcombine.low %v434_v3, %v438_v4  ;;  %v6167_v47 = vcombine.high %v291_v42, %v295_v43  ;;  %v267_v4 = vld [vmem:[#allocation9 + $0x2c8] sm:$0xff] }
  0xb7   :  { %2743 = vmatpush1.bf16.msra.mxu1 %v6102_v46  ;;  %v558_v12 = vld [vmem:[#allocation9 + $0xbe0] sm:$0xff] }
  0xb8   :  { %2744 = vmatprep.subr.bf16.mxu1 %v6095_v48  ;;  %v6429_v18 = vcombine.high %v554_v11, %v558_v12  ;;  %v546_v21 = vld [vmem:[#allocation9 + $0xb80] sm:$0xff]  ;;  %v6428_v25 = vcombine.low %v554_v11, %v558_v12  ;;  %v259_v12 = vld [vmem:[#allocation9 + $0x288] sm:$0xff] }
  0xb9   :  { %2667 = vmatpush1.bf16.msra.mxu0 %v6332_v53  ;;  %v550_v22 = vld [vmem:[#allocation9 + $0xba0] sm:$0xff]  ;;  %v6166_v53 = vcombine.low %v291_v42, %v295_v43  ;;  %v351_v42 = vld [vmem:[#allocation9 + $0x568] sm:$0xff] }
  0xba   :  { %2668 = vmatprep.subr.bf16.mxu0 %v6325_v55  ;;  %v6421_v28 = vcombine.high %v546_v21, %v550_v22  ;;  %v538_v30 = vld [vmem:[#allocation9 + $0xb40] sm:$0xff]  ;;  %v6420_v35 = vcombine.low %v546_v21, %v550_v22  ;;  %v6159_v55 = vcombine.high %v283_v50, %v287_v51  ;;  %v367_v21 = vld [vmem:[#allocation9 + $0x5e8] sm:$0xff] }
  0xbb   :  { %2745 = vmatpush1.bf16.msra.mxu1 %v6094_v54  ;;  %v542_v32 = vld [vmem:[#allocation9 + $0xb60] sm:$0xff]  ;;  %v251_v22 = vld [vmem:[#allocation9 + $0x248] sm:$0xff] }
  0xbc   :  { %2746 = vmatprep.subr.bf16.mxu1 %v6087_v56  ;;  %v6413_v38 = vcombine.high %v538_v30, %v542_v32  ;;  %v530_v40 = vld [vmem:[#allocation9 + $0xb00] sm:$0xff]  ;;  %v6412_v44 = vcombine.low %v538_v30, %v542_v32  ;;  %v355_v30 = vld [vmem:[#allocation9 + $0x588] sm:$0xff] }
  0xbd   :  { %2669 = vmatpush1.bf16.msra.mxu0 %v6324_v63  ;;  %v534_v41 = vld [vmem:[#allocation9 + $0xb20] sm:$0xff]  ;;  %v6158_v63 = vcombine.low %v283_v50, %v287_v51  ;;  %v359_v32 = vld [vmem:[#allocation9 + $0x5a8] sm:$0xff] }
  0xbe   :  { %2670 = vmatprep.subr.bf16.mxu0 %v6317_v1  ;;  %v6405_v46 = vcombine.high %v530_v40, %v534_v41  ;;  %v522_v48 = vld [vmem:[#allocation9 + $0xac0] sm:$0xff]  ;;  %v6404_v52 = vcombine.low %v530_v40, %v534_v41  ;;  %v6151_v1 = vcombine.high %v275_v60, %v279_v61  ;;  %v347_v41 = vld [vmem:[#allocation9 + $0x548] sm:$0xff] }
  0xbf   :  { %2747 = vmatpush1.bf16.msra.mxu1 %v6086_v0  ;;  %v526_v49 = vld [vmem:[#allocation9 + $0xae0] sm:$0xff]  ;;  %v491_v43 = vld [vmem:[#allocation9 + $0x9c8] sm:$0xff] }
  0xc0   :  { %2748 = vmatprep.subr.bf16.mxu1 %v6079_v2  ;;  %v6397_v54 = vcombine.high %v522_v48, %v526_v49  ;;  %v514_v56 = vld [vmem:[#allocation9 + $0xa80] sm:$0xff]  ;;  %v6396_v62 = vcombine.low %v522_v48, %v526_v49  ;;  %v339_v49 = vld [vmem:[#allocation9 + $0x508] sm:$0xff] }
  0xc1   :  { %2671 = vmatpush1.bf16.msra.mxu0 %v6316_v7  ;;  %v518_v57 = vld [vmem:[#allocation9 + $0xaa0] sm:$0xff]  ;;  %v6150_v7 = vcombine.low %v275_v60, %v279_v61  ;;  %v343_v50 = vld [vmem:[#allocation9 + $0x528] sm:$0xff] }
  0xc2   :  { %2672 = vmatprep.subr.bf16.mxu0 %v6309_v9  ;;  %v6389_v0 = vcombine.high %v514_v56, %v518_v57  ;;  %v506_v2 = vld [vmem:[#allocation9 + $0xa40] sm:$0xff]  ;;  %v6388_v6 = vcombine.low %v514_v56, %v518_v57  ;;  %v6143_v9 = vcombine.high %v267_v4, %v271_v5  ;;  %v483_v51 = vld [vmem:[#allocation9 + $0x988] sm:$0xff] }
  0xc3   :  { %2749 = vmatpush1.bf16.msra.mxu1 %v6078_v8  ;;  %v510_v3 = vld [vmem:[#allocation9 + $0xa60] sm:$0xff]  ;;  %v331_v57 = vld [vmem:[#allocation9 + $0x4c8] sm:$0xff] }
  0xc4   :  { %2750 = vmatprep.subr.bf16.mxu1 %v6071_v10  ;;  %v6381_v8 = vcombine.high %v506_v2, %v510_v3  ;;  %v498_v10 = vld [vmem:[#allocation9 + $0xa00] sm:$0xff]  ;;  %v6380_v14 = vcombine.low %v506_v2, %v510_v3  ;;  %v335_v60 = vld [vmem:[#allocation9 + $0x4e8] sm:$0xff] }
  0xc5   :  { %2673 = vmatpush1.bf16.msra.mxu0 %v6308_v15  ;;  %v502_v11 = vld [vmem:[#allocation9 + $0xa20] sm:$0xff]  ;;  %v6142_v15 = vcombine.low %v267_v4, %v271_v5  ;;  %v475_v61 = vld [vmem:[#allocation9 + $0x948] sm:$0xff] }
  0xc6   :  { %2674 = vmatprep.subr.bf16.mxu0 %v6429_v18  ;;  %v6135_v18 = vcombine.high %v259_v12, %v263_v13  ;;  %v6372_v24 = vcombine.low %v498_v10, %v502_v11  ;;  %v323_v3 = vld [vmem:[#allocation9 + $0x488] sm:$0xff] }
  0xc7   :  { %2751 = vmatpush1.bf16.msra.mxu1 %v6070_v17  ;;  %v6373_v17 = vcombine.high %v498_v10, %v502_v11  ;;  %v327_v4 = vld [vmem:[#allocation9 + $0x4a8] sm:$0xff] }
  0xc8   :  { %2752 = vmatprep.subr.bf16.mxu1 %v6063_v20  ;;  %v363_v20 = vld [vmem:[#allocation9 + $0x5c8] sm:$0xff] }
  0xc9   :  { %2675 = vmatpush2.bf16.msra.mxu0 %v6428_v25  ;;  %v168_v25 = vld [vmem:[#allocation6 + $0x20] sm:$0xff] }
  0xca   :  { %2676 = vmatprep.subr.bf16.mxu0 %v6421_v28  ;;  %v6239_v28 = vcombine.high %v363_v20, %v367_v21  ;;  %v7662_v33 = vpack.c.bf16 %v168_v25, %v168_v25  ;;  %v467_v5 = vld [vmem:[#allocation9 + $0x908] sm:$0xff] }
  0xcb   :  { %2753 = vmatpush1.bf16.msra.mxu1 %v6062_v26  ;;  %v6134_v26 = vcombine.low %v259_v12, %v263_v13  ;;  %v315_v11 = vld [vmem:[#allocation9 + $0x448] sm:$0xff] }
  0xcc   :  { %2754 = vmatprep.subr.bf16.mxu1 %v6055_v29  ;;  %v6127_v29 = vcombine.high %v251_v22, %v255_v23  ;;  %v319_v12 = vld [vmem:[#allocation9 + $0x468] sm:$0xff] }
  0xcd   :  { %2677 = vmatpush2.bf16.msra.mxu0 %v6420_v35  ;;  %v247_v35 = vld [vmem:[#allocation9 + $0x228] sm:$0xff]  ;;  %v6190_v25 = vcombine.low %v315_v11, %v319_v12 }
  0xce   :  { %2678 = vmatprep.subr.bf16.mxu0 %v6413_v38  ;;  %v6126_v38 = vcombine.low %v251_v22, %v255_v23  ;;  %v6119_v40 = vcombine.high %v243_v34, %v247_v35  ;;  %v459_v13 = vld [vmem:[#allocation9 + $0x8c8] sm:$0xff] }
  0xcf   :  { %2755 = vmatpush1.bf16.msra.mxu1 %v6054_v36  ;;  %v6238_v36 = vcombine.low %v363_v20, %v367_v21  ;;  %v307_v21 = vld [vmem:[#allocation9 + $0x408] sm:$0xff] }
  0xd0   :  { %2756 = vmatprep.subr.bf16.mxu1 %v6175_v39  ;;  %v6231_v39 = vcombine.high %v355_v30, %v359_v32  ;;  %v311_v22 = vld [vmem:[#allocation9 + $0x428] sm:$0xff] }
  0xd1   :  { %2679 = vmatpush2.bf16.msra.mxu0 %v6412_v44  ;;  %v495_v44 = vld [vmem:[#allocation9 + $0x9e8] sm:$0xff] }
  0xd2   :  { %2680 = vmatprep.subr.bf16.mxu0 %v6405_v46  ;;  %v6118_v46 = vcombine.low %v243_v34, %v247_v35  ;;  %v6367_v48 = vcombine.high %v491_v43, %v495_v44  ;;  %v451_v23 = vld [vmem:[#allocation9 + $0x888] sm:$0xff] }
  0xd3   :  { %2757 = vmatpush2.bf16.msra.mxu1 %v6174_v45  ;;  %v6230_v45 = vcombine.low %v355_v30, %v359_v32  ;;  %v427_v30 = vld [vmem:[#allocation9 + $0x7c8] sm:$0xff] }
  0xd4   :  { %2758 = vmatprep.subr.bf16.mxu1 %v6167_v47  ;;  %v6223_v47 = vcombine.high %v347_v41, %v351_v42  ;;  %v431_v32 = vld [vmem:[#allocation9 + $0x7e8] sm:$0xff] }
  0xd5   :  { %2681 = vmatpush2.bf16.msra.mxu0 %v6404_v52  ;;  %v487_v52 = vld [vmem:[#allocation9 + $0x9a8] sm:$0xff] }
  0xd6   :  { %2682 = vmatprep.subr.bf16.mxu0 %v6397_v54  ;;  %v6366_v54 = vcombine.low %v491_v43, %v495_v44  ;;  %v6359_v56 = vcombine.high %v483_v51, %v487_v52  ;;  %v443_v34 = vld [vmem:[#allocation9 + $0x848] sm:$0xff] }
  0xd7   :  { %2759 = vmatpush2.bf16.msra.mxu1 %v6166_v53  ;;  %v6222_v53 = vcombine.low %v347_v41, %v351_v42  ;;  %v447_v35 = vld [vmem:[#allocation9 + $0x868] sm:$0xff] }
  0xd8   :  { %2760 = vmatprep.subr.bf16.mxu1 %v6159_v55  ;;  %v6215_v55 = vcombine.high %v339_v49, %v343_v50  ;;  %v419_v41 = vld [vmem:[#allocation9 + $0x788] sm:$0xff] }
  0xd9   :  { %2683 = vmatpush2.bf16.msra.mxu0 %v6396_v62  ;;  %v479_v62 = vld [vmem:[#allocation9 + $0x968] sm:$0xff] }
  0xda   :  { %2684 = vmatprep.subr.bf16.mxu0 %v6389_v0  ;;  %v6358_v0 = vcombine.low %v483_v51, %v487_v52  ;;  %v6351_v2 = vcombine.high %v475_v61, %v479_v62  ;;  %v423_v42 = vld [vmem:[#allocation9 + $0x7a8] sm:$0xff] }
  0xdb   :  { %2761 = vmatpush2.bf16.msra.mxu1 %v6158_v63  ;;  %v6214_v63 = vcombine.low %v339_v49, %v343_v50  ;;  %v435_v43 = vld [vmem:[#allocation9 + $0x808] sm:$0xff] }
  0xdc   :  { %2762 = vmatprep.subr.bf16.mxu1 %v6151_v1  ;;  %v6207_v1 = vcombine.high %v331_v57, %v335_v60  ;;  %v439_v44 = vld [vmem:[#allocation9 + $0x828] sm:$0xff] }
  0xdd   :  { %2685 = vmatpush2.bf16.msra.mxu0 %v6388_v6  ;;  %v471_v6 = vld [vmem:[#allocation9 + $0x928] sm:$0xff] }
  0xde   :  { %2686 = vmatprep.subr.bf16.mxu0 %v6381_v8  ;;  %v6350_v8 = vcombine.low %v475_v61, %v479_v62  ;;  %v6343_v10 = vcombine.high %v467_v5, %v471_v6  ;;  %v411_v49 = vld [vmem:[#allocation9 + $0x748] sm:$0xff] }
  0xdf   :  { %2763 = vmatpush2.bf16.msra.mxu1 %v6150_v7  ;;  %v6206_v7 = vcombine.low %v331_v57, %v335_v60  ;;  %v415_v50 = vld [vmem:[#allocation9 + $0x768] sm:$0xff] }
  0xe0   :  { %2764 = vmatprep.subr.bf16.mxu1 %v6143_v9  ;;  %v6199_v9 = vcombine.high %v323_v3, %v327_v4  ;;  %v555_v51 = vld [vmem:[#allocation9 + $0xbc8] sm:$0xff] }
  0xe1   :  { %2687 = vmatpush2.bf16.msra.mxu0 %v6380_v14  ;;  %v463_v14 = vld [vmem:[#allocation9 + $0x8e8] sm:$0xff] }
  0xe2   :  { %2688 = vmatprep.subr.bf16.mxu0 %v6373_v17  ;;  %v6342_v17 = vcombine.low %v467_v5, %v471_v6  ;;  %v6335_v20 = vcombine.high %v459_v13, %v463_v14  ;;  %v559_v52 = vld [vmem:[#allocation9 + $0xbe8] sm:$0xff] }
  0xe3   :  { %2765 = vmatpush2.bf16.msra.mxu1 %v6142_v15  ;;  %v6198_v15 = vcombine.low %v323_v3, %v327_v4  ;;  %v403_v57 = vld [vmem:[#allocation9 + $0x708] sm:$0xff] }
  0xe4   :  { %2766 = vmatprep.subr.bf16.mxu1 %v6135_v18  ;;  %v6191_v18 = vcombine.high %v315_v11, %v319_v12  ;;  %v407_v60 = vld [vmem:[#allocation9 + $0x728] sm:$0xff] }
  0xe5   :  { %2689 = vmatpush2.bf16.msra.mxu0 %v6372_v24  ;;  %v455_v24 = vld [vmem:[#allocation9 + $0x8a8] sm:$0xff] }
  0xe6   :  { %2781 = vmatprep.subr.bf16.mxu0 %v6239_v28  ;;  %v6183_v28 = vcombine.high %v307_v21, %v311_v22  ;;  %v547_v61 = vld [vmem:[#allocation9 + $0xb88] sm:$0xff] }
  0xe7   :  { %2767 = vmatpush2.bf16.msra.mxu1 %v6134_v26  ;;  %v6334_v26 = vcombine.low %v459_v13, %v463_v14  ;;  %v551_v62 = vld [vmem:[#allocation9 + $0xba8] sm:$0xff] }
  0xe8   :  { %2768 = vmatprep.subr.bf16.mxu1 %v6127_v29  ;;  %2691 = vmatmul.mubr.bf16.vlgmr.msra.gmra.mxu0 %v7662_v33  ;;  %v6327_v29 = vcombine.high %v451_v23, %v455_v24  ;;  %v395_v3 = vld [vmem:[#allocation9 + $0x6c8] sm:$0xff] }
  0xe9   :  { %2782 = vmatpush1.bf16.msra.mxu0 %v6238_v36  ;;  %2813 = vmatprep.mubr.bf16.mxu0 %v7643_v59  ;;  %v6182_v36 = vcombine.low %v307_v21, %v311_v22  ;;  %v399_v4 = vld [vmem:[#allocation9 + $0x6e8] sm:$0xff] }
  0xea   :  { %2783 = vmatprep.subr.bf16.mxu0 %v6231_v39  ;;  %v6303_v39 = vcombine.high %v427_v30, %v431_v32  ;;  %v539_v5 = vld [vmem:[#allocation9 + $0xb48] sm:$0xff] }
  0xeb   :  { %2769 = vmatpush2.bf16.msra.mxu1 %v6126_v38  ;;  %v6326_v38 = vcombine.low %v451_v23, %v455_v24  ;;  %v543_v6 = vld [vmem:[#allocation9 + $0xb68] sm:$0xff] }
  0xec   :  { %2770 = vmatprep.subr.bf16.mxu1 %v6119_v40  ;;  %v6319_v40 = vcombine.high %v443_v34, %v447_v35  ;;  %v387_v11 = vld [vmem:[#allocation9 + $0x688] sm:$0xff] }
  0xed   :  { %2784 = vmatpush1.bf16.msra.mxu0 %v6230_v45  ;;  %v6302_v45 = vcombine.low %v427_v30, %v431_v32  ;;  %v391_v12 = vld [vmem:[#allocation9 + $0x6a8] sm:$0xff] }
  0xee   :  { %2785 = vmatprep.subr.bf16.mxu0 %v6223_v47  ;;  %v6295_v47 = vcombine.high %v419_v41, %v423_v42  ;;  %v531_v13 = vld [vmem:[#allocation9 + $0xb08] sm:$0xff] }
  0xef   :  { %2771 = vmatpush2.bf16.msra.mxu1 %v6118_v46  ;;  %v6318_v46 = vcombine.low %v443_v34, %v447_v35  ;;  %v535_v14 = vld [vmem:[#allocation9 + $0xb28] sm:$0xff] }
  0xf0   :  { %2822 = vmatprep.subr.bf16.mxu1 %v6367_v48  ;;  %v6311_v48 = vcombine.high %v435_v43, %v439_v44  ;;  %v379_v21 = vld [vmem:[#allocation9 + $0x648] sm:$0xff] }
  0xf1   :  { %2786 = vmatpush1.bf16.msra.mxu0 %v6222_v53  ;;  %v6294_v53 = vcombine.low %v419_v41, %v423_v42  ;;  %v383_v22 = vld [vmem:[#allocation9 + $0x668] sm:$0xff]  ;;  %v236_v41 = vld [vmem:[#allocation9 + $0x1d0] sm:$0xff] }
  0xf2   :  { %2773 = vmatmul.mubr.bf16.vlgmr.msra.gmra.mxu1 %v7647_v16  ;;  %2787 = vmatprep.subr.bf16.mxu0 %v6215_v55  ;;  %v6287_v55 = vcombine.high %v411_v49, %v415_v50  ;;  %v523_v23 = vld [vmem:[#allocation9 + $0xac8] sm:$0xff]  ;;  %v240_v42 = vld [vmem:[#allocation9 + $0x1f0] sm:$0xff] }
  0xf3   :  { %2823 = vmatpush1.bf16.msra.mxu1 %v6366_v54  ;;  %2854 = vmatprep.mubr.bf16.mxu1 %v7652_v27  ;;  %v6310_v54 = vcombine.low %v435_v43, %v439_v44  ;;  %v527_v24 = vld [vmem:[#allocation9 + $0xae8] sm:$0xff] }
  0xf4   :  { %2824 = vmatprep.subr.bf16.mxu1 %v6359_v56  ;;  %v6431_v56 = vcombine.high %v555_v51, %v559_v52  ;;  %v371_v30 = vld [vmem:[#allocation9 + $0x608] sm:$0xff] }
  0xf5   :  { %2788 = vmatpush1.bf16.msra.mxu0 %v6214_v63  ;;  %v6286_v63 = vcombine.low %v411_v49, %v415_v50  ;;  %v375_v32 = vld [vmem:[#allocation9 + $0x628] sm:$0xff]  ;;  %v228_v49 = vld [vmem:[#allocation9 + $0x190] sm:$0xff] }
  0xf6   :  { %2789 = vmatprep.subr.bf16.mxu0 %v6207_v1  ;;  %v6279_v1 = vcombine.high %v403_v57, %v407_v60  ;;  %v515_v34 = vld [vmem:[#allocation9 + $0xa88] sm:$0xff]  ;;  %v232_v50 = vld [vmem:[#allocation9 + $0x1b0] sm:$0xff] }
  0xf7   :  { %2825 = vmatpush1.bf16.msra.mxu1 %v6358_v0  ;;  %v6430_v0 = vcombine.low %v555_v51, %v559_v52  ;;  %v519_v35 = vld [vmem:[#allocation9 + $0xaa8] sm:$0xff] }
  0xf8   :  { %2826 = vmatprep.subr.bf16.mxu1 %v6351_v2  ;;  %v6423_v2 = vcombine.high %v547_v61, %v551_v62  ;;  %v507_v43 = vld [vmem:[#allocation9 + $0xa48] sm:$0xff] }
  0xf9   :  { %2790 = vmatpush1.bf16.msra.mxu0 %v6206_v7  ;;  %v6278_v7 = vcombine.low %v403_v57, %v407_v60  ;;  %v511_v44 = vld [vmem:[#allocation9 + $0xa68] sm:$0xff]  ;;  %v220_v57 = vld [vmem:[#allocation9 + $0x150] sm:$0xff] }
  0xfa   :  { %2791 = vmatprep.subr.bf16.mxu0 %v6199_v9  ;;  %v6271_v9 = vcombine.high %v395_v3, %v399_v4  ;;  %v499_v51 = vld [vmem:[#allocation9 + $0xa08] sm:$0xff]  ;;  %v224_v60 = vld [vmem:[#allocation9 + $0x170] sm:$0xff] }
  0xfb   :  { %2827 = vmatpush1.bf16.msra.mxu1 %v6350_v8  ;;  %v6422_v8 = vcombine.low %v547_v61, %v551_v62  ;;  %v503_v52 = vld [vmem:[#allocation9 + $0xa28] sm:$0xff] }
  0xfc   :  { %2828 = vmatprep.subr.bf16.mxu1 %v6343_v10  ;;  %v6415_v10 = vcombine.high %v539_v5, %v543_v6  ;;  %v563_v61 = vld [vmem:[#allocation9 + $0xc08] sm:$0xff] }
  0xfd   :  { %2792 = vmatpush1.bf16.msra.mxu0 %v6198_v15  ;;  %v6270_v15 = vcombine.low %v395_v3, %v399_v4  ;;  %v567_v62 = vld [vmem:[#allocation9 + $0xc28] sm:$0xff]  ;;  %v212_v3 = vld [vmem:[#allocation9 + $0x110] sm:$0xff] }
  0xfe   :  { %2793 = vmatprep.subr.bf16.mxu0 %v6191_v18  ;;  %v6263_v18 = vcombine.high %v387_v11, %v391_v12  ;;  %v216_v4 = vld [vmem:[#allocation9 + $0x130] sm:$0xff] }
  0xff   :  { %2829 = vmatpush1.bf16.msra.mxu1 %v6342_v17  ;;  %v6414_v17 = vcombine.low %v539_v5, %v543_v6  ;;  %v364_v5 = vld [vmem:[#allocation9 + $0x5d0] sm:$0xff] }
 0x100   :  { %2830 = vmatprep.subr.bf16.mxu1 %v6335_v20  ;;  %v6407_v20 = vcombine.high %v531_v13, %v535_v14  ;;  %v368_v6 = vld [vmem:[#allocation9 + $0x5f0] sm:$0xff] }
 0x101   :  { %2794 = vmatpush1.bf16.msra.mxu0 %v6190_v25  ;;  %v6262_v25 = vcombine.low %v387_v11, %v391_v12  ;;  %v204_v11 = vld [vmem:[#allocation9 + $0xd0] sm:$0xff] }
 0x102   :  { %2795 = vmatprep.subr.bf16.mxu0 %v6183_v28  ;;  %v6255_v28 = vcombine.high %v379_v21, %v383_v22  ;;  %v208_v12 = vld [vmem:[#allocation9 + $0xf0] sm:$0xff] }
 0x103   :  { %2831 = vmatpush1.bf16.msra.mxu1 %v6334_v26  ;;  %v6406_v26 = vcombine.low %v531_v13, %v535_v14  ;;  %v6088_v13 = vcombine.low %v212_v3, %v216_v4  ;;  %v6081_v14 = vcombine.high %v204_v11, %v208_v12 }
 0x104   :  { %2832 = vmatprep.subr.bf16.mxu1 %v6327_v29  ;;  %v6399_v29 = vcombine.high %v523_v23, %v527_v24 }
 0x105   :  { %2796 = vmatpush1.bf16.msra.mxu0 %v6182_v36  ;;  %v6254_v36 = vcombine.low %v379_v21, %v383_v22  ;;  %v6080_v21 = vcombine.low %v204_v11, %v208_v12  ;;  %v6240_v22 = vcombine.low %v364_v5, %v368_v6 }
 0x106   :  { %2797 = vmatprep.subr.bf16.mxu0 %v6303_v39  ;;  %v6247_v39 = vcombine.high %v371_v30, %v375_v32 }
 0x107   :  { %2833 = vmatpush1.bf16.msra.mxu1 %v6326_v38  ;;  %v6398_v38 = vcombine.low %v523_v23, %v527_v24 }
 0x108   :  { %2834 = vmatprep.subr.bf16.mxu1 %v6319_v40  ;;  %v6391_v40 = vcombine.high %v515_v34, %v519_v35 }
 0x109   :  { %2798 = vmatpush2.bf16.msra.mxu0 %v6302_v45  ;;  %v6246_v45 = vcombine.low %v371_v30, %v375_v32 }
 0x10a   :  { %2799 = vmatprep.subr.bf16.mxu0 %v6295_v47  ;;  %v6113_v47 = vcombine.high %v236_v41, %v240_v42 }
 0x10b   :  { %2835 = vmatpush1.bf16.msra.mxu1 %v6318_v46  ;;  %v6390_v46 = vcombine.low %v515_v34, %v519_v35 }
 0x10c   :  { %2836 = vmatprep.subr.bf16.mxu1 %v6311_v48  ;;  %v6383_v48 = vcombine.high %v507_v43, %v511_v44 }
 0x10d   :  { %2800 = vmatpush2.bf16.msra.mxu0 %v6294_v53  ;;  %v6112_v53 = vcombine.low %v236_v41, %v240_v42 }
 0x10e   :  { %2801 = vmatprep.subr.bf16.mxu0 %v6287_v55  ;;  %v6105_v55 = vcombine.high %v228_v49, %v232_v50 }
 0x10f   :  { %2837 = vmatpush1.bf16.msra.mxu1 %v6310_v54  ;;  %v6382_v54 = vcombine.low %v507_v43, %v511_v44 }
 0x110   :  { %2838 = vmatprep.subr.bf16.mxu1 %v6431_v56  ;;  %v6375_v56 = vcombine.high %v499_v51, %v503_v52 }
 0x111   :  { %2802 = vmatpush2.bf16.msra.mxu0 %v6286_v63  ;;  %v6104_v63 = vcombine.low %v228_v49, %v232_v50 }
 0x112   :  { %2803 = vmatprep.subr.bf16.mxu0 %v6279_v1  ;;  %v6097_v1 = vcombine.high %v220_v57, %v224_v60 }
 0x113   :  { %2839 = vmatpush2.bf16.msra.mxu1 %v6430_v0  ;;  %v6374_v0 = vcombine.low %v499_v51, %v503_v52 }
 0x114   :  { %2840 = vmatprep.subr.bf16.mxu1 %v6423_v2  ;;  %v6439_v2 = vcombine.high %v563_v61, %v567_v62 }
 0x115   :  { %2804 = vmatpush2.bf16.msra.mxu0 %v6278_v7  ;;  %v6096_v7 = vcombine.low %v220_v57, %v224_v60 }
 0x116   :  { %2805 = vmatprep.subr.bf16.mxu0 %v6271_v9  ;;  %v6089_v9 = vcombine.high %v212_v3, %v216_v4 }
 0x117   :  { %2841 = vmatpush2.bf16.msra.mxu1 %v6422_v8  ;;  %v6438_v8 = vcombine.low %v563_v61, %v567_v62 }
 0x118   :  { %2842 = vmatprep.subr.bf16.mxu1 %v6415_v10  ;;  %v6241_v10 = vcombine.high %v364_v5, %v368_v6 }
 0x119   :  { %2806 = vmatpush2.bf16.msra.mxu0 %v6270_v15  ;;  %v196_v15 = vld [vmem:[#allocation9 + $0x90] sm:$0xff] }
 0x11a   :  { %2807 = vmatprep.subr.bf16.mxu0 %v6263_v18  ;;  %v356_v18 = vld [vmem:[#allocation9 + $0x590] sm:$0xff] }
 0x11b   :  { %2843 = vmatpush2.bf16.msra.mxu1 %v6414_v17  ;;  %v200_v17 = vld [vmem:[#allocation9 + $0xb0] sm:$0xff] }
 0x11c   :  { %2844 = vmatprep.subr.bf16.mxu1 %v6407_v20  ;;  %v360_v20 = vld [vmem:[#allocation9 + $0x5b0] sm:$0xff]  ;;  %v6073_v23 = vcombine.high %v196_v15, %v200_v17  ;;  %v6072_v30 = vcombine.low %v196_v15, %v200_v17 }
 0x11d   :  { %2808 = vmatpush2.bf16.msra.mxu0 %v6262_v25  ;;  %v6233_v24 = vcombine.high %v356_v18, %v360_v20  ;;  %v188_v25 = vld [vmem:[#allocation9 + $0x50] sm:$0xff]  ;;  %v6232_v32 = vcombine.low %v356_v18, %v360_v20 }
 0x11e   :  { %2809 = vmatprep.subr.bf16.mxu0 %v6255_v28  ;;  %v348_v28 = vld [vmem:[#allocation9 + $0x550] sm:$0xff] }
 0x11f   :  { %2845 = vmatpush2.bf16.msra.mxu1 %v6406_v26  ;;  %v192_v26 = vld [vmem:[#allocation9 + $0x70] sm:$0xff] }
 0x120   :  { %2846 = vmatprep.subr.bf16.mxu1 %v6399_v29  ;;  %v352_v29 = vld [vmem:[#allocation9 + $0x570] sm:$0xff]  ;;  %v6065_v34 = vcombine.high %v188_v25, %v192_v26  ;;  %v6064_v41 = vcombine.low %v188_v25, %v192_v26 }
 0x121   :  { %2810 = vmatpush2.bf16.msra.mxu0 %v6254_v36  ;;  %v6225_v35 = vcombine.high %v348_v28, %v352_v29  ;;  %v180_v36 = vld [vmem:[#allocation9 + $0x10] sm:$0xff]  ;;  %v6224_v42 = vcombine.low %v348_v28, %v352_v29 }
 0x122   :  { %2811 = vmatprep.subr.bf16.mxu0 %v6247_v39  ;;  %v340_v39 = vld [vmem:[#allocation9 + $0x510] sm:$0xff] }
 0x123   :  { %2847 = vmatpush2.bf16.msra.mxu1 %v6398_v38  ;;  %v184_v38 = vld [vmem:[#allocation9 + $0x30] sm:$0xff] }
 0x124   :  { %2848 = vmatprep.subr.bf16.mxu1 %v6391_v40  ;;  %v344_v40 = vld [vmem:[#allocation9 + $0x530] sm:$0xff]  ;;  %v6057_v43 = vcombine.high %v180_v36, %v184_v38  ;;  %v6056_v49 = vcombine.low %v180_v36, %v184_v38 }
 0x125   :  { %2812 = vmatpush2.bf16.msra.mxu0 %v6246_v45  ;;  %v6217_v44 = vcombine.high %v340_v39, %v344_v40  ;;  %v300_v45 = vld [vmem:[#allocation9 + $0x3d0] sm:$0xff]  ;;  %v6216_v50 = vcombine.low %v340_v39, %v344_v40 }
 0x126   :  { %2904 = vmatprep.subr.bf16.mxu0 %v6113_v47  ;;  %v332_v47 = vld [vmem:[#allocation9 + $0x4d0] sm:$0xff] }
 0x127   :  { %2849 = vmatpush2.bf16.msra.mxu1 %v6390_v46  ;;  %v304_v46 = vld [vmem:[#allocation9 + $0x3f0] sm:$0xff] }
 0x128   :  { %2850 = vmatprep.subr.bf16.mxu1 %v6383_v48  ;;  %2814 = vmatmul.mubr.bf16.vlgmr.msra.gmra.mxu0 %v7649_v19  ;;  %v336_v48 = vld [vmem:[#allocation9 + $0x4f0] sm:$0xff]  ;;  %v6177_v51 = vcombine.high %v300_v45, %v304_v46  ;;  %v6176_v57 = vcombine.low %v300_v45, %v304_v46 }
 0x129   :  { %2905 = vmatpush1.bf16.msra.mxu0 %v6112_v53  ;;  %2936 = vmatprep.mubr.bf16.mxu0 %v7641_v58  ;;  %v6209_v52 = vcombine.high %v332_v47, %v336_v48  ;;  %v292_v53 = vld [vmem:[#allocation9 + $0x390] sm:$0xff]  ;;  %v6208_v60 = vcombine.low %v332_v47, %v336_v48 }
 0x12a   :  { %2906 = vmatprep.subr.bf16.mxu0 %v6105_v55  ;;  %v324_v55 = vld [vmem:[#allocation9 + $0x490] sm:$0xff] }
 0x12b   :  { %2851 = vmatpush2.bf16.msra.mxu1 %v6382_v54  ;;  %v296_v54 = vld [vmem:[#allocation9 + $0x3b0] sm:$0xff] }
 0x12c   :  { %2852 = vmatprep.subr.bf16.mxu1 %v6375_v56  ;;  %v328_v56 = vld [vmem:[#allocation9 + $0x4b0] sm:$0xff]  ;;  %v6169_v61 = vcombine.high %v292_v53, %v296_v54  ;;  %v6168_v3 = vcombine.low %v292_v53, %v296_v54 }
 0x12d   :  { %2907 = vmatpush1.bf16.msra.mxu0 %v6104_v63  ;;  %v6201_v62 = vcombine.high %v324_v55, %v328_v56  ;;  %v284_v63 = vld [vmem:[#allocation9 + $0x350] sm:$0xff]  ;;  %v6200_v4 = vcombine.low %v324_v55, %v328_v56 }
 0x12e   :  { %2908 = vmatprep.subr.bf16.mxu0 %v6097_v1  ;;  %v316_v1 = vld [vmem:[#allocation9 + $0x450] sm:$0xff] }
 0x12f   :  { %2853 = vmatpush2.bf16.msra.mxu1 %v6374_v0  ;;  %v288_v0 = vld [vmem:[#allocation9 + $0x370] sm:$0xff] }
 0x130   :  { %2877 = vmatprep.subr.bf16.mxu1 %v6439_v2  ;;  %v320_v2 = vld [vmem:[#allocation9 + $0x470] sm:$0xff]  ;;  %v6161_v5 = vcombine.high %v284_v63, %v288_v0  ;;  %v6160_v11 = vcombine.low %v284_v63, %v288_v0  ;;  %v7680_v0 = vld [vmem:[#allocation11] sm:$0xff] }
 0x131   :  { %2909 = vmatpush1.bf16.msra.mxu0 %v6096_v7  ;;  %v6193_v6 = vcombine.high %v316_v1, %v320_v2  ;;  %v276_v7 = vld [vmem:[#allocation9 + $0x310] sm:$0xff]  ;;  %v6192_v12 = vcombine.low %v316_v1, %v320_v2 }
 0x132   :  { %2855 = vmatmul.mubr.bf16.vlgmr.msra.gmra.mxu1 %v7662_v33  ;;  %2910 = vmatprep.subr.bf16.mxu0 %v6089_v9  ;;  %v308_v9 = vld [vmem:[#allocation9 + $0x410] sm:$0xff] }
 0x133   :  { %2878 = vmatpush1.bf16.msra.mxu1 %v6438_v8  ;;  %2895 = vmatprep.mubr.bf16.mxu1 %v7549_v31  ;;  %v280_v8 = vld [vmem:[#allocation9 + $0x330] sm:$0xff] }
 0x134   :  { %2945 = vmatprep.subr.bf16.mxu1 %v6241_v10  ;;  %v312_v10 = vld [vmem:[#allocation9 + $0x430] sm:$0xff] }
 0x135   :  { %2911 = vmatpush1.bf16.msra.mxu0 %v6088_v13  ;;  %v6153_v13 = vcombine.high %v276_v7, %v280_v8  ;;  %v268_v15 = vld [vmem:[#allocation9 + $0x2d0] sm:$0xff] }
 0x136   :  { %2912 = vmatprep.subr.bf16.mxu0 %v6081_v14  ;;  %v6185_v14 = vcombine.high %v308_v9, %v312_v10  ;;  %v272_v17 = vld [vmem:[#allocation9 + $0x2f0] sm:$0xff] }
 0x137   :  { %v428_v18 = vld [vmem:[#allocation9 + $0x7d0] sm:$0xff] }
 0x138   :  { %v432_v20 = vld [vmem:[#allocation9 + $0x7f0] sm:$0xff] }
 0x139   :  { %2913 = vmatpush1.bf16.msra.mxu0 %v6080_v21  ;;  %v6152_v21 = vcombine.low %v276_v7, %v280_v8  ;;  %v260_v25 = vld [vmem:[#allocation9 + $0x290] sm:$0xff] }
 0x13a   :  { %6445 = vmatmul.mubr.msk.bf16.vlgmr.msra.gmra.mxu1 %vm2572_vm0, %v7657_v37  ;;  %2914 = vmatprep.subr.bf16.mxu0 %v6073_v23  ;;  %v6145_v23 = vcombine.high %v268_v15, %v272_v17  ;;  %v264_v26 = vld [vmem:[#allocation9 + $0x2b0] sm:$0xff] }
 0x13b   :  { %2946 = vmatpush1.bf16.msra.mxu1 %v6240_v22  ;;  %2977 = vmatprep.mubr.bf16.mxu1 %v7643_v59  ;;  %v6184_v22 = vcombine.low %v308_v9, %v312_v10  ;;  %v420_v28 = vld [vmem:[#allocation9 + $0x790] sm:$0xff] }
 0x13c   :  { %2947 = vmatprep.subr.bf16.mxu1 %v6233_v24  ;;  %v6305_v24 = vcombine.high %v428_v18, %v432_v20  ;;  %v424_v29 = vld [vmem:[#allocation9 + $0x7b0] sm:$0xff] }
 0x13d   :  { %2915 = vmatpush1.bf16.msra.mxu0 %v6072_v30  ;;  %v6144_v30 = vcombine.low %v268_v15, %v272_v17  ;;  %v252_v36 = vld [vmem:[#allocation9 + $0x250] sm:$0xff] }
 0x13e   :  { %2916 = vmatprep.subr.bf16.mxu0 %v6065_v34  ;;  %v6137_v34 = vcombine.high %v260_v25, %v264_v26  ;;  %v256_v38 = vld [vmem:[#allocation9 + $0x270] sm:$0xff] }
 0x13f   :  { %2948 = vmatpush1.bf16.msra.mxu1 %v6232_v32  ;;  %v6304_v32 = vcombine.low %v428_v18, %v432_v20  ;;  %v412_v39 = vld [vmem:[#allocation9 + $0x750] sm:$0xff] }
 0x140   :  { %2949 = vmatprep.subr.bf16.mxu1 %v6225_v35  ;;  %v6297_v35 = vcombine.high %v420_v28, %v424_v29  ;;  %v416_v40 = vld [vmem:[#allocation9 + $0x770] sm:$0xff] }
 0x141   :  { %2917 = vmatpush1.bf16.msra.mxu0 %v6064_v41  ;;  %v6136_v41 = vcombine.low %v260_v25, %v264_v26  ;;  %v6289_v45 = vcombine.high %v412_v39, %v416_v40  ;;  %v244_v46 = vld [vmem:[#allocation9 + $0x210] sm:$0xff] }
 0x142   :  { %2918 = vmatprep.subr.bf16.mxu0 %v6057_v43  ;;  %v6296_v43 = vcombine.low %v420_v28, %v424_v29  ;;  %v248_v47 = vld [vmem:[#allocation9 + $0x230] sm:$0xff] }
 0x143   :  { %2950 = vmatpush1.bf16.msra.mxu1 %v6224_v42  ;;  %v572_v42 = vlaneseq  ;;  %v404_v48 = vld [vmem:[#allocation9 + $0x710] sm:$0xff]  ;;  %v6121_v53 = vcombine.high %v244_v46, %v248_v47 }
 0x144   :  { %2951 = vmatprep.subr.bf16.mxu1 %v6217_v44  ;;  %v6129_v44 = vcombine.high %v252_v36, %v256_v38  ;;  %v492_v55 = vld [vmem:[#allocation9 + $0x9d0] sm:$0xff] }
 0x145   :  { %2919 = vmatpush1.bf16.msra.mxu0 %v6056_v49  ;;  %v408_v49 = vld [vmem:[#allocation9 + $0x730] sm:$0xff] }
 0x146   :  { %2920 = vmatprep.subr.bf16.mxu0 %v6177_v51  ;;  %v7675_v51 = vshrl.u32 %v572_v42, 7  ;;  %v6281_v54 = vcombine.high %v404_v48, %v408_v49  ;;  %v496_v56 = vld [vmem:[#allocation9 + $0x9f0] sm:$0xff]  ;;  %v6280_v63 = vcombine.low %v404_v48, %v408_v49 }
 0x147   :  { %2952 = vmatpush1.bf16.msra.mxu1 %v6216_v50  ;;  %v6128_v50 = vcombine.low %v252_v36, %v256_v38  ;;  %v6369_v1 = vcombine.high %v492_v55, %v496_v56  ;;  %v392_v7 = vld [vmem:[#allocation9 + $0x6b0] sm:$0xff]  ;;  %v6368_v9 = vcombine.low %v492_v55, %v496_v56 }
 0x148   :  { %2953 = vmatprep.subr.bf16.mxu1 %v6209_v52  ;;  %v6288_v52 = vcombine.low %v412_v39, %v416_v40  ;;  %v480_v15 = vld [vmem:[#allocation9 + $0x970] sm:$0xff] }
 0x149   :  { %2921 = vmatpush2.bf16.msra.mxu0 %v6176_v57  ;;  %v396_v57 = vld [vmem:[#allocation9 + $0x6d0] sm:$0xff] }
 0x14a   :  { %2922 = vmatprep.subr.bf16.mxu0 %v6169_v61  ;;  %v6120_v61 = vcombine.low %v244_v46, %v248_v47  ;;  %v380_v18 = vld [vmem:[#allocation9 + $0x650] sm:$0xff] }
 0x14b   :  { %2954 = vmatpush1.bf16.msra.mxu1 %v6208_v60  ;;  %v400_v60 = vld [vmem:[#allocation9 + $0x6f0] sm:$0xff] }
 0x14c   :  { %2955 = vmatprep.subr.bf16.mxu1 %v6201_v62  ;;  %v7678_v62 = vsub.s32 0, %v7675_v51  ;;  %v6273_v2 = vcombine.high %v396_v57, %v400_v60  ;;  %v6272_v10 = vcombine.low %v396_v57, %v400_v60  ;;  %v384_v20 = vld [vmem:[#allocation9 + $0x670] sm:$0xff] }
 0x14d   :  { %2923 = vmatpush2.bf16.msra.mxu0 %v6168_v3  ;;  %v7683_v3 = vsub.s32 1, %v7675_v51  ;;  %v372_v36 = vld [vmem:[#allocation9 + $0x610] sm:$0xff] }
 0x14e   :  { %2924 = vmatprep.subr.bf16.mxu0 %v6161_v5  ;;  %v488_v5 = vld [vmem:[#allocation9 + $0x9b0] sm:$0xff]  ;;  %v575_v8 = vrot.slane %v7680_v0, %v7678_v62 }
 0x14f   :  { %2956 = vmatpush1.bf16.msra.mxu1 %v6200_v4  ;;  %v484_v4 = vld [vmem:[#allocation9 + $0x990] sm:$0xff] }
 0x150   :  { %2957 = vmatprep.subr.bf16.mxu1 %v6193_v6  ;;  %v388_v6 = vld [vmem:[#allocation9 + $0x690] sm:$0xff] }
 0x151   :  { %2925 = vmatpush2.bf16.msra.mxu0 %v6160_v11  ;;  %v6361_v11 = vcombine.high %v484_v4, %v488_v5  ;;  %v6264_v25 = vcombine.low %v388_v6, %v392_v7  ;;  %v376_v38 = vld [vmem:[#allocation9 + $0x630] sm:$0xff] }
 0x152   :  { %2926 = vmatprep.subr.bf16.mxu0 %v6153_v13  ;;  %v6265_v13 = vcombine.high %v388_v6, %v392_v7  ;;  %v6249_v47 = vcombine.high %v372_v36, %v376_v38  ;;  %v460_v48 = vld [vmem:[#allocation9 + $0x8d0] sm:$0xff]  ;;  %v6248_v55 = vcombine.low %v372_v36, %v376_v38 }
 0x153   :  { %2958 = vmatpush1.bf16.msra.mxu1 %v6192_v12  ;;  %v579_v12 = vrot.slane %v7680_v0, %v7683_v3  ;;  %v464_v49 = vld [vmem:[#allocation9 + $0x8f0] sm:$0xff] }
 0x154   :  { %2959 = vmatprep.subr.bf16.mxu1 %v6185_v14  ;;  %v476_v14 = vld [vmem:[#allocation9 + $0x950] sm:$0xff]  ;;  %v6337_v56 = vcombine.high %v460_v48, %v464_v49 }
 0x155   :  { %2927 = vmatpush2.bf16.msra.mxu0 %v6152_v21  ;;  %v6353_v26 = vcombine.high %v476_v14, %v480_v15  ;;  %v6352_v42 = vcombine.low %v476_v14, %v480_v15  ;;  %v436_v14 = vld [vmem:[#allocation9 + $0x810] sm:$0xff] }
 0x156   :  { %2928 = vmatprep.subr.bf16.mxu0 %v6145_v23  ;;  %v6360_v23 = vcombine.low %v484_v4, %v488_v5  ;;  %v6336_v5 = vcombine.low %v460_v48, %v464_v49  ;;  %v440_v15 = vld [vmem:[#allocation9 + $0x830] sm:$0xff]  ;;  %v205_v48 = vld [vmem:[#allocation9 + $0xd8] sm:$0xff] }
 0x157   :  { %2960 = vmatpush1.bf16.msra.mxu1 %v6184_v22  ;;  %v548_v36 = vld [vmem:[#allocation9 + $0xb90] sm:$0xff]  ;;  %v209_v49 = vld [vmem:[#allocation9 + $0xf8] sm:$0xff] }
 0x158   :  { %2961 = vmatprep.subr.bf16.mxu1 %v6305_v24  ;;  %v552_v38 = vld [vmem:[#allocation9 + $0xbb0] sm:$0xff] }
 0x159   :  { %2929 = vmatpush2.bf16.msra.mxu0 %v6144_v30 }
 0x15a   :  { %2930 = vmatprep.subr.bf16.mxu0 %v6137_v34  ;;  %v468_v34 = vld [vmem:[#allocation9 + $0x910] sm:$0xff] }
 0x15b   :  { %2962 = vmatpush2.bf16.msra.mxu1 %v6304_v32  ;;  %v6257_v32 = vcombine.high %v380_v18, %v384_v20 }
 0x15c   :  { %2963 = vmatprep.subr.bf16.mxu1 %v6297_v35  ;;  %v472_v35 = vld [vmem:[#allocation9 + $0x930] sm:$0xff] }
 0x15d   :  { %2931 = vmatpush2.bf16.msra.mxu0 %v6136_v41 }
 0x15e   :  { %2932 = vmatprep.subr.bf16.mxu0 %v6129_v44  ;;  %v6345_v44 = vcombine.high %v468_v34, %v472_v35 }
 0x15f   :  { %2964 = vmatpush2.bf16.msra.mxu1 %v6296_v43  ;;  %v6256_v43 = vcombine.low %v380_v18, %v384_v20  ;;  %v233_v18 = vld [vmem:[#allocation9 + $0x1b8] sm:$0xff] }
 0x160   :  { %2965 = vmatprep.subr.bf16.mxu1 %v6289_v45 }
 0x161   :  { %2933 = vmatpush2.bf16.msra.mxu0 %v6128_v50  ;;  %v564_v50 = vld [vmem:[#allocation9 + $0xc10] sm:$0xff] }
 0x162   :  { %2934 = vmatprep.subr.bf16.mxu0 %v6121_v53 }
 0x163   :  { %2966 = vmatpush2.bf16.msra.mxu1 %v6288_v52  ;;  %v568_v52 = vld [vmem:[#allocation9 + $0xc30] sm:$0xff] }
 0x164   :  { %2967 = vmatprep.subr.bf16.mxu1 %v6281_v54  ;;  %v6344_v54 = vcombine.low %v468_v34, %v472_v35  ;;  %v6441_v60 = vcombine.high %v564_v50, %v568_v52  ;;  %v6440_v6 = vcombine.low %v564_v50, %v568_v52  ;;  %v6424_v50 = vcombine.low %v548_v36, %v552_v38 }
 0x165   :  { %2935 = vmatpush2.bf16.msra.mxu0 %v6120_v61  ;;  %v452_v61 = vld [vmem:[#allocation9 + $0x890] sm:$0xff] }
 0x166   :  { %2986 = vmatprep.subr.bf16.mxu0 %v6369_v1  ;;  %v237_v1 = vld [vmem:[#allocation9 + $0x1d8] sm:$0xff] }
 0x167   :  { %2968 = vmatpush2.bf16.msra.mxu1 %v6280_v63  ;;  %v456_v63 = vld [vmem:[#allocation9 + $0x8b0] sm:$0xff] }
 0x168   :  { %2969 = vmatprep.subr.bf16.mxu1 %v6273_v2  ;;  %v2610_v17 = vpop.f32.mrf.mxu0  ;;  %2937 = vmatmul.mubr.bf16.vlgmr.msra.gmra.mxu0 %v7647_v16  ;;  %v241_v2 = vld [vmem:[#allocation9 + $0x1f8] sm:$0xff]  ;;  %v6329_v7 = vcombine.high %v452_v61, %v456_v63 }
 0x169   :  { %v2611_v21 = vadd.f32 %v2610_v17, %v575_v8  ;;  %2987 = vmatpush1.bf16.msra.mxu0 %v6368_v9  ;;  %3018 = vmatprep.mubr.bf16.mxu0 %v7652_v27  ;;  %v6115_v9 = vcombine.high %v237_v1, %v241_v2  ;;  %v229_v17 = vld [vmem:[#allocation9 + $0x198] sm:$0xff] }
 0x16a   :  { %v2651_v22 = vpop.f32.mrf.mxu1  ;;  %v2612_v24 = vpop.f32.mrf.mxu0  ;;  %2988 = vmatprep.subr.bf16.mxu0 %v6361_v11  ;;  %v448_v11 = vld [vmem:[#allocation9 + $0x870] sm:$0xff] }
 0x16b   :  { %2970 = vmatpush2.bf16.msra.mxu1 %v6272_v10  ;;  %v7691_v28 = vadd.f32 %v2651_v22, %v2611_v21  ;;  %v2613_v29 = vadd.f32 %v2612_v24, %v579_v12  ;;  %v444_v10 = vld [vmem:[#allocation9 + $0x850] sm:$0xff]  ;;  %v6328_v12 = vcombine.low %v452_v61, %v456_v63  ;;  %v6114_v21 = vcombine.low %v237_v1, %v241_v2  ;;  %v201_v61 = vld [vmem:[#allocation9 + $0xb8] sm:$0xff] }
 0x16c   :  { %v2653_v30 = vpop.f32.mrf.mxu1  ;;  %2971 = vmatprep.subr.bf16.mxu1 %v6265_v13  ;;  %v2614_v39 = vpop.f32.mrf.mxu0  ;;  %v6321_v13 = vcombine.high %v444_v10, %v448_v11  ;;  %v6320_v20 = vcombine.low %v444_v10, %v448_v11  ;;  %v6313_v22 = vcombine.high %v436_v14, %v440_v15  ;;  %v556_v24 = vld [vmem:[#allocation9 + $0xbd0] sm:$0xff]  ;;  %v6082_v1 = vcombine.low %v205_v48, %v209_v49 }
 0x16d   :  { %v7693_v40 = vadd.f32 %v2653_v30, %v2613_v29  ;;  %2989 = vmatpush1.bf16.msra.mxu0 %v6360_v23  ;;  %v6107_v23 = vcombine.high %v229_v17, %v233_v18  ;;  %v225_v29 = vld [vmem:[#allocation9 + $0x178] sm:$0xff]  ;;  %v6312_v30 = vcombine.low %v436_v14, %v440_v15  ;;  %v520_v14 = vld [vmem:[#allocation9 + $0xab0] sm:$0xff] }
 0x16e   :  { %v2655_v41 = vpop.f32.mrf.mxu1  ;;  %2990 = vmatprep.subr.bf16.mxu0 %v6353_v26  ;;  %v2615_v45 = vpop.f32.mrf.mxu0  ;;  %v221_v26 = vld [vmem:[#allocation9 + $0x158] sm:$0xff] }
 0x16f   :  { %2972 = vmatpush2.bf16.msra.mxu1 %v6264_v25  ;;  %v560_v25 = vld [vmem:[#allocation9 + $0xbf0] sm:$0xff]  ;;  %v6099_v35 = vcombine.high %v221_v26, %v225_v29  ;;  %v213_v39 = vld [vmem:[#allocation9 + $0x118] sm:$0xff] }
 0x170   :  { %v2656_v46 = vpop.f32.mrf.mxu1  ;;  %2973 = vmatprep.subr.bf16.mxu1 %v6257_v32  ;;  %v6106_v32 = vcombine.low %v229_v17, %v233_v18  ;;  %v6433_v34 = vcombine.high %v556_v24, %v560_v25  ;;  %v217_v41 = vld [vmem:[#allocation9 + $0x138] sm:$0xff] }
 0x171   :  { %2991 = vmatpush1.bf16.msra.mxu0 %v6352_v42  ;;  %v6432_v42 = vcombine.low %v556_v24, %v560_v25  ;;  %v6091_v45 = vcombine.high %v213_v39, %v217_v41  ;;  %v540_v46 = vld [vmem:[#allocation9 + $0xb50] sm:$0xff]  ;;  %v6090_v52 = vcombine.low %v213_v39, %v217_v41  ;;  %v181_v15 = vld [vmem:[#allocation9 + $0x18] sm:$0xff] }
 0x172   :  { %v7695_v53 = vpop.f32.mrf.mxu1  ;;  %2992 = vmatprep.subr.bf16.mxu0 %v6345_v44  ;;  %v6425_v44 = vcombine.high %v548_v36, %v552_v38  ;;  %v185_v17 = vld [vmem:[#allocation9 + $0x38] sm:$0xff]  ;;  %v512_v24 = vld [vmem:[#allocation9 + $0xa70] sm:$0xff] }
 0x173   :  { %2974 = vmatpush2.bf16.msra.mxu1 %v6256_v43  ;;  %v6098_v43 = vcombine.low %v221_v26, %v225_v29  ;;  %v301_v25 = vld [vmem:[#allocation9 + $0x3d8] sm:$0xff]  ;;  %v504_v36 = vld [vmem:[#allocation9 + $0xa30] sm:$0xff] }
 0x174   :  { %v7697_v57 = vpop.f32.mrf.mxu1  ;;  %2975 = vmatprep.subr.bf16.mxu1 %v6249_v47  ;;  %v544_v47 = vld [vmem:[#allocation9 + $0xb70] sm:$0xff]  ;;  %v305_v26 = vld [vmem:[#allocation9 + $0x3f8] sm:$0xff] }
 0x175   :  { %2993 = vmatpush1.bf16.msra.mxu0 %v6344_v54  ;;  %v6083_v54 = vcombine.high %v205_v48, %v209_v49  ;;  %v6416_v63 = vcombine.low %v540_v46, %v544_v47  ;;  %v293_v38 = vld [vmem:[#allocation9 + $0x398] sm:$0xff] }
 0x176   :  { %v2737_v4 = vpop.f32.mrf.mxu1  ;;  %2994 = vmatprep.subr.bf16.mxu0 %v6337_v56  ;;  %v536_v56 = vld [vmem:[#allocation9 + $0xb30] sm:$0xff]  ;;  %v297_v39 = vld [vmem:[#allocation9 + $0x3b8] sm:$0xff] }
 0x177   :  { %2976 = vmatpush2.bf16.msra.mxu1 %v6248_v55  ;;  %v532_v55 = vld [vmem:[#allocation9 + $0xb10] sm:$0xff]  ;;  %v289_v48 = vld [vmem:[#allocation9 + $0x378] sm:$0xff] }
 0x178   :  { %v2738_v8 = vpop.f32.mrf.mxu1  ;;  %3041 = vmatprep.subr.bf16.mxu1 %v6441_v60  ;;  %v197_v60 = vld [vmem:[#allocation9 + $0x98] sm:$0xff]  ;;  %v6409_v2 = vcombine.high %v532_v55, %v536_v56 }
 0x179   :  { %2995 = vmatpush1.bf16.msra.mxu0 %v6336_v5  ;;  %v6075_v4 = vcombine.high %v197_v60, %v201_v61  ;;  %v524_v5 = vld [vmem:[#allocation9 + $0xad0] sm:$0xff]  ;;  %v193_v8 = vld [vmem:[#allocation9 + $0x78] sm:$0xff]  ;;  %v6074_v10 = vcombine.low %v197_v60, %v201_v61 }
 0x17a   :  { %2978 = vmatmul.mubr.bf16.vlgmr.msra.gmra.mxu1 %v7649_v19  ;;  %2996 = vmatprep.subr.bf16.mxu0 %v6329_v7  ;;  %v189_v7 = vld [vmem:[#allocation9 + $0x58] sm:$0xff] }
 0x17b   :  { %3042 = vmatpush1.bf16.msra.mxu1 %v6440_v6  ;;  %3059 = vmatprep.mubr.bf16.mxu1 %v7549_v31  ;;  %v528_v6 = vld [vmem:[#allocation9 + $0xaf0] sm:$0xff]  ;;  %v281_v60 = vld [vmem:[#allocation9 + $0x338] sm:$0xff] }
 0x17c   :  { %3068 = vmatprep.subr.bf16.mxu1 %v6115_v9  ;;  %v6408_v9 = vcombine.low %v532_v55, %v536_v56  ;;  %v6401_v11 = vcombine.high %v524_v5, %v528_v6  ;;  %v6400_v18 = vcombine.low %v524_v5, %v528_v6  ;;  %v361_v55 = vld [vmem:[#allocation9 + $0x5b8] sm:$0xff] }
 0x17d   :  { %2997 = vmatpush1.bf16.msra.mxu0 %v6328_v12  ;;  %v6067_v12 = vcombine.high %v189_v7, %v193_v8  ;;  %v277_v56 = vld [vmem:[#allocation9 + $0x318] sm:$0xff] }
 0x17e   :  { %2998 = vmatprep.subr.bf16.mxu0 %v6321_v13  ;;  %v516_v13 = vld [vmem:[#allocation9 + $0xa90] sm:$0xff]  ;;  %v353_v5 = vld [vmem:[#allocation9 + $0x578] sm:$0xff] }
 0x17f   :  { %v6392_v29 = vcombine.low %v516_v13, %v520_v14 }
 0x181   :  { %2999 = vmatpush1.bf16.msra.mxu0 %v6320_v20  ;;  %v6066_v20 = vcombine.low %v189_v7, %v193_v8  ;;  %v269_v7 = vld [vmem:[#allocation9 + $0x2d8] sm:$0xff] }
 0x182   :  { %6446 = vmatmul.mubr.msk.bf16.vlgmr.msra.gmra.mxu1 %vm2572_vm0, %v7657_v37  ;;  %3000 = vmatprep.subr.bf16.mxu0 %v6313_v22  ;;  %v6059_v22 = vcombine.high %v181_v15, %v185_v17  ;;  %v273_v8 = vld [vmem:[#allocation9 + $0x2f8] sm:$0xff] }
 0x183   :  { %3069 = vmatpush1.bf16.msra.mxu1 %v6114_v21  ;;  %3100 = vmatprep.mubr.bf16.mxu1 %v7641_v58  ;;  %v6417_v58 = vcombine.high %v540_v46, %v544_v47  ;;  %v6393_v21 = vcombine.high %v516_v13, %v520_v14  ;;  %v369_v46 = vld [vmem:[#allocation9 + $0x5f8] sm:$0xff] }
 0x184   :  { %3070 = vmatprep.subr.bf16.mxu1 %v6107_v23  ;;  %v508_v23 = vld [vmem:[#allocation9 + $0xa50] sm:$0xff]  ;;  %v285_v47 = vld [vmem:[#allocation9 + $0x358] sm:$0xff] }
 0x185   :  { %3001 = vmatpush1.bf16.msra.mxu0 %v6312_v30  ;;  %v6058_v30 = vcombine.low %v181_v15, %v185_v17  ;;  %v6384_v41 = vcombine.low %v508_v23, %v512_v24  ;;  %v261_v14 = vld [vmem:[#allocation9 + $0x298] sm:$0xff] }
 0x186   :  { %3002 = vmatprep.subr.bf16.mxu0 %v6433_v34  ;;  %v6179_v34 = vcombine.high %v301_v25, %v305_v26 }
 0x187   :  { %3071 = vmatpush1.bf16.msra.mxu1 %v6106_v32  ;;  %v6385_v32 = vcombine.high %v508_v23, %v512_v24 }
 0x188   :  { %3072 = vmatprep.subr.bf16.mxu1 %v6099_v35  ;;  %v500_v35 = vld [vmem:[#allocation9 + $0xa10] sm:$0xff] }
 0x189   :  { %3003 = vmatpush2.bf16.msra.mxu0 %v6432_v42  ;;  %v6178_v42 = vcombine.low %v301_v25, %v305_v26  ;;  %v6376_v49 = vcombine.low %v500_v35, %v504_v36 }
 0x18a   :  { %3004 = vmatprep.subr.bf16.mxu0 %v6425_v44  ;;  %v6171_v44 = vcombine.high %v293_v38, %v297_v39 }
 0x18b   :  { %3073 = vmatpush1.bf16.msra.mxu1 %v6098_v43  ;;  %v6377_v43 = vcombine.high %v500_v35, %v504_v36 }
 0x18c   :  { %3074 = vmatprep.subr.bf16.mxu1 %v6091_v45  ;;  %v365_v45 = vld [vmem:[#allocation9 + $0x5d8] sm:$0xff] }
 0x18d   :  { %3005 = vmatpush2.bf16.msra.mxu0 %v6424_v50  ;;  %v6170_v50 = vcombine.low %v293_v38, %v297_v39  ;;  %v6242_v61 = vcombine.low %v365_v45, %v369_v46  ;;  %v333_v38 = vld [vmem:[#allocation9 + $0x4d8] sm:$0xff] }
 0x18e   :  { %3006 = vmatprep.subr.bf16.mxu0 %v6417_v58  ;;  %v6163_v58 = vcombine.high %v285_v47, %v289_v48  ;;  %v337_v39 = vld [vmem:[#allocation9 + $0x4f8] sm:$0xff] }
 0x18f   :  { %3075 = vmatpush1.bf16.msra.mxu1 %v6090_v52  ;;  %v6243_v52 = vcombine.high %v365_v45, %v369_v46 }
 0x190   :  { %3076 = vmatprep.subr.bf16.mxu1 %v6083_v54  ;;  %v357_v54 = vld [vmem:[#allocation9 + $0x598] sm:$0xff] }
 0x191   :  { %3007 = vmatpush2.bf16.msra.mxu0 %v6416_v63  ;;  %v6162_v63 = vcombine.low %v285_v47, %v289_v48 }
 0x192   :  { %3008 = vmatprep.subr.bf16.mxu0 %v6409_v2  ;;  %v6155_v2 = vcombine.high %v277_v56, %v281_v60 }
 0x193   :  { %3077 = vmatpush1.bf16.msra.mxu1 %v6082_v1  ;;  %v6235_v1 = vcombine.high %v357_v54, %v361_v55 }
 0x194   :  { %3078 = vmatprep.subr.bf16.mxu1 %v6075_v4  ;;  %v349_v4 = vld [vmem:[#allocation9 + $0x558] sm:$0xff] }
 0x195   :  { %3009 = vmatpush2.bf16.msra.mxu0 %v6408_v9  ;;  %v6227_v13 = vcombine.high %v349_v4, %v353_v5  ;;  %v6226_v25 = vcombine.low %v349_v4, %v353_v5 }
 0x196   :  { %3010 = vmatprep.subr.bf16.mxu0 %v6401_v11  ;;  %v6154_v11 = vcombine.low %v277_v56, %v281_v60  ;;  %v249_v60 = vld [vmem:[#allocation9 + $0x238] sm:$0xff] }
 0x197   :  { %3079 = vmatpush1.bf16.msra.mxu1 %v6074_v10  ;;  %v6234_v10 = vcombine.low %v357_v54, %v361_v55 }
 0x198   :  { %3080 = vmatprep.subr.bf16.mxu1 %v6067_v12 }
 0x199   :  { %3011 = vmatpush2.bf16.msra.mxu0 %v6400_v18  ;;  %v6147_v18 = vcombine.high %v269_v7, %v273_v8 }
 0x19a   :  { %3012 = vmatprep.subr.bf16.mxu0 %v6393_v21  ;;  %v341_v21 = vld [vmem:[#allocation9 + $0x518] sm:$0xff] }
 0x19b   :  { %3081 = vmatpush1.bf16.msra.mxu1 %v6066_v20  ;;  %v265_v20 = vld [vmem:[#allocation9 + $0x2b8] sm:$0xff] }
 0x19c   :  { %3082 = vmatprep.subr.bf16.mxu1 %v6059_v22  ;;  %v6139_v26 = vcombine.high %v261_v14, %v265_v20  ;;  %v6138_v47 = vcombine.low %v261_v14, %v265_v20  ;;  %v497_v20 = vld [vmem:[#allocation9 + $0x9f8] sm:$0xff] }
 0x19d   :  { %3013 = vmatpush2.bf16.msra.mxu0 %v6392_v29  ;;  %v253_v29 = vld [vmem:[#allocation9 + $0x258] sm:$0xff] }
 0x19e   :  { %3014 = vmatprep.subr.bf16.mxu0 %v6385_v32 }
 0x19f   :  { %3083 = vmatpush1.bf16.msra.mxu1 %v6058_v30 }
 0x1a0   :  { %3084 = vmatprep.subr.bf16.mxu1 %v6179_v34 }
 0x1a1   :  { %3015 = vmatpush2.bf16.msra.mxu0 %v6384_v41 }
 0x1a2   :  { %3016 = vmatprep.subr.bf16.mxu0 %v6377_v43 }
 0x1a3   :  { %3085 = vmatpush2.bf16.msra.mxu1 %v6178_v42 }
 0x1a4   :  { %3086 = vmatprep.subr.bf16.mxu1 %v6171_v44 }
 0x1a5   :  { %3017 = vmatpush2.bf16.msra.mxu0 %v6376_v49  ;;  %v6211_v49 = vcombine.high %v333_v38, %v337_v39 }
 0x1a6   :  { %3109 = vmatprep.subr.bf16.mxu0 %v6243_v52 }
 0x1a7   :  { %3087 = vmatpush2.bf16.msra.mxu1 %v6170_v50  ;;  %v245_v50 = vld [vmem:[#allocation9 + $0x218] sm:$0xff] }
 0x1a8   :  { %3088 = vmatprep.subr.bf16.mxu1 %v6163_v58  ;;  %v2692_v6 = vpop.f32.mrf.mxu0  ;;  %3019 = vmatmul.mubr.bf16.vlgmr.msra.gmra.mxu0 %v7662_v33 }
 0x1a9   :  { %v2693_v9 = vadd.f32 %v2692_v6, %v7691_v28  ;;  %3110 = vmatpush1.bf16.msra.mxu0 %v6242_v61  ;;  %3141 = vmatprep.mubr.bf16.mxu0 %v7643_v59  ;;  %v345_v28 = vld [vmem:[#allocation9 + $0x538] sm:$0xff] }
 0x1aa   :  { %v2694_v12 = vpop.f32.mrf.mxu0  ;;  %3111 = vmatprep.subr.bf16.mxu0 %v6235_v1  ;;  %v6218_v41 = vcombine.low %v341_v21, %v345_v28  ;;  %v325_v61 = vld [vmem:[#allocation9 + $0x498] sm:$0xff]  ;;  %v6210_v1 = vcombine.low %v333_v38, %v337_v39 }
 0x1ab   :  { %3089 = vmatpush2.bf16.msra.mxu1 %v6162_v63  ;;  %v7708_v15 = vadd.f32 %v7695_v53, %v2693_v9  ;;  %v2695_v17 = vadd.f32 %v2694_v12, %v7693_v40  ;;  %v6146_v53 = vcombine.low %v269_v7, %v273_v8  ;;  %v6219_v40 = vcombine.high %v341_v21, %v345_v28  ;;  %v329_v63 = vld [vmem:[#allocation9 + $0x4b8] sm:$0xff] }
 0x1ac   :  { %3090 = vmatprep.subr.bf16.mxu1 %v6155_v2  ;;  %v2696_v22 = vpop.f32.mrf.mxu0  ;;  %v6123_v9 = vcombine.high %v245_v50, %v249_v60  ;;  %v317_v21 = vld [vmem:[#allocation9 + $0x458] sm:$0xff] }
 0x1ad   :  { %v3232_v23 = vrot.slane %v7708_v15, 4  ;;  %v3280_v59 = vmul.f32 %v7708_v15, %v7708_v15  ;;  %v7715_v24 = vadd.f32 %v7697_v57, %v2695_v17  ;;  %3112 = vmatpush1.bf16.msra.mxu0 %v6234_v10  ;;  %v257_v57 = vld [vmem:[#allocation9 + $0x278] sm:$0xff]  ;;  %v6203_v10 = vcombine.high %v325_v61, %v329_v63 }
 0x1ae   :  { %3113 = vmatprep.subr.bf16.mxu0 %v6227_v13  ;;  %v2697_v30 = vpop.f32.mrf.mxu0  ;;  %v6131_v48 = vcombine.high %v253_v29, %v257_v57  ;;  %v6130_v8 = vcombine.low %v253_v29, %v257_v57  ;;  %v321_v28 = vld [vmem:[#allocation9 + $0x478] sm:$0xff]  ;;  %v6202_v22 = vcombine.low %v325_v61, %v329_v63 }
 0x1af   :  { %3091 = vmatpush2.bf16.msra.mxu1 %v6154_v11  ;;  %v3233_v32 = vadd.f32 %v3232_v23, %v7708_v15  ;;  %v3288_v34 = vrot.slane %v3280_v59, 4  ;;  %v3238_v35 = vrot.slane %v7715_v24, 4  ;;  %v3281_v36 = vmul.f32 %v7715_v24, %v7715_v24  ;;  %v493_v11 = vld [vmem:[#allocation9 + $0x9d8] sm:$0xff] }
 0x1b0   :  { %3092 = vmatprep.subr.bf16.mxu1 %v6147_v18  ;;  %v6195_v29 = vcombine.high %v317_v21, %v321_v28  ;;  %v313_v57 = vld [vmem:[#allocation9 + $0x438] sm:$0xff] }
 0x1b1   :  { %v3234_v42 = vrot.slane %v3233_v32, 2  ;;  %v3289_v43 = vadd.f32 %v3288_v34, %v3280_v59  ;;  %v3239_v44 = vadd.f32 %v3238_v35, %v7715_v24  ;;  %v3294_v45 = vrot.slane %v3281_v36, 4  ;;  %3114 = vmatpush1.bf16.msra.mxu0 %v6226_v25  ;;  %v485_v38 = vld [vmem:[#allocation9 + $0x998] sm:$0xff] }
 0x1b2   :  { %v7722_v46 = vpop.f32.mrf.mxu1  ;;  %3115 = vmatprep.subr.bf16.mxu0 %v6219_v40  ;;  %v6371_v40 = vcombine.high %v493_v11, %v497_v20  ;;  %v489_v39 = vld [vmem:[#allocation9 + $0x9b8] sm:$0xff] }
 0x1b3   :  { %3093 = vmatpush2.bf16.msra.mxu1 %v6146_v53  ;;  %v3235_v52 = vadd.f32 %v3234_v42, %v3233_v32  ;;  %v3290_v58 = vrot.slane %v3289_v43, 2  ;;  %v3240_v54 = vrot.slane %v3239_v44, 2  ;;  %v3295_v55 = vadd.f32 %v3294_v45, %v3281_v36  ;;  %v309_v36 = vld [vmem:[#allocation9 + $0x418] sm:$0xff] }
 0x1b4   :  { %v7724_v56 = vpop.f32.mrf.mxu1  ;;  %3094 = vmatprep.subr.bf16.mxu1 %v6139_v26  ;;  %v6122_v26 = vcombine.low %v245_v50, %v249_v60  ;;  %v6370_v45 = vcombine.low %v493_v11, %v497_v20  ;;  %v6363_v50 = vcombine.high %v485_v38, %v489_v39  ;;  %v6186_v63 = vcombine.low %v309_v36, %v313_v57 }
 0x1b5   :  { %v3236_v2 = vrot.slane %v3235_v52, 1  ;;  %v3291_v4 = vadd.f32 %v3290_v58, %v3289_v43  ;;  %v3241_v5 = vadd.f32 %v3240_v54, %v3239_v44  ;;  %v3296_v6 = vrot.slane %v3295_v55, 2  ;;  %3116 = vmatpush1.bf16.msra.mxu0 %v6218_v41  ;;  %v433_v58 = vld [vmem:[#allocation9 + $0x7f8] sm:$0xff] }
 0x1b6   :  { %v2778_v7 = vpop.f32.mrf.mxu1  ;;  %3117 = vmatprep.subr.bf16.mxu0 %v6211_v49  ;;  %v6194_v44 = vcombine.low %v317_v21, %v321_v28  ;;  %v477_v54 = vld [vmem:[#allocation9 + $0x958] sm:$0xff] }
 0x1b7   :  { %3095 = vmatpush2.bf16.msra.mxu1 %v6138_v47  ;;  %v3237_v12 = vadd.f32 %v3236_v2, %v3235_v52  ;;  %v3292_v13 = vrot.slane %v3291_v4, 1  ;;  %v3242_v14 = vrot.slane %v3241_v5, 1  ;;  %v3297_v17 = vadd.f32 %v3296_v6, %v3295_v55  ;;  %v429_v52 = vld [vmem:[#allocation9 + $0x7d8] sm:$0xff] }
 0x1b8   :  { %v2779_v18 = vpop.f32.mrf.mxu1  ;;  %3096 = vmatprep.subr.bf16.mxu1 %v6131_v48  ;;  %v6187_v47 = vcombine.high %v309_v36, %v313_v57  ;;  %v481_v55 = vld [vmem:[#allocation9 + $0x978] sm:$0xff]  ;;  %v6307_v2 = vcombine.high %v429_v52, %v433_v58 }
 0x1b9   :  { %v3293_v23 = vadd.f32 %v3292_v13, %v3291_v4  ;;  %v7726_v59 = vmul.f32 0.125, %v3237_v12  ;;  %v3243_v25 = vadd.f32 %v3242_v14, %v3241_v5  ;;  %v3298_v53 = vrot.slane %v3297_v17, 1  ;;  %3118 = vmatpush1.bf16.msra.mxu0 %v6210_v1  ;;  %v421_v6 = vld [vmem:[#allocation9 + $0x798] sm:$0xff] }
 0x1ba   :  { %3119 = vmatprep.subr.bf16.mxu0 %v6203_v10  ;;  %v6362_v1 = vcombine.low %v485_v38, %v489_v39  ;;  %v6355_v5 = vcombine.high %v477_v54, %v481_v55  ;;  %v425_v7 = vld [vmem:[#allocation9 + $0x7b8] sm:$0xff]  ;;  %v6306_v10 = vcombine.low %v429_v52, %v433_v58 }
 0x1bb   :  { %3097 = vmatpush2.bf16.msra.mxu1 %v6130_v8  ;;  %v3344_v30 = vmul.f32 0.125, %v3293_v23  ;;  %v3352_v32 = vmul.f32 %v7726_v59, %v7726_v59  ;;  %v3299_v34 = vadd.f32 %v3298_v53, %v3297_v17  ;;  %v7730_v35 = vmul.f32 0.125, %v3243_v25  ;;  %v469_v8 = vld [vmem:[#allocation9 + $0x918] sm:$0xff] }
 0x1bc   :  { %3098 = vmatprep.subr.bf16.mxu1 %v6123_v9  ;;  %v473_v9 = vld [vmem:[#allocation9 + $0x938] sm:$0xff]  ;;  %v6299_v11 = vcombine.high %v421_v6, %v425_v7  ;;  %v6298_v20 = vcombine.low %v421_v6, %v425_v7 }
 0x1bd   :  { %v3360_v41 = vsub.f32 %v3344_v30, %v3352_v32  ;;  %v3345_v42 = vmul.f32 0.125, %v3299_v34  ;;  %v3353_v43 = vmul.f32 %v7730_v35, %v7730_v35  ;;  %3120 = vmatpush1.bf16.msra.mxu0 %v6202_v22  ;;  %v6347_v12 = vcombine.high %v469_v8, %v473_v9  ;;  %v413_v13 = vld [vmem:[#allocation9 + $0x758] sm:$0xff] }
 0x1be   :  { %3121 = vmatprep.subr.bf16.mxu0 %v6195_v29  ;;  %v417_v14 = vld [vmem:[#allocation9 + $0x778] sm:$0xff] }
 0x1bf   :  { %3099 = vmatpush2.bf16.msra.mxu1 %v6122_v26  ;;  %v3368_v48 = vmax.f32 %v3360_v41, 0.0  ;;  %v3361_v49 = vsub.f32 %v3345_v42, %v3353_v43  ;;  %v461_v17 = vld [vmem:[#allocation9 + $0x8d8] sm:$0xff]  ;;  %v6291_v21 = vcombine.high %v413_v13, %v417_v14  ;;  %v6290_v26 = vcombine.low %v413_v13, %v417_v14 }
 0x1c0   :  { %3150 = vmatprep.subr.bf16.mxu1 %v6371_v40  ;;  %v465_v18 = vld [vmem:[#allocation9 + $0x8f8] sm:$0xff]  ;;  %v7743_v13 = vsub.s32 2, %v7675_v51 }
 0x1c1   :  { %v3377_v60 = vadd.f32 1e-05, %v3368_v48  ;;  %v3369_v61 = vmax.f32 %v3361_v49, 0.0  ;;  %3122 = vmatpush1.bf16.msra.mxu0 %v6194_v44  ;;  %v6339_v28 = vcombine.high %v461_v17, %v465_v18  ;;  %v405_v22 = vld [vmem:[#allocation9 + $0x718] sm:$0xff]  ;;  %v6338_v40 = vcombine.low %v461_v17, %v465_v18 }
 0x1c2   :  { %3101 = vmatmul.mubr.bf16.vlgmr.msra.gmra.mxu1 %v7647_v16  ;;  %3123 = vmatprep.subr.bf16.mxu0 %v6187_v47  ;;  %v6354_v16 = vcombine.low %v477_v54, %v481_v55  ;;  %v409_v23 = vld [vmem:[#allocation9 + $0x738] sm:$0xff] }
 0x1c3   :  { %3151 = vmatpush1.bf16.msra.mxu1 %v6370_v45  ;;  %v3378_v4 = vadd.f32 1e-05, %v3369_v61  ;;  %3182 = vmatprep.mubr.bf16.mxu1 %v7652_v27  ;;  %6840 = vrsqrt.f32 %v3377_v60  ;;  %v6346_v27 = vcombine.low %v469_v8, %v473_v9  ;;  %v453_v25 = vld [vmem:[#allocation9 + $0x898] sm:$0xff]  ;;  %v6283_v29 = vcombine.high %v405_v22, %v409_v23 }
 0x1c4   :  { %3152 = vmatprep.subr.bf16.mxu1 %v6363_v50  ;;  %v457_v53 = vld [vmem:[#allocation9 + $0x8b8] sm:$0xff]  ;;  %v6282_v39 = vcombine.low %v405_v22, %v409_v23 }
 0x1c5   :  { %6842 = vrsqrt.f32 %v3378_v4  ;;  %3124 = vmatpush1.bf16.msra.mxu0 %v6186_v63  ;;  %v6331_v30 = vcombine.high %v453_v25, %v457_v53  ;;  %v397_v32 = vld [vmem:[#allocation9 + $0x6d8] sm:$0xff]  ;;  %v6330_v42 = vcombine.low %v453_v25, %v457_v53 }
 0x1c6   :  { %3125 = vmatprep.subr.bf16.mxu0 %v6307_v2  ;;  %v401_v34 = vld [vmem:[#allocation9 + $0x6f8] sm:$0xff] }
 0x1c7   :  { %3153 = vmatpush1.bf16.msra.mxu1 %v6362_v1  ;;  %v445_v36 = vld [vmem:[#allocation9 + $0x858] sm:$0xff]  ;;  %v6275_v43 = vcombine.high %v397_v32, %v401_v34  ;;  %v6274_v52 = vcombine.low %v397_v32, %v401_v34 }
 0x1c8   :  { %3154 = vmatprep.subr.bf16.mxu1 %v6355_v5  ;;  %v449_v57 = vld [vmem:[#allocation9 + $0x878] sm:$0xff] }
 0x1c9   :  { %3126 = vmatpush2.bf16.msra.mxu0 %v6306_v10  ;;  %v6323_v45 = vcombine.high %v445_v36, %v449_v57  ;;  %v389_v47 = vld [vmem:[#allocation9 + $0x698] sm:$0xff]  ;;  %v6322_v58 = vcombine.low %v445_v36, %v449_v57 }
 0x1ca   :  { %3127 = vmatprep.subr.bf16.mxu0 %v6299_v11  ;;  %v393_v48 = vld [vmem:[#allocation9 + $0x6b8] sm:$0xff] }
 0x1cb   :  { %3155 = vmatpush1.bf16.msra.mxu1 %v6354_v16  ;;  %v437_v49 = vld [vmem:[#allocation9 + $0x818] sm:$0xff]  ;;  %v6267_v54 = vcombine.high %v389_v47, %v393_v48  ;;  %v6266_v2 = vcombine.low %v389_v47, %v393_v48 }
 0x1cc   :  { %3156 = vmatprep.subr.bf16.mxu1 %v6347_v12  ;;  %v441_v50 = vld [vmem:[#allocation9 + $0x838] sm:$0xff] }
 0x1cd   :  { %3128 = vmatpush2.bf16.msra.mxu0 %v6298_v20  ;;  %v6315_v55 = vcombine.high %v437_v49, %v441_v50  ;;  %v381_v60 = vld [vmem:[#allocation9 + $0x658] sm:$0xff]  ;;  %v6314_v4 = vcombine.low %v437_v49, %v441_v50  ;;  %v7746_v20 = vsub.s32 3, %v7675_v51 }
 0x1ce   :  { %3129 = vmatprep.subr.bf16.mxu0 %v6291_v21  ;;  %v385_v61 = vld [vmem:[#allocation9 + $0x678] sm:$0xff] }
 0x1cf   :  { %3157 = vmatpush1.bf16.msra.mxu1 %v6346_v27  ;;  %v557_v63 = vld [vmem:[#allocation9 + $0xbd8] sm:$0xff]  ;;  %v6259_v5 = vcombine.high %v381_v60, %v385_v61  ;;  %v6258_v16 = vcombine.low %v381_v60, %v385_v61  ;;  %v587_v53 = vrot.slane %v7680_v0, %v7746_v20 }
 0x1d0   :  { %3158 = vmatprep.subr.bf16.mxu1 %v6339_v28  ;;  %v7736_v38 = vpop.eup %6840  ;;  %v561_v1 = vld [vmem:[#allocation9 + $0xbf8] sm:$0xff]  ;;  %v583_v28 = vrot.slane %v7680_v0, %v7743_v13 }
 0x1d1   :  { %3130 = vmatpush2.bf16.msra.mxu0 %v6290_v26  ;;  %v6435_v6 = vcombine.high %v557_v63, %v561_v1  ;;  %v373_v7 = vld [vmem:[#allocation9 + $0x618] sm:$0xff]  ;;  %v6434_v11 = vcombine.low %v557_v63, %v561_v1  ;;  %v2777_v36 = vadd.f32 %v7724_v56, %v587_v53 }
 0x1d2   :  { %v7738_v41 = vpop.eup %6842  ;;  %3131 = vmatprep.subr.bf16.mxu0 %v6283_v29  ;;  %v377_v8 = vld [vmem:[#allocation9 + $0x638] sm:$0xff] }
 0x1d3   :  { %3159 = vmatpush1.bf16.msra.mxu1 %v6338_v40  ;;  %v3401_v44 = vcombine.low %v7736_v38, %v7738_v41  ;;  %v549_v9 = vld [vmem:[#allocation9 + $0xb98] sm:$0xff]  ;;  %v6251_v12 = vcombine.high %v373_v7, %v377_v8  ;;  %v6250_v27 = vcombine.low %v373_v7, %v377_v8  ;;  %v2775_v40 = vadd.f32 %v7722_v46, %v583_v28 }
 0x1d4   :  { %3160 = vmatprep.subr.bf16.mxu1 %v6331_v30  ;;  %v553_v10 = vld [vmem:[#allocation9 + $0xbb8] sm:$0xff] }
 0x1d5   :  { %3132 = vmatpush2.bf16.msra.mxu0 %v6282_v39  ;;  %v6427_v14 = vcombine.high %v549_v9, %v553_v10  ;;  %v541_v17 = vld [vmem:[#allocation9 + $0xb58] sm:$0xff]  ;;  %v6426_v21 = vcombine.low %v549_v9, %v553_v10 }
 0x1d6   :  { %3133 = vmatprep.subr.bf16.mxu0 %v6275_v43  ;;  %v545_v18 = vld [vmem:[#allocation9 + $0xb78] sm:$0xff] }
 0x1d7   :  { %3161 = vmatpush1.bf16.msra.mxu1 %v6330_v42  ;;  %v6419_v22 = vcombine.high %v541_v17, %v545_v18  ;;  %v533_v23 = vld [vmem:[#allocation9 + $0xb18] sm:$0xff]  ;;  %v6418_v26 = vcombine.low %v541_v17, %v545_v18 }
 0x1d8   :  { %3162 = vmatprep.subr.bf16.mxu1 %v6323_v45  ;;  %v537_v25 = vld [vmem:[#allocation9 + $0xb38] sm:$0xff] }
 0x1d9   :  { %3134 = vmatpush2.bf16.msra.mxu0 %v6274_v52  ;;  %v6411_v29 = vcombine.high %v533_v23, %v537_v25  ;;  %v525_v32 = vld [vmem:[#allocation9 + $0xad8] sm:$0xff]  ;;  %v6410_v39 = vcombine.low %v533_v23, %v537_v25 }
 0x1da   :  { %3135 = vmatprep.subr.bf16.mxu0 %v6267_v54  ;;  %v529_v34 = vld [vmem:[#allocation9 + $0xaf8] sm:$0xff] }
 0x1db   :  { %3163 = vmatpush1.bf16.msra.mxu1 %v6322_v58  ;;  %v6403_v43 = vcombine.high %v525_v32, %v529_v34  ;;  %v517_v45 = vld [vmem:[#allocation9 + $0xa98] sm:$0xff]  ;;  %v6402_v46 = vcombine.low %v525_v32, %v529_v34 }
 0x1dc   :  { %3164 = vmatprep.subr.bf16.mxu1 %v6315_v55  ;;  %v521_v47 = vld [vmem:[#allocation9 + $0xab8] sm:$0xff] }
 0x1dd   :  { %3136 = vmatpush2.bf16.msra.mxu0 %v6266_v2  ;;  %v6395_v50 = vcombine.high %v517_v45, %v521_v47  ;;  %v513_v52 = vld [vmem:[#allocation9 + $0xa78] sm:$0xff]  ;;  %v6394_v54 = vcombine.low %v517_v45, %v521_v47 }
 0x1de   :  { %3137 = vmatprep.subr.bf16.mxu0 %v6259_v5  ;;  %v501_v63 = vld [vmem:[#allocation9 + $0xa18] sm:$0xff] }
 0x1df   :  { %3165 = vmatpush1.bf16.msra.mxu1 %v6314_v4  ;;  %v505_v1 = vld [vmem:[#allocation9 + $0xa38] sm:$0xff] }
 0x1e0   :  { %3166 = vmatprep.subr.bf16.mxu1 %v6435_v6  ;;  %v6379_v6 = vcombine.high %v501_v63, %v505_v1  ;;  %v565_v7 = vld [vmem:[#allocation9 + $0xc18] sm:$0xff] }
 0x1e1   :  { %3138 = vmatpush2.bf16.msra.mxu0 %v6258_v16  ;;  %v569_v8 = vld [vmem:[#allocation9 + $0xc38] sm:$0xff]  ;;  %v6378_v16 = vcombine.low %v501_v63, %v505_v1 }
 0x1e2   :  { %3139 = vmatprep.subr.bf16.mxu0 %v6251_v12  ;;  %v6443_v12 = vcombine.high %v565_v7, %v569_v8 }
 0x1e3   :  { %3167 = vmatpush2.bf16.msra.mxu1 %v6434_v11 }
 0x1e4   :  { %3168 = vmatprep.subr.bf16.mxu1 %v6427_v14 }
 0x1e5   :  { %3140 = vmatpush2.bf16.msra.mxu0 %v6250_v27 }
 0x1e7   :  { %3169 = vmatpush2.bf16.msra.mxu1 %v6426_v21  ;;  %v6442_v21 = vcombine.low %v565_v7, %v569_v8 }
 0x1e8   :  { %3170 = vmatprep.subr.bf16.mxu1 %v6419_v22  ;;  %v2815_v30 = vpop.f32.mrf.mxu0  ;;  %3142 = vmatmul.mubr.bf16.vlgmr.msra.gmra.mxu0 %v7649_v19  ;;  %v509_v19 = vld [vmem:[#allocation9 + $0xa58] sm:$0xff] }
 0x1e9   :  { %v2816_v57 = vadd.f32 %v2815_v30, %v2775_v40  ;;  %v6387_v60 = vcombine.high %v509_v19, %v513_v52  ;;  %v6386_v4 = vcombine.low %v509_v19, %v513_v52 }
 0x1ea   :  { %v2817_v42 = vpop.f32.mrf.mxu0 }
 0x1eb   :  { %3171 = vmatpush2.bf16.msra.mxu1 %v6418_v26  ;;  %v2818_v0 = vadd.f32 %v2817_v42, %v2777_v36 }
 0x1ec   :  { %3172 = vmatprep.subr.bf16.mxu1 %v6411_v29  ;;  %v2819_v48 = vpop.f32.mrf.mxu0 }
 0x1ee   :  { %v2820_v49 = vpop.f32.mrf.mxu0 }
 0x1ef   :  { %3173 = vmatpush2.bf16.msra.mxu1 %v6410_v39 }
 0x1f0   :  { %3174 = vmatprep.subr.bf16.mxu1 %v6403_v43 }
 0x1f2   :  { %v2856_v58 = vpop.f32.mrf.mxu1 }
 0x1f3   :  { %3175 = vmatpush2.bf16.msra.mxu1 %v6402_v46  ;;  %v2857_v56 = vadd.f32 %v2856_v58, %v2816_v57 }
 0x1f4   :  { %v2858_v55 = vpop.f32.mrf.mxu1  ;;  %3176 = vmatprep.subr.bf16.mxu1 %v6395_v50 }
 0x1f5   :  { %v2859_v61 = vadd.f32 %v2858_v55, %v2818_v0 }
 0x1f6   :  { %v2860_v2 = vpop.f32.mrf.mxu1 }
 0x1f7   :  { %3177 = vmatpush2.bf16.msra.mxu1 %v6394_v54 }
 0x1f8   :  { %v2861_v5 = vpop.f32.mrf.mxu1  ;;  %3178 = vmatprep.subr.bf16.mxu1 %v6387_v60 }
 0x1fa   :  { %v2897_v9 = vpop.f32.mrf.mxu1 }
 0x1fb   :  { %3179 = vmatpush2.bf16.msra.mxu1 %v6386_v4  ;;  %v7755_v10 = vadd.f32 %v2897_v9, %v2857_v56 }
 0x1fc   :  { %v2899_v11 = vpop.f32.mrf.mxu1  ;;  %3180 = vmatprep.subr.bf16.mxu1 %v6379_v6 }
 0x1fd   :  { %v3244_v14 = vrot.slane %v7755_v10, 4  ;;  %v3282_v17 = vmul.f32 %v7755_v10, %v7755_v10  ;;  %v7760_v18 = vadd.f32 %v2899_v11, %v2859_v61 }
 0x1fe   :  { %v2901_v27 = vpop.f32.mrf.mxu1 }
 0x1ff   :  { %v3245_v28 = vadd.f32 %v3244_v14, %v7755_v10  ;;  %v3300_v22 = vrot.slane %v3282_v17, 4  ;;  %v3250_v23 = vrot.slane %v7760_v18, 4  ;;  %v3283_v25 = vmul.f32 %v7760_v18, %v7760_v18  ;;  %3181 = vmatpush2.bf16.msra.mxu1 %v6378_v16 }
 0x200   :  { %v2902_v53 = vpop.f32.mrf.mxu1  ;;  %3205 = vmatprep.subr.bf16.mxu1 %v6443_v12 }
 0x201   :  { %v3246_v26 = vrot.slane %v3245_v28, 2  ;;  %v3301_v40 = vadd.f32 %v3300_v22, %v3282_v17  ;;  %v3251_v29 = vadd.f32 %v3250_v23, %v7760_v18  ;;  %v3306_v30 = vrot.slane %v3283_v25, 4 }
 0x202   :  { %3183 = vmatmul.mubr.bf16.vlgmr.msra.gmra.mxu1 %v7662_v33  ;;  %v7797_v23 = vsub.s32 5, %v7675_v51 }
 0x203   :  { %v3247_v32 = vadd.f32 %v3246_v26, %v3245_v28  ;;  %v3302_v34 = vrot.slane %v3301_v40, 2  ;;  %v3252_v36 = vrot.slane %v3251_v29, 2  ;;  %v3307_v57 = vadd.f32 %v3306_v30, %v3283_v25  ;;  %3206 = vmatpush1.bf16.msra.mxu1 %v6442_v21  ;;  %3223 = vmatprep.mubr.bf16.mxu1 %v7549_v31  ;;  %v7799_v25 = vld [vmem:[#allocation11] sm:$0xff] }
 0x204   :  { %v7794_v28 = vsub.s32 4, %v7675_v51  ;;  %v595_v41 = vrot.slane %v7799_v25, %v7797_v23 }
 0x205   :  { %v3248_v39 = vrot.slane %v3247_v32, 1  ;;  %v3303_v42 = vadd.f32 %v3302_v34, %v3301_v40  ;;  %v3253_v0 = vadd.f32 %v3252_v36, %v3251_v29  ;;  %v3308_v43 = vrot.slane %v3307_v57, 2 }
 0x206   :  { %v591_v38 = vrot.slane %v7799_v25, %v7794_v28 }
 0x207   :  { %v3249_v45 = vadd.f32 %v3248_v39, %v3247_v32  ;;  %v3304_v47 = vrot.slane %v3303_v42, 1  ;;  %v3254_v48 = vrot.slane %v3253_v0, 1  ;;  %v3309_v46 = vadd.f32 %v3308_v43, %v3307_v57 }
 0x209   :  { %v3305_v49 = vadd.f32 %v3304_v47, %v3303_v42  ;;  %v7769_v50 = vmul.f32 0.125, %v3249_v45  ;;  %v3255_v19 = vadd.f32 %v3254_v48, %v3253_v0  ;;  %v3310_v33 = vrot.slane %v3309_v46, 1 }
 0x20a   :  { %6447 = vmatmul.mubr.msk.bf16.vlgmr.msra.gmra.mxu1 %vm2572_vm0, %v7657_v37  ;;  %v7550_v37 = vmov 1966171168  }
 0x20b   :  { %v3346_v52 = vmul.f32 0.125, %v3305_v49  ;;  %v3354_v31 = vmul.f32 %v7769_v50, %v7769_v50  ;;  %v3311_v58 = vadd.f32 %v3310_v33, %v3309_v46  ;;  %v7775_v56 = vmul.f32 0.125, %v3255_v19 }
 0x20c   :  { %v3406_v5 = vunpack.c.l.s4 %v7550_v37 }
 0x20d   :  { %v3362_v54 = vsub.f32 %v3346_v52, %v3354_v31  ;;  %v3347_v55 = vmul.f32 0.125, %v3311_v58  ;;  %v3355_v60 = vmul.f32 %v7775_v56, %v7775_v56 }
 0x20e   :  { %v3407_v6 = vunpack.c.0.s8 %v3406_v5 }
 0x20f   :  { %v3370_v61 = vmax.f32 %v3362_v54, 0.0  ;;  %v3363_v63 = vsub.f32 %v3347_v55, %v3355_v60 }
 0x210   :  { %v7780_v8 = vsub.s32 %v3407_v6, %v7675_v51 }
 0x211   :  { %v3379_v1 = vadd.f32 1e-05, %v3370_v61  ;;  %v3371_v2 = vmax.f32 %v3363_v63, 0.0 }
 0x212   :  { %v7786_v11 = vrot.slane %v3401_v44, %v7780_v8 }
 0x213   :  { %v3380_v4 = vadd.f32 1e-05, %v3371_v2  ;;  %6844 = vrsqrt.f32 %v3379_v1 }
 0x215   :  { %6846 = vrsqrt.f32 %v3380_v4 }
 0x220   :  { %v6845_v7 = vpop.eup %6844 }
 0x222   :  { %v6847_v9 = vpop.eup %6846 }
 0x223   :  { %v3402_v16 = vcombine.low %v6845_v7, %v6847_v9 }
 0x225   :  { %v7789_v12 = vrot.slane %v3402_v16, %v7780_v8 }
 0x227   :  { %v3433_v14 = vcombine.low %v7786_v11, %v7789_v12 }
 0x228   :  { %v2938_v17 = vpop.f32.mrf.mxu0 }
 0x229   :  { %v2939_v44 = vadd.f32 %v2938_v17, %v591_v38 }
 0x22a   :  { %v2940_v27 = vpop.f32.mrf.mxu0 }
 0x22b   :  { %v2941_v53 = vadd.f32 %v2940_v27, %v595_v41 }
 0x22c   :  { %v2942_v21 = vpop.f32.mrf.mxu0 }
 0x22e   :  { %v2943_v22 = vpop.f32.mrf.mxu0 }
 0x23a   :  { %v2979_v26 = vpop.f32.mrf.mxu1 }
 0x23b   :  { %v2980_v40 = vadd.f32 %v2979_v26, %v2939_v44 }
 0x23c   :  { %v2981_v29 = vpop.f32.mrf.mxu1 }
 0x23d   :  { %v2982_v30 = vadd.f32 %v2981_v29, %v2941_v53 }
 0x23e   :  { %v2983_v32 = vpop.f32.mrf.mxu1 }
 0x240   :  { %v2984_v34 = vpop.f32.mrf.mxu1 }
 0x242   :  { %v3061_v36 = vpop.f32.mrf.mxu1 }
 0x244   :  { %v3063_v57 = vpop.f32.mrf.mxu1 }
 0x246   :  { %v3065_v39 = vpop.f32.mrf.mxu1 }
 0x248   :  { %v3066_v42 = vpop.f32.mrf.mxu1 }
 0x268   :  { %v3020_v0 = vpop.f32.mrf.mxu0 }
 0x269   :  { %v3021_v43 = vadd.f32 %v3020_v0, %v2980_v40 }
 0x26a   :  { %v3022_v45 = vpop.f32.mrf.mxu0 }
 0x26b   :  { %v7805_v47 = vadd.f32 %v3061_v36, %v3021_v43  ;;  %v3023_v48 = vadd.f32 %v3022_v45, %v2982_v30 }
 0x26c   :  { %v3024_v46 = vpop.f32.mrf.mxu0 }
 0x26d   :  { %v3256_v49 = vrot.slane %v7805_v47, 4  ;;  %v3284_v19 = vmul.f32 %v7805_v47, %v7805_v47  ;;  %v7810_v33 = vadd.f32 %v3063_v57, %v3023_v48 }
 0x26e   :  { %v3025_v52 = vpop.f32.mrf.mxu0 }
 0x26f   :  { %v3257_v31 = vadd.f32 %v3256_v49, %v7805_v47  ;;  %v3312_v58 = vrot.slane %v3284_v19, 4  ;;  %v3262_v54 = vrot.slane %v7810_v33, 4  ;;  %v3285_v55 = vmul.f32 %v7810_v33, %v7810_v33 }
 0x271   :  { %v3258_v60 = vrot.slane %v3257_v31, 2  ;;  %v3313_v61 = vadd.f32 %v3312_v58, %v3284_v19  ;;  %v3263_v63 = vadd.f32 %v3262_v54, %v7810_v33  ;;  %v3318_v1 = vrot.slane %v3285_v55, 4 }
 0x273   :  { %v3259_v2 = vadd.f32 %v3258_v60, %v3257_v31  ;;  %v3314_v4 = vrot.slane %v3313_v61, 2  ;;  %v3264_v37 = vrot.slane %v3263_v63, 2  ;;  %v3319_v5 = vadd.f32 %v3318_v1, %v3285_v55 }
 0x275   :  { %v3260_v6 = vrot.slane %v3259_v2, 1  ;;  %v3315_v7 = vadd.f32 %v3314_v4, %v3313_v61  ;;  %v3265_v9 = vadd.f32 %v3264_v37, %v3263_v63  ;;  %v3320_v16 = vrot.slane %v3319_v5, 2 }
 0x277   :  { %v3261_v17 = vadd.f32 %v3260_v6, %v3259_v2  ;;  %v3316_v27 = vrot.slane %v3315_v7, 1  ;;  %v3266_v21 = vrot.slane %v3265_v9, 1  ;;  %v3321_v22 = vadd.f32 %v3320_v16, %v3319_v5 }
 0x279   :  { %v3317_v38 = vadd.f32 %v3316_v27, %v3315_v7  ;;  %v7817_v41 = vmul.f32 0.125, %v3261_v17  ;;  %v3267_v44 = vadd.f32 %v3266_v21, %v3265_v9  ;;  %v3322_v53 = vrot.slane %v3321_v22, 1 }
 0x27b   :  { %v3348_v26 = vmul.f32 0.125, %v3317_v38  ;;  %v3356_v40 = vmul.f32 %v7817_v41, %v7817_v41  ;;  %v3323_v29 = vadd.f32 %v3322_v53, %v3321_v22  ;;  %v7821_v30 = vmul.f32 0.125, %v3267_v44 }
 0x27d   :  { %v3364_v32 = vsub.f32 %v3348_v26, %v3356_v40  ;;  %v3349_v34 = vmul.f32 0.125, %v3323_v29  ;;  %v3357_v36 = vmul.f32 %v7821_v30, %v7821_v30 }
 0x27f   :  { %v3372_v57 = vmax.f32 %v3364_v32, 0.0  ;;  %v3365_v39 = vsub.f32 %v3349_v34, %v3357_v36 }
 0x281   :  { %v3381_v42 = vadd.f32 1e-05, %v3372_v57  ;;  %v3373_v0 = vmax.f32 %v3365_v39, 0.0 }
 0x282   :  { %v3102_v43 = vpop.f32.mrf.mxu1 }
 0x283   :  { %v3382_v45 = vadd.f32 1e-05, %v3373_v0  ;;  %6848 = vrsqrt.f32 %v3381_v42 }
 0x284   :  { %v3104_v48 = vpop.f32.mrf.mxu1 }
 0x285   :  { %6850 = vrsqrt.f32 %v3382_v45 }
 0x286   :  { %v3106_v46 = vpop.f32.mrf.mxu1 }
 0x288   :  { %v3107_v49 = vpop.f32.mrf.mxu1 }
 0x290   :  { %v7825_v19 = vpop.eup %6848 }
 0x292   :  { %v7827_v52 = vpop.eup %6850 }
 0x293   :  { %v3403_v31 = vcombine.low %v7825_v19, %v7827_v52 }
 0x294   :  { %7460 = shalt.err (!%p7457_p2)  }
 0x295   :  { %139 = dma.hbm_to_vmem [thread:$0]  %s7996_s5, 32768, %s137_s10, [#allocation5] }
 0x296   :  { %s7469_s20 = scalar_lea.vmem %s149_s17, 4096  ;;  %p7474_p4 = scmp.lt.s32.totalorder %s149_s17, %s149_s17 }
 0x297   :  { %p7470_p3 = scmp.ne.s32.totalorder %s149_s17, %s7469_s20  ;;  %p7475_p5 = scmp.lt.s32.totalorder %s7469_s20, %s7469_s20 }
 0x299   :  { %p7476_p6 = por %p7475_p5, %p7474_p4 }
 0x29b   :  { %p7477_p7 = pnand %p7476_p6, %p7470_p3 }
 0x29d   :  { %7480 = shalt.err (!%p7477_p7)  }
 0x29e   :  { %151 = dma.hbm_to_vmem [thread:$0]  %s7998_s7, 4096, %s149_s17, [#allocation5 + $0x1] }
 0x29f   :  { %s7553_s22 = smov [#allocation4]  }
 0x2a0   :  { %s160_s23 = sshll.u32 %s7553_s22, 4  ;;  %s161_s23 = int_to_ptr.vmem [resolvable:$true] %s160_s23 }
 0x2a1   :  { %s7489_s24 = scalar_lea.vmem %s161_s23, 1024  ;;  %p7494_p9 = scmp.lt.s32.totalorder %s161_s23, %s161_s23 }
 0x2a2   :  { %p7490_p8 = scmp.ne.s32.totalorder %s161_s23, %s7489_s24  ;;  %p7495_p10 = scmp.lt.s32.totalorder %s7489_s24, %s7489_s24 }
 0x2a4   :  { %p7496_p11 = por %p7495_p10, %p7494_p9 }
 0x2a6   :  { %p7497_p12 = pnand %p7496_p11, %p7490_p8 }
 0x2a8   :  { %7500 = shalt.err (!%p7497_p12)  }
 0x2a9   :  { %163 = dma.hbm_to_vmem [thread:$0]  %s8000_s9, 1024, %s161_s23, [#allocation5 + $0x2]  ;;  %v3143_v58 = vpop.f32.mrf.mxu0  ;;  %v7841_v61 = vsub.s32 6, %v7675_v51  ;;  %v7844_v63 = vsub.s32 7, %v7675_v51 }
 0x2ab   :  { %v3145_v54 = vpop.f32.mrf.mxu0  ;;  %v599_v1 = vrot.slane %v7799_v25, %v7841_v61  ;;  %v603_v4 = vrot.slane %v7799_v25, %v7844_v63 }
 0x2ad   :  { %v3147_v55 = vpop.f32.mrf.mxu0  ;;  %v3103_v5 = vadd.f32 %v3102_v43, %v599_v1  ;;  %v3105_v7 = vadd.f32 %v3104_v48, %v603_v4 }
 0x2af   :  { %v3148_v60 = vpop.f32.mrf.mxu0  ;;  %v3144_v9 = vadd.f32 %v3143_v58, %v3103_v5  ;;  %v3146_v17 = vadd.f32 %v3145_v54, %v3105_v7 }
 0x2c2   :  { %v3184_v2 = vpop.f32.mrf.mxu1 }
 0x2c3   :  { %v3185_v27 = vadd.f32 %v3184_v2, %v3144_v9 }
 0x2c4   :  { %v3186_v37 = vpop.f32.mrf.mxu1 }
 0x2c5   :  { %v3187_v22 = vadd.f32 %v3186_v37, %v3146_v17 }
 0x2c6   :  { %v3188_v6 = vpop.f32.mrf.mxu1 }
 0x2c8   :  { %v3189_v16 = vpop.f32.mrf.mxu1 }
 0x2ca   :  { %v3225_v21 = vpop.f32.mrf.mxu1 }
 0x2cb   :  { %v7850_v38 = vadd.f32 %v3225_v21, %v3185_v27 }
 0x2cc   :  { %v3227_v51 = vpop.f32.mrf.mxu1 }
 0x2cd   :  { %v3268_v44 = vrot.slane %v7850_v38, 4  ;;  %v3286_v53 = vmul.f32 %v7850_v38, %v7850_v38  ;;  %v7855_v26 = vadd.f32 %v3227_v51, %v3187_v22 }
 0x2ce   :  { %v3229_v25 = vpop.f32.mrf.mxu1 }
 0x2cf   :  { %v3269_v40 = vadd.f32 %v3268_v44, %v7850_v38  ;;  %v3324_v29 = vrot.slane %v3286_v53, 4  ;;  %v3274_v32 = vrot.slane %v7855_v26, 4  ;;  %v3287_v34 = vmul.f32 %v7855_v26, %v7855_v26 }
 0x2d0   :  { %v3230_v36 = vpop.f32.mrf.mxu1 }
 0x2d1   :  { %v3270_v57 = vrot.slane %v3269_v40, 2  ;;  %v3325_v39 = vadd.f32 %v3324_v29, %v3286_v53  ;;  %v3275_v42 = vadd.f32 %v3274_v32, %v7855_v26  ;;  %v3330_v0 = vrot.slane %v3287_v34, 4 }
 0x2d3   :  { %v3271_v43 = vadd.f32 %v3270_v57, %v3269_v40  ;;  %v3326_v45 = vrot.slane %v3325_v39, 2  ;;  %v3276_v48 = vrot.slane %v3275_v42, 2  ;;  %v3331_v46 = vadd.f32 %v3330_v0, %v3287_v34 }
 0x2d4   :  { %v3425_v57 = vrot.slane %v3403_v31, %v7780_v8  ;;  %v3441_v0 = vrot.slane %v3433_v14, %v7780_v8 }
 0x2d5   :  { %v3272_v49 = vrot.slane %v3271_v43, 1  ;;  %v3327_v58 = vadd.f32 %v3326_v45, %v3325_v39  ;;  %v3277_v54 = vadd.f32 %v3276_v48, %v3275_v42  ;;  %v3332_v55 = vrot.slane %v3331_v46, 2  ;;  %v3376_v45 = vld [vmem:[#allocation12] sm:$0xff] }
 0x2d7   :  { %v3273_v60 = vadd.f32 %v3272_v49, %v3271_v43  ;;  %v3328_v1 = vrot.slane %v3327_v58, 1  ;;  %v3278_v2 = vrot.slane %v3277_v54, 1  ;;  %v3333_v4 = vadd.f32 %v3332_v55, %v3331_v46 }
 0x2d9   :  { %v3329_v37 = vadd.f32 %v3328_v1, %v3327_v58  ;;  %v3342_v5 = vmul.f32 0.125, %v3273_v60  ;;  %v3279_v6 = vadd.f32 %v3278_v2, %v3277_v54  ;;  %v3334_v7 = vrot.slane %v3333_v4, 1 }
 0x2db   :  { %v3350_v9 = vmul.f32 0.125, %v3329_v37  ;;  %v3358_v16 = vmul.f32 %v3342_v5, %v3342_v5  ;;  %v3335_v17 = vadd.f32 %v3334_v7, %v3333_v4  ;;  %v3343_v27 = vmul.f32 0.125, %v3279_v6 }
 0x2dd   :  { %v3366_v21 = vsub.f32 %v3350_v9, %v3358_v16  ;;  %v3351_v22 = vmul.f32 0.125, %v3335_v17  ;;  %v3359_v51 = vmul.f32 %v3343_v27, %v3343_v27 }
 0x2df   :  { %v3374_v44 = vmax.f32 %v3366_v21, 0.0  ;;  %v3367_v53 = vsub.f32 %v3351_v22, %v3359_v51 }
 0x2e1   :  { %v3383_v25 = vadd.f32 1e-05, %v3374_v44  ;;  %v3375_v40 = vmax.f32 %v3367_v53, 0.0  ;;  %v3452_v53 = vld [vmem:[#allocation14] sm:$0xff] }
 0x2e3   :  { %v3384_v29 = vadd.f32 1e-05, %v3375_v40  ;;  %6852 = vrsqrt.f32 %v3383_v25 }
 0x2e5   :  { %6854 = vrsqrt.f32 %v3384_v29 }
 0x2f0   :  { %v6853_v32 = vpop.eup %6852 }
 0x2f2   :  { %v6855_v34 = vpop.eup %6854 }
 0x2f3   :  { %v3404_v36 = vcombine.low %v6853_v32, %v6855_v34 }
 0x2f5   :  { %v3432_v39 = vrot.slane %v3404_v36, %v7780_v8 }
 0x2f7   :  { %v3434_v42 = vcombine.low %v3425_v57, %v3432_v39 }
 0x2f9   :  { %v3448_v43 = vrot.slane %v3434_v42, %v7780_v8 }
 0x2fb   :  { %v3449_v48 = vcombine.low %v3441_v0, %v3448_v43 }
 0x2fd   :  { %v3451_v46 = vmul.f32 %v3449_v48, %v3376_v45 }
 0x2ff   :  { %v3457_v49 = vrot.slane %v3451_v46, %v7678_v62  ;;  %v3461_v58 = vrot.slane %v3451_v46, %v7683_v3  ;;  %v3465_v19 = vrot.slane %v3451_v46, %v7743_v13  ;;  %v3469_v52 = vrot.slane %v3451_v46, %v7746_v20 }
 0x300   :  { %v3473_v31 = vrot.slane %v3451_v46, %v7794_v28  ;;  %v3477_v54 = vrot.slane %v3451_v46, %v7797_v23  ;;  %v3481_v11 = vrot.slane %v3451_v46, %v7841_v61  ;;  %v3485_v12 = vrot.slane %v3451_v46, %v7844_v63 }
 0x301   :  { %v3494_v14 = vmul.f32 %v3457_v49, %v7726_v59  ;;  %v3495_v55 = vmul.f32 %v3461_v58, %v7730_v35  ;;  %v3496_v60 = vmul.f32 %v3465_v19, %v7769_v50  ;;  %v3497_v1 = vmul.f32 %v3469_v52, %v7775_v56 }
 0x302   :  { %v3498_v2 = vmul.f32 %v3473_v31, %v7817_v41  ;;  %v3499_v4 = vmul.f32 %v3477_v54, %v7821_v30  ;;  %v3500_v37 = vmul.f32 %v3481_v11, %v3342_v5  ;;  %v3501_v6 = vmul.f32 %v3485_v12, %v3343_v27 }
 0x303   :  { %v3510_v7 = vcombine.low %v3494_v14, %v3495_v55  ;;  %v3511_v9 = vcombine.low %v3496_v60, %v3497_v1  ;;  %v3561_v16 = vmul.f32 %v3457_v49, %v7708_v15  ;;  %v3562_v17 = vmul.f32 %v3461_v58, %v7715_v24 }
 0x304   :  { %v3512_v21 = vcombine.low %v3498_v2, %v3499_v4  ;;  %v3513_v59 = vcombine.low %v3500_v37, %v3501_v6  ;;  %v3563_v35 = vmul.f32 %v3465_v19, %v7755_v10  ;;  %v3564_v50 = vmul.f32 %v3469_v52, %v7760_v18 }
 0x305   :  { %v3520_v56 = vrot.slane %v3510_v7, %v7780_v8  ;;  %v3527_v41 = vrot.slane %v3511_v9, %v7780_v8  ;;  %v3565_v30 = vmul.f32 %v3473_v31, %v7805_v47  ;;  %v3566_v5 = vmul.f32 %v3477_v54, %v7810_v33 }
 0x306   :  { %v3534_v27 = vrot.slane %v3512_v21, %v7780_v8  ;;  %v3541_v15 = vrot.slane %v3513_v59, %v7780_v8  ;;  %v3567_v24 = vmul.f32 %v3481_v11, %v7850_v38  ;;  %v3568_v22 = vmul.f32 %v3485_v12, %v7855_v26 }
 0x307   :  { %v3542_v51 = vcombine.low %v3520_v56, %v3527_v41 }
 0x308   :  { %v3543_v10 = vcombine.low %v3534_v27, %v3541_v15 }
 0x309   :  { %v3550_v18 = vrot.slane %v3542_v51, %v7780_v8 }
 0x30a   :  { %v3557_v44 = vrot.slane %v3543_v10, %v7780_v8 }
 0x30c   :  { %v3558_v25 = vcombine.low %v3550_v18, %v3557_v44 }
 0x30e   :  { %v3560_v40 = vsub.f32 %v3452_v53, %v3558_v25 }
 0x310   :  { %v3573_v47 = vrot.slane %v3560_v40, %v7678_v62  ;;  %v3577_v33 = vrot.slane %v3560_v40, %v7683_v3  ;;  %v3581_v29 = vrot.slane %v3560_v40, %v7743_v13  ;;  %v3585_v32 = vrot.slane %v3560_v40, %v7746_v20 }
 0x311   :  { %v3589_v38 = vrot.slane %v3560_v40, %v7794_v28  ;;  %v3593_v26 = vrot.slane %v3560_v40, %v7797_v23  ;;  %v3597_v34 = vrot.slane %v3560_v40, %v7841_v61  ;;  %v3601_v36 = vrot.slane %v3560_v40, %v7844_v63 }
 0x312   :  { %v3610_v8 = vadd.f32 %v3573_v47, %v3561_v16  ;;  %v3611_v57 = vadd.f32 %v3577_v33, %v3562_v17  ;;  %v3612_v39 = vadd.f32 %v3581_v29, %v3563_v35  ;;  %v3613_v42 = vadd.f32 %v3585_v32, %v3564_v50 }
 0x313   :  { %v3614_v0 = vadd.f32 %v3589_v38, %v3565_v30  ;;  %v3615_v43 = vadd.f32 %v3593_v26, %v3566_v5  ;;  %v3616_v45 = vadd.f32 %v3597_v34, %v3567_v24  ;;  %v3617_v48 = vadd.f32 %v3601_v36, %v3568_v22 }
 0x314   :  { %vm3618_vm1 = vcmp.gt.f32.partialorder %v3610_v8, 0.0  ;;  %vm3619_vm2 = vcmp.gt.f32.partialorder %v3611_v57, 0.0  ;;  %vm3620_vm3 = vcmp.gt.f32.partialorder %v3612_v39, 0.0  ;;  %vm3621_vm4 = vcmp.gt.f32.partialorder %v3613_v42, 0.0 }
 0x315   :  { %vm3622_vm5 = vcmp.gt.f32.partialorder %v3614_v0, 0.0  ;;  %vm3623_vm6 = vcmp.gt.f32.partialorder %v3615_v43, 0.0  ;;  %vm3624_vm7 = vcmp.gt.f32.partialorder %v3616_v45, 0.0  ;;  %vm3625_vm8 = vcmp.gt.f32.partialorder %v3617_v48, 0.0 }
 0x316   :  { %v3626_v28 = vmul.f32 0.2, %v3610_v8  ;;  %v3627_v23 = vmul.f32 0.2, %v3611_v57  ;;  %v3628_v61 = vmul.f32 0.2, %v3612_v39 }
 0x317   :  { %v3629_v63 = vmul.f32 0.2, %v3613_v42  ;;  %v3630_v46 = vmul.f32 0.2, %v3614_v0  ;;  %v3631_v49 = vmul.f32 0.2, %v3615_v43 }
 0x318   :  { %v3632_v58 = vmul.f32 0.2, %v3616_v45  ;;  %v3633_v19 = vmul.f32 0.2, %v3617_v48  ;;  %v7909_v52 = vsel %vm3618_vm1, %v3610_v8, %v3626_v28  ;;  %v3635_v31 = vsel %vm3619_vm2, %v3611_v57, %v3627_v23 }
 0x319   :  { %v7913_v54 = vsel %vm3620_vm3, %v3612_v39, %v3628_v61  ;;  %v3637_v11 = vsel %vm3621_vm4, %v3613_v42, %v3629_v63  ;;  %v7917_v12 = vsel %vm3622_vm5, %v3614_v0, %v3630_v46  ;;  %v7920_v14 = vsel %vm3623_vm6, %v3615_v43, %v3631_v49 }
 0x31a   :  { %v7923_v55 = vsel %vm3624_vm7, %v3616_v45, %v3632_v58  ;;  %v7926_v60 = vsel %vm3625_vm8, %v3617_v48, %v3633_v19 }
 0x31b   :  { %7531 = dma.done.wait [#allocation5], 32768 }
 0x31c   :  { %7532 = vsyncadd [#allocation5], 4294934528  ;;  %v7928_v1 = vpack.c.bf16 %v3635_v31, %v3635_v31  ;;  %v7930_v2 = vpack.c.bf16 %v3637_v11, %v3637_v11  ;;  %v6857_v4 = vld [vmem:[#allocation2 + $0xe4] ss:$16 sps:$4 sm:$0xff]   ;;  %v6861_v6 = vld [vmem:[#allocation2 + $0xe0] ss:$16 sps:$4 sm:$0xff]  }
 0x31d   :  { %v6859_v37 = vld [vmem:[#allocation2 + $0x2e4] ss:$16 sps:$4 sm:$0xff]   ;;  %5212 = vmatprep.subr.bf16.mxu0 %v6857_v4  ;;  %v6862_v7 = vld [vmem:[#allocation2 + $0x2e0] ss:$16 sps:$4 sm:$0xff]  }
 0x31e   :  { %5244 = vmatprep.mubr.bf16.mxu0 %v7928_v1  ;;  %5285 = vmatprep.mubr.bf16.mxu1 %v7930_v2  ;;  %v6863_v9 = vld [vmem:[#allocation2 + $0xc4] ss:$16 sps:$4 sm:$0xff]   ;;  %v6867_v17 = vld [vmem:[#allocation2 + $0xc0] ss:$16 sps:$4 sm:$0xff]  }
 0x31f   :  { %5253 = vmatprep.subr.bf16.mxu1 %v6859_v37  ;;  %5213 = vmatpush1.bf16.msra.mxu0 %v6861_v6  ;;  %v6865_v16 = vld [vmem:[#allocation2 + $0x2c4] ss:$16 sps:$4 sm:$0xff]   ;;  %v6868_v21 = vld [vmem:[#allocation2 + $0x2c0] ss:$16 sps:$4 sm:$0xff]  }
 0x320   :  { %5254 = vmatpush1.bf16.msra.mxu1 %v6862_v7  ;;  %5214 = vmatprep.subr.bf16.mxu0 %v6863_v9  ;;  %v6869_v59 = vld [vmem:[#allocation2 + $0xa4] ss:$16 sps:$4 sm:$0xff]   ;;  %v6873_v50 = vld [vmem:[#allocation2 + $0xa0] ss:$16 sps:$4 sm:$0xff]  }
 0x321   :  { %5255 = vmatprep.subr.bf16.mxu1 %v6865_v16  ;;  %v6871_v35 = vld [vmem:[#allocation2 + $0x2a4] ss:$16 sps:$4 sm:$0xff]   ;;  %v6874_v56 = vld [vmem:[#allocation2 + $0x2a0] ss:$16 sps:$4 sm:$0xff]  }
 0x322   :  { %v6875_v41 = vld [vmem:[#allocation2 + $0x84] ss:$16 sps:$4 sm:$0xff]   ;;  %v6879_v5 = vld [vmem:[#allocation2 + $0x80] ss:$16 sps:$4 sm:$0xff]  }
 0x323   :  { %5215 = vmatpush1.bf16.msra.mxu0 %v6867_v17  ;;  %v6877_v30 = vld [vmem:[#allocation2 + $0x284] ss:$16 sps:$4 sm:$0xff]   ;;  %v6880_v27 = vld [vmem:[#allocation2 + $0x280] ss:$16 sps:$4 sm:$0xff]  }
 0x324   :  { %5256 = vmatpush1.bf16.msra.mxu1 %v6868_v21  ;;  %5216 = vmatprep.subr.bf16.mxu0 %v6869_v59  ;;  %v6881_v15 = vld [vmem:[#allocation2 + $0x64] ss:$16 sps:$4 sm:$0xff]   ;;  %v6885_v22 = vld [vmem:[#allocation2 + $0x60] ss:$16 sps:$4 sm:$0xff]  }
 0x325   :  { %5257 = vmatprep.subr.bf16.mxu1 %v6871_v35  ;;  %v6883_v24 = vld [vmem:[#allocation2 + $0x264] ss:$16 sps:$4 sm:$0xff]   ;;  %v6886_v51 = vld [vmem:[#allocation2 + $0x260] ss:$16 sps:$4 sm:$0xff]  }
 0x326   :  { %v6887_v10 = vld [vmem:[#allocation2 + $0x44] ss:$16 sps:$4 sm:$0xff]   ;;  %v6891_v44 = vld [vmem:[#allocation2 + $0x40] ss:$16 sps:$4 sm:$0xff]  }
 0x327   :  { %5217 = vmatpush1.bf16.msra.mxu0 %v6873_v50  ;;  %v6889_v18 = vld [vmem:[#allocation2 + $0x244] ss:$16 sps:$4 sm:$0xff]   ;;  %v6892_v53 = vld [vmem:[#allocation2 + $0x240] ss:$16 sps:$4 sm:$0xff]  }
 0x328   :  { %5258 = vmatpush1.bf16.msra.mxu1 %v6874_v56  ;;  %5218 = vmatprep.subr.bf16.mxu0 %v6875_v41  ;;  %v6893_v25 = vld [vmem:[#allocation2 + $0x24] ss:$16 sps:$4 sm:$0xff]   ;;  %v6897_v47 = vld [vmem:[#allocation2 + $0x20] ss:$16 sps:$4 sm:$0xff]  }
 0x329   :  { %5259 = vmatprep.subr.bf16.mxu1 %v6877_v30  ;;  %v6895_v40 = vld [vmem:[#allocation2 + $0x224] ss:$16 sps:$4 sm:$0xff]   ;;  %v6898_v33 = vld [vmem:[#allocation2 + $0x220] ss:$16 sps:$4 sm:$0xff]  }
 0x32a   :  { %v6899_v29 = vld [vmem:[#allocation2 + $0x4] ss:$16 sps:$4 sm:$0xff]   ;;  %v6903_v38 = vld [vmem:[#allocation2] ss:$16 sps:$4 sm:$0xff]  }
 0x32b   :  { %5219 = vmatpush1.bf16.msra.mxu0 %v6879_v5  ;;  %v6901_v32 = vld [vmem:[#allocation2 + $0x204] ss:$16 sps:$4 sm:$0xff]   ;;  %v6904_v26 = vld [vmem:[#allocation2 + $0x200] ss:$16 sps:$4 sm:$0xff]   ;;  %v7936_v5 = vpack.c.bf16 %v7909_v52, %v7909_v52  ;;  %v7948_v52 = vpack.c.bf16 %v7926_v60, %v7926_v60 }
 0x32c   :  { %5260 = vmatpush1.bf16.msra.mxu1 %v6880_v27  ;;  %5220 = vmatprep.subr.bf16.mxu0 %v6881_v15  ;;  %v6905_v34 = vld [vmem:[#allocation2 + $0x1e4] ss:$16 sps:$4 sm:$0xff]   ;;  %v6909_v8 = vld [vmem:[#allocation2 + $0x1e0] ss:$16 sps:$4 sm:$0xff]   ;;  %v7940_v27 = vpack.c.bf16 %v7913_v54, %v7913_v54 }
 0x32d   :  { %5261 = vmatprep.subr.bf16.mxu1 %v6883_v24  ;;  %v6907_v36 = vld [vmem:[#allocation2 + $0x3e4] ss:$16 sps:$4 sm:$0xff]   ;;  %v6910_v57 = vld [vmem:[#allocation2 + $0x3e0] ss:$16 sps:$4 sm:$0xff]  }
 0x32e   :  { %v6911_v39 = vld [vmem:[#allocation2 + $0x1c4] ss:$16 sps:$4 sm:$0xff]   ;;  %v6915_v0 = vld [vmem:[#allocation2 + $0x1c0] ss:$16 sps:$4 sm:$0xff]  }
 0x32f   :  { %5221 = vmatpush1.bf16.msra.mxu0 %v6885_v22  ;;  %v6913_v42 = vld [vmem:[#allocation2 + $0x3c4] ss:$16 sps:$4 sm:$0xff]   ;;  %v6916_v43 = vld [vmem:[#allocation2 + $0x3c0] ss:$16 sps:$4 sm:$0xff]  }
 0x330   :  { %5262 = vmatpush1.bf16.msra.mxu1 %v6886_v51  ;;  %5222 = vmatprep.subr.bf16.mxu0 %v6887_v10  ;;  %v6917_v45 = vld [vmem:[#allocation2 + $0x1a4] ss:$16 sps:$4 sm:$0xff]   ;;  %v6921_v28 = vld [vmem:[#allocation2 + $0x1a0] ss:$16 sps:$4 sm:$0xff]   ;;  %v7944_v10 = vpack.c.bf16 %v7920_v14, %v7920_v14 }
 0x331   :  { %5263 = vmatprep.subr.bf16.mxu1 %v6889_v18  ;;  %v6919_v48 = vld [vmem:[#allocation2 + $0x3a4] ss:$16 sps:$4 sm:$0xff]   ;;  %v6922_v23 = vld [vmem:[#allocation2 + $0x3a0] ss:$16 sps:$4 sm:$0xff]  }
 0x332   :  { %v6923_v61 = vld [vmem:[#allocation2 + $0x184] ss:$16 sps:$4 sm:$0xff]   ;;  %v6927_v46 = vld [vmem:[#allocation2 + $0x180] ss:$16 sps:$4 sm:$0xff]  }
 0x333   :  { %5223 = vmatpush1.bf16.msra.mxu0 %v6891_v44  ;;  %v6925_v63 = vld [vmem:[#allocation2 + $0x384] ss:$16 sps:$4 sm:$0xff]   ;;  %v6928_v49 = vld [vmem:[#allocation2 + $0x380] ss:$16 sps:$4 sm:$0xff]  }
 0x334   :  { %5264 = vmatpush1.bf16.msra.mxu1 %v6892_v53  ;;  %5224 = vmatprep.subr.bf16.mxu0 %v6893_v25  ;;  %v6929_v58 = vld [vmem:[#allocation2 + $0x164] ss:$16 sps:$4 sm:$0xff]   ;;  %v6933_v31 = vld [vmem:[#allocation2 + $0x160] ss:$16 sps:$4 sm:$0xff]  }
 0x335   :  { %5265 = vmatprep.subr.bf16.mxu1 %v6895_v40  ;;  %v6931_v19 = vld [vmem:[#allocation2 + $0x364] ss:$16 sps:$4 sm:$0xff]   ;;  %v6934_v11 = vld [vmem:[#allocation2 + $0x360] ss:$16 sps:$4 sm:$0xff]  }
 0x336   :  { %v6935_v4 = vld [vmem:[#allocation2 + $0x144] ss:$16 sps:$4 sm:$0xff]   ;;  %v6939_v6 = vld [vmem:[#allocation2 + $0x140] ss:$16 sps:$4 sm:$0xff]  }
 0x337   :  { %5225 = vmatpush1.bf16.msra.mxu0 %v6897_v47  ;;  %v6937_v37 = vld [vmem:[#allocation2 + $0x344] ss:$16 sps:$4 sm:$0xff]   ;;  %v6940_v7 = vld [vmem:[#allocation2 + $0x340] ss:$16 sps:$4 sm:$0xff]  }
 0x338   :  { %5266 = vmatpush1.bf16.msra.mxu1 %v6898_v33  ;;  %5226 = vmatprep.subr.bf16.mxu0 %v6899_v29  ;;  %v6941_v9 = vld [vmem:[#allocation2 + $0x124] ss:$16 sps:$4 sm:$0xff]   ;;  %v6945_v17 = vld [vmem:[#allocation2 + $0x120] ss:$16 sps:$4 sm:$0xff]  }
 0x339   :  { %5267 = vmatprep.subr.bf16.mxu1 %v6901_v32  ;;  %v6943_v16 = vld [vmem:[#allocation2 + $0x324] ss:$16 sps:$4 sm:$0xff]   ;;  %v6946_v21 = vld [vmem:[#allocation2 + $0x320] ss:$16 sps:$4 sm:$0xff]  }
 0x33a   :  { %v6947_v59 = vld [vmem:[#allocation2 + $0x104] ss:$16 sps:$4 sm:$0xff]   ;;  %v6951_v50 = vld [vmem:[#allocation2 + $0x100] ss:$16 sps:$4 sm:$0xff]  }
 0x33b   :  { %5227 = vmatpush1.bf16.msra.mxu0 %v6903_v38  ;;  %v6949_v35 = vld [vmem:[#allocation2 + $0x304] ss:$16 sps:$4 sm:$0xff]   ;;  %v6952_v56 = vld [vmem:[#allocation2 + $0x300] ss:$16 sps:$4 sm:$0xff]  }
 0x33c   :  { %5268 = vmatpush1.bf16.msra.mxu1 %v6904_v26  ;;  %5228 = vmatprep.subr.bf16.mxu0 %v6905_v34  ;;  %v6955_v41 = vld [vmem:[#allocation2 + $0x4e4] ss:$16 sps:$4 sm:$0xff]   ;;  %v6953_v15 = vld [vmem:[#allocation2 + $0x4e0] ss:$16 sps:$4 sm:$0xff]  }
 0x33d   :  { %5269 = vmatprep.subr.bf16.mxu1 %v6907_v36  ;;  %v6958_v30 = vld [vmem:[#allocation2 + $0x6e4] ss:$16 sps:$4 sm:$0xff]   ;;  %v6956_v24 = vld [vmem:[#allocation2 + $0x6e0] ss:$16 sps:$4 sm:$0xff]  }
 0x33e   :  { %v6961_v22 = vld [vmem:[#allocation2 + $0x4c4] ss:$16 sps:$4 sm:$0xff]   ;;  %v6959_v54 = vld [vmem:[#allocation2 + $0x4c0] ss:$16 sps:$4 sm:$0xff]  }
 0x33f   :  { %5229 = vmatpush2.bf16.msra.mxu0 %v6909_v8  ;;  %v6964_v51 = vld [vmem:[#allocation2 + $0x6c4] ss:$16 sps:$4 sm:$0xff]   ;;  %v6962_v18 = vld [vmem:[#allocation2 + $0x6c0] ss:$16 sps:$4 sm:$0xff]  }
 0x340   :  { %5270 = vmatpush2.bf16.msra.mxu1 %v6910_v57  ;;  %5230 = vmatprep.subr.bf16.mxu0 %v6911_v39  ;;  %v6967_v44 = vld [vmem:[#allocation2 + $0x4a4] ss:$16 sps:$4 sm:$0xff]   ;;  %v6965_v14 = vld [vmem:[#allocation2 + $0x4a0] ss:$16 sps:$4 sm:$0xff]  }
 0x341   :  { %5271 = vmatprep.subr.bf16.mxu1 %v6913_v42  ;;  %v6970_v53 = vld [vmem:[#allocation2 + $0x6a4] ss:$16 sps:$4 sm:$0xff]   ;;  %v6968_v25 = vld [vmem:[#allocation2 + $0x6a0] ss:$16 sps:$4 sm:$0xff]  }
 0x342   :  { %v6973_v60 = vld [vmem:[#allocation2 + $0x484] ss:$16 sps:$4 sm:$0xff]   ;;  %v6971_v47 = vld [vmem:[#allocation2 + $0x480] ss:$16 sps:$4 sm:$0xff]  }
 0x343   :  { %5231 = vmatpush2.bf16.msra.mxu0 %v6915_v0  ;;  %v6976_v40 = vld [vmem:[#allocation2 + $0x684] ss:$16 sps:$4 sm:$0xff]   ;;  %v6974_v33 = vld [vmem:[#allocation2 + $0x680] ss:$16 sps:$4 sm:$0xff]  }
 0x344   :  { %5272 = vmatpush2.bf16.msra.mxu1 %v6916_v43  ;;  %5232 = vmatprep.subr.bf16.mxu0 %v6917_v45  ;;  %v6979_v29 = vld [vmem:[#allocation2 + $0x464] ss:$16 sps:$4 sm:$0xff]   ;;  %v6977_v38 = vld [vmem:[#allocation2 + $0x460] ss:$16 sps:$4 sm:$0xff]  }
 0x345   :  { %5273 = vmatprep.subr.bf16.mxu1 %v6919_v48  ;;  %v6982_v32 = vld [vmem:[#allocation2 + $0x664] ss:$16 sps:$4 sm:$0xff]   ;;  %v6980_v26 = vld [vmem:[#allocation2 + $0x660] ss:$16 sps:$4 sm:$0xff]  }
 0x346   :  { %v6985_v34 = vld [vmem:[#allocation2 + $0x444] ss:$16 sps:$4 sm:$0xff]   ;;  %v6983_v8 = vld [vmem:[#allocation2 + $0x440] ss:$16 sps:$4 sm:$0xff]  }
 0x347   :  { %5233 = vmatpush2.bf16.msra.mxu0 %v6921_v28  ;;  %v6988_v36 = vld [vmem:[#allocation2 + $0x644] ss:$16 sps:$4 sm:$0xff]   ;;  %v6986_v57 = vld [vmem:[#allocation2 + $0x640] ss:$16 sps:$4 sm:$0xff]  }
 0x348   :  { %5274 = vmatpush2.bf16.msra.mxu1 %v6922_v23  ;;  %5234 = vmatprep.subr.bf16.mxu0 %v6923_v61  ;;  %v6991_v39 = vld [vmem:[#allocation2 + $0x424] ss:$16 sps:$4 sm:$0xff]   ;;  %v6989_v0 = vld [vmem:[#allocation2 + $0x420] ss:$16 sps:$4 sm:$0xff]  }
 0x349   :  { %5275 = vmatprep.subr.bf16.mxu1 %v6925_v63  ;;  %v6994_v42 = vld [vmem:[#allocation2 + $0x624] ss:$16 sps:$4 sm:$0xff]   ;;  %v6992_v43 = vld [vmem:[#allocation2 + $0x620] ss:$16 sps:$4 sm:$0xff]  }
 0x34a   :  { %v6997_v45 = vld [vmem:[#allocation2 + $0x404] ss:$16 sps:$4 sm:$0xff]   ;;  %v6995_v28 = vld [vmem:[#allocation2 + $0x400] ss:$16 sps:$4 sm:$0xff]  }
 0x34b   :  { %5235 = vmatpush2.bf16.msra.mxu0 %v6927_v46  ;;  %v7000_v48 = vld [vmem:[#allocation2 + $0x604] ss:$16 sps:$4 sm:$0xff]   ;;  %v6998_v23 = vld [vmem:[#allocation2 + $0x600] ss:$16 sps:$4 sm:$0xff]  }
 0x34c   :  { %5276 = vmatpush2.bf16.msra.mxu1 %v6928_v49  ;;  %5236 = vmatprep.subr.bf16.mxu0 %v6929_v58  ;;  %v7003_v61 = vld [vmem:[#allocation2 + $0x5e4] ss:$16 sps:$4 sm:$0xff]   ;;  %v7001_v46 = vld [vmem:[#allocation2 + $0x5e0] ss:$16 sps:$4 sm:$0xff]  }
 0x34d   :  { %5277 = vmatprep.subr.bf16.mxu1 %v6931_v19  ;;  %v7006_v63 = vld [vmem:[#allocation2 + $0x7e4] ss:$16 sps:$4 sm:$0xff]   ;;  %v7004_v49 = vld [vmem:[#allocation2 + $0x7e0] ss:$16 sps:$4 sm:$0xff]  }
 0x34e   :  { %v7009_v58 = vld [vmem:[#allocation2 + $0x5c4] ss:$16 sps:$4 sm:$0xff]  }
 0x34f   :  { %5237 = vmatpush2.bf16.msra.mxu0 %v6933_v31  ;;  %v7012_v19 = vld [vmem:[#allocation2 + $0x7c4] ss:$16 sps:$4 sm:$0xff]   ;;  %v7007_v31 = vld [vmem:[#allocation2 + $0x5c0] ss:$16 sps:$4 sm:$0xff]  }
 0x350   :  { %5278 = vmatpush2.bf16.msra.mxu1 %v6934_v11  ;;  %5238 = vmatprep.subr.bf16.mxu0 %v6935_v4  ;;  %v7010_v11 = vld [vmem:[#allocation2 + $0x7c0] ss:$16 sps:$4 sm:$0xff]   ;;  %v7015_v4 = vld [vmem:[#allocation2 + $0x5a4] ss:$16 sps:$4 sm:$0xff]  }
 0x351   :  { %5279 = vmatprep.subr.bf16.mxu1 %v6937_v37  ;;  %v7018_v37 = vld [vmem:[#allocation2 + $0x7a4] ss:$16 sps:$4 sm:$0xff]  }
 0x353   :  { %5239 = vmatpush2.bf16.msra.mxu0 %v6939_v6  ;;  %v7013_v6 = vld [vmem:[#allocation2 + $0x5a0] ss:$16 sps:$4 sm:$0xff]  }
 0x354   :  { %5280 = vmatpush2.bf16.msra.mxu1 %v6940_v7  ;;  %5240 = vmatprep.subr.bf16.mxu0 %v6941_v9  ;;  %v7016_v7 = vld [vmem:[#allocation2 + $0x7a0] ss:$16 sps:$4 sm:$0xff]   ;;  %v7021_v9 = vld [vmem:[#allocation2 + $0x584] ss:$16 sps:$4 sm:$0xff]  }
 0x355   :  { %5281 = vmatprep.subr.bf16.mxu1 %v6943_v16  ;;  %v7024_v16 = vld [vmem:[#allocation2 + $0x784] ss:$16 sps:$4 sm:$0xff]  }
 0x357   :  { %5241 = vmatpush2.bf16.msra.mxu0 %v6945_v17  ;;  %v7019_v17 = vld [vmem:[#allocation2 + $0x580] ss:$16 sps:$4 sm:$0xff]  }
 0x358   :  { %5282 = vmatpush2.bf16.msra.mxu1 %v6946_v21  ;;  %5242 = vmatprep.subr.bf16.mxu0 %v6947_v59  ;;  %v7022_v21 = vld [vmem:[#allocation2 + $0x780] ss:$16 sps:$4 sm:$0xff]   ;;  %v7027_v59 = vld [vmem:[#allocation2 + $0x564] ss:$16 sps:$4 sm:$0xff]  }
 0x359   :  { %5283 = vmatprep.subr.bf16.mxu1 %v6949_v35  ;;  %v7030_v35 = vld [vmem:[#allocation2 + $0x764] ss:$16 sps:$4 sm:$0xff]  }
 0x35b   :  { %5243 = vmatpush2.bf16.msra.mxu0 %v6951_v50  ;;  %v7025_v50 = vld [vmem:[#allocation2 + $0x560] ss:$16 sps:$4 sm:$0xff]  }
 0x35c   :  { %5284 = vmatpush2.bf16.msra.mxu1 %v6952_v56  ;;  %5294 = vmatprep.subr.bf16.mxu0 %v6955_v41  ;;  %v7028_v56 = vld [vmem:[#allocation2 + $0x760] ss:$16 sps:$4 sm:$0xff]   ;;  %v7033_v41 = vld [vmem:[#allocation2 + $0x544] ss:$16 sps:$4 sm:$0xff]  }
 0x35d   :  { %5335 = vmatprep.subr.bf16.mxu1 %v6958_v30  ;;  %v7036_v30 = vld [vmem:[#allocation2 + $0x744] ss:$16 sps:$4 sm:$0xff]  }
 0x35e   :  { %5245 = vmatmul.mubr.bf16.vlgmr.msra.gmra.mxu0 %v7936_v5 }
 0x35f   :  { %5286 = vmatmul.mubr.bf16.vlgmr.msra.gmra.mxu1 %v7940_v27  ;;  %5295 = vmatpush1.bf16.msra.mxu0 %v6953_v15  ;;  %v7031_v15 = vld [vmem:[#allocation2 + $0x540] ss:$16 sps:$4 sm:$0xff]  }
 0x360   :  { %5336 = vmatpush1.bf16.msra.mxu1 %v6956_v24  ;;  %5296 = vmatprep.subr.bf16.mxu0 %v6961_v22  ;;  %v7034_v24 = vld [vmem:[#allocation2 + $0x740] ss:$16 sps:$4 sm:$0xff]   ;;  %v7039_v22 = vld [vmem:[#allocation2 + $0x524] ss:$16 sps:$4 sm:$0xff]  }
 0x361   :  { %5337 = vmatprep.subr.bf16.mxu1 %v6964_v51  ;;  %5326 = vmatprep.mubr.bf16.mxu0 %v7944_v10  ;;  %v7042_v51 = vld [vmem:[#allocation2 + $0x724] ss:$16 sps:$4 sm:$0xff]  }
 0x362   :  { %5367 = vmatprep.mubr.bf16.mxu1 %v7948_v52 }
 0x363   :  { %5297 = vmatpush1.bf16.msra.mxu0 %v6959_v54  ;;  %v7037_v54 = vld [vmem:[#allocation2 + $0x520] ss:$16 sps:$4 sm:$0xff]  }
 0x364   :  { %5338 = vmatpush1.bf16.msra.mxu1 %v6962_v18  ;;  %5298 = vmatprep.subr.bf16.mxu0 %v6967_v44  ;;  %v7040_v18 = vld [vmem:[#allocation2 + $0x720] ss:$16 sps:$4 sm:$0xff]   ;;  %v7045_v44 = vld [vmem:[#allocation2 + $0x504] ss:$16 sps:$4 sm:$0xff]  }
 0x365   :  { %5339 = vmatprep.subr.bf16.mxu1 %v6970_v53  ;;  %v7048_v53 = vld [vmem:[#allocation2 + $0x704] ss:$16 sps:$4 sm:$0xff]  }
 0x367   :  { %5299 = vmatpush1.bf16.msra.mxu0 %v6965_v14  ;;  %v7043_v14 = vld [vmem:[#allocation2 + $0x500] ss:$16 sps:$4 sm:$0xff]  }
 0x368   :  { %5340 = vmatpush1.bf16.msra.mxu1 %v6968_v25  ;;  %5300 = vmatprep.subr.bf16.mxu0 %v6973_v60  ;;  %v7046_v25 = vld [vmem:[#allocation2 + $0x700] ss:$16 sps:$4 sm:$0xff]   ;;  %v7051_v60 = vld [vmem:[#allocation2 + $0xec] ss:$16 sps:$4 sm:$0xff]  }
 0x369   :  { %5341 = vmatprep.subr.bf16.mxu1 %v6976_v40  ;;  %v7054_v40 = vld [vmem:[#allocation2 + $0x2ec] ss:$16 sps:$4 sm:$0xff]  }
 0x36b   :  { %5301 = vmatpush1.bf16.msra.mxu0 %v6971_v47  ;;  %v7956_v47 = vpack.c.bf16 %v7917_v12, %v7917_v12  ;;  %v7063_v12 = vld [vmem:[#allocation2 + $0xac] ss:$16 sps:$4 sm:$0xff]  }
 0x36c   :  { %5342 = vmatpush1.bf16.msra.mxu1 %v6974_v33  ;;  %5302 = vmatprep.subr.bf16.mxu0 %v6979_v29  ;;  %v7960_v33 = vpack.c.bf16 %v7923_v55, %v7923_v55  ;;  %v7049_v29 = vld [vmem:[#allocation2 + $0xe8] ss:$16 sps:$4 sm:$0xff]   ;;  %v7066_v55 = vld [vmem:[#allocation2 + $0x2ac] ss:$16 sps:$4 sm:$0xff]  }
 0x36d   :  { %5343 = vmatprep.subr.bf16.mxu1 %v6982_v32  ;;  %v7052_v32 = vld [vmem:[#allocation2 + $0x2e8] ss:$16 sps:$4 sm:$0xff]  }
 0x36f   :  { %5303 = vmatpush1.bf16.msra.mxu0 %v6977_v38  ;;  %v7057_v38 = vld [vmem:[#allocation2 + $0xcc] ss:$16 sps:$4 sm:$0xff]  }
 0x370   :  { %5344 = vmatpush1.bf16.msra.mxu1 %v6980_v26  ;;  %5304 = vmatprep.subr.bf16.mxu0 %v6985_v34  ;;  %v7060_v26 = vld [vmem:[#allocation2 + $0x2cc] ss:$16 sps:$4 sm:$0xff]   ;;  %v7055_v34 = vld [vmem:[#allocation2 + $0xc8] ss:$16 sps:$4 sm:$0xff]  }
 0x371   :  { %5345 = vmatprep.subr.bf16.mxu1 %v6988_v36  ;;  %v7058_v36 = vld [vmem:[#allocation2 + $0x2c8] ss:$16 sps:$4 sm:$0xff]  }
 0x373   :  { %5305 = vmatpush1.bf16.msra.mxu0 %v6983_v8  ;;  %v7061_v8 = vld [vmem:[#allocation2 + $0xa8] ss:$16 sps:$4 sm:$0xff]  }
 0x374   :  { %5346 = vmatpush1.bf16.msra.mxu1 %v6986_v57  ;;  %5306 = vmatprep.subr.bf16.mxu0 %v6991_v39  ;;  %v7064_v57 = vld [vmem:[#allocation2 + $0x2a8] ss:$16 sps:$4 sm:$0xff]   ;;  %v7069_v39 = vld [vmem:[#allocation2 + $0x8c] ss:$16 sps:$4 sm:$0xff]  }
 0x375   :  { %5347 = vmatprep.subr.bf16.mxu1 %v6994_v42  ;;  %v7072_v42 = vld [vmem:[#allocation2 + $0x28c] ss:$16 sps:$4 sm:$0xff]  }
 0x377   :  { %5307 = vmatpush1.bf16.msra.mxu0 %v6989_v0  ;;  %v7067_v0 = vld [vmem:[#allocation2 + $0x88] ss:$16 sps:$4 sm:$0xff]  }
 0x378   :  { %5348 = vmatpush1.bf16.msra.mxu1 %v6992_v43  ;;  %5308 = vmatprep.subr.bf16.mxu0 %v6997_v45  ;;  %v7070_v43 = vld [vmem:[#allocation2 + $0x288] ss:$16 sps:$4 sm:$0xff]   ;;  %v7075_v45 = vld [vmem:[#allocation2 + $0x6c] ss:$16 sps:$4 sm:$0xff]  }
 0x379   :  { %5349 = vmatprep.subr.bf16.mxu1 %v7000_v48  ;;  %v7078_v48 = vld [vmem:[#allocation2 + $0x26c] ss:$16 sps:$4 sm:$0xff]  }
 0x37b   :  { %5309 = vmatpush1.bf16.msra.mxu0 %v6995_v28  ;;  %v7073_v28 = vld [vmem:[#allocation2 + $0x68] ss:$16 sps:$4 sm:$0xff]  }
 0x37c   :  { %5350 = vmatpush1.bf16.msra.mxu1 %v6998_v23  ;;  %5310 = vmatprep.subr.bf16.mxu0 %v7003_v61  ;;  %v7084_v23 = vld [vmem:[#allocation2 + $0x24c] ss:$16 sps:$4 sm:$0xff]   ;;  %v7079_v61 = vld [vmem:[#allocation2 + $0x48] ss:$16 sps:$4 sm:$0xff]  }
 0x37d   :  { %5351 = vmatprep.subr.bf16.mxu1 %v7006_v63  ;;  %v7082_v63 = vld [vmem:[#allocation2 + $0x248] ss:$16 sps:$4 sm:$0xff]  }
 0x37f   :  { %5311 = vmatpush2.bf16.msra.mxu0 %v7001_v46  ;;  %v7087_v46 = vld [vmem:[#allocation2 + $0x2c] ss:$16 sps:$4 sm:$0xff]  }
 0x380   :  { %5352 = vmatpush2.bf16.msra.mxu1 %v7004_v49  ;;  %5312 = vmatprep.subr.bf16.mxu0 %v7009_v58  ;;  %v7090_v49 = vld [vmem:[#allocation2 + $0x22c] ss:$16 sps:$4 sm:$0xff]   ;;  %v7085_v58 = vld [vmem:[#allocation2 + $0x28] ss:$16 sps:$4 sm:$0xff]  }
 0x381   :  { %5353 = vmatprep.subr.bf16.mxu1 %v7012_v19  ;;  %v7088_v19 = vld [vmem:[#allocation2 + $0x228] ss:$16 sps:$4 sm:$0xff]  }
 0x383   :  { %5313 = vmatpush2.bf16.msra.mxu0 %v7007_v31  ;;  %v7093_v31 = vld [vmem:[#allocation2 + $0xc] ss:$16 sps:$4 sm:$0xff]  }
 0x384   :  { %5354 = vmatpush2.bf16.msra.mxu1 %v7010_v11  ;;  %5314 = vmatprep.subr.bf16.mxu0 %v7015_v4  ;;  %v7096_v11 = vld [vmem:[#allocation2 + $0x20c] ss:$16 sps:$4 sm:$0xff]   ;;  %v7091_v4 = vld [vmem:[#allocation2 + $0x8] ss:$16 sps:$4 sm:$0xff]  }
 0x385   :  { %5355 = vmatprep.subr.bf16.mxu1 %v7018_v37  ;;  %v7094_v37 = vld [vmem:[#allocation2 + $0x208] ss:$16 sps:$4 sm:$0xff]  }
 0x387   :  { %5315 = vmatpush2.bf16.msra.mxu0 %v7013_v6  ;;  %v7099_v6 = vld [vmem:[#allocation2 + $0x1ec] ss:$16 sps:$4 sm:$0xff]  }
 0x388   :  { %5356 = vmatpush2.bf16.msra.mxu1 %v7016_v7  ;;  %5316 = vmatprep.subr.bf16.mxu0 %v7021_v9  ;;  %v7102_v7 = vld [vmem:[#allocation2 + $0x3ec] ss:$16 sps:$4 sm:$0xff]   ;;  %v7097_v9 = vld [vmem:[#allocation2 + $0x1e8] ss:$16 sps:$4 sm:$0xff]  }
 0x389   :  { %5357 = vmatprep.subr.bf16.mxu1 %v7024_v16  ;;  %v7100_v16 = vld [vmem:[#allocation2 + $0x3e8] ss:$16 sps:$4 sm:$0xff]  }
 0x38b   :  { %5317 = vmatpush2.bf16.msra.mxu0 %v7019_v17  ;;  %v7105_v17 = vld [vmem:[#allocation2 + $0x1cc] ss:$16 sps:$4 sm:$0xff]  }
 0x38c   :  { %5358 = vmatpush2.bf16.msra.mxu1 %v7022_v21  ;;  %5318 = vmatprep.subr.bf16.mxu0 %v7027_v59  ;;  %v7108_v21 = vld [vmem:[#allocation2 + $0x3cc] ss:$16 sps:$4 sm:$0xff]   ;;  %v7103_v59 = vld [vmem:[#allocation2 + $0x1c8] ss:$16 sps:$4 sm:$0xff]  }
 0x38d   :  { %5359 = vmatprep.subr.bf16.mxu1 %v7030_v35  ;;  %v7106_v35 = vld [vmem:[#allocation2 + $0x3c8] ss:$16 sps:$4 sm:$0xff]  }
 0x38f   :  { %5319 = vmatpush2.bf16.msra.mxu0 %v7025_v50  ;;  %v7111_v50 = vld [vmem:[#allocation2 + $0x1ac] ss:$16 sps:$4 sm:$0xff]  }
 0x390   :  { %5360 = vmatpush2.bf16.msra.mxu1 %v7028_v56  ;;  %5320 = vmatprep.subr.bf16.mxu0 %v7033_v41  ;;  %v7114_v56 = vld [vmem:[#allocation2 + $0x3ac] ss:$16 sps:$4 sm:$0xff]   ;;  %v7109_v41 = vld [vmem:[#allocation2 + $0x1a8] ss:$16 sps:$4 sm:$0xff]  }
 0x391   :  { %5361 = vmatprep.subr.bf16.mxu1 %v7036_v30  ;;  %v7112_v30 = vld [vmem:[#allocation2 + $0x3a8] ss:$16 sps:$4 sm:$0xff]  }
 0x393   :  { %5321 = vmatpush2.bf16.msra.mxu0 %v7031_v15  ;;  %v7117_v15 = vld [vmem:[#allocation2 + $0x18c] ss:$16 sps:$4 sm:$0xff]  }
 0x394   :  { %5362 = vmatpush2.bf16.msra.mxu1 %v7034_v24  ;;  %5322 = vmatprep.subr.bf16.mxu0 %v7039_v22  ;;  %v7120_v24 = vld [vmem:[#allocation2 + $0x38c] ss:$16 sps:$4 sm:$0xff]   ;;  %v7115_v22 = vld [vmem:[#allocation2 + $0x188] ss:$16 sps:$4 sm:$0xff]  }
 0x395   :  { %5363 = vmatprep.subr.bf16.mxu1 %v7042_v51  ;;  %v7118_v51 = vld [vmem:[#allocation2 + $0x388] ss:$16 sps:$4 sm:$0xff]  }
 0x397   :  { %5323 = vmatpush2.bf16.msra.mxu0 %v7037_v54  ;;  %v7123_v54 = vld [vmem:[#allocation2 + $0x16c] ss:$16 sps:$4 sm:$0xff]  }
 0x398   :  { %5364 = vmatpush2.bf16.msra.mxu1 %v7040_v18  ;;  %5324 = vmatprep.subr.bf16.mxu0 %v7045_v44  ;;  %v7126_v18 = vld [vmem:[#allocation2 + $0x36c] ss:$16 sps:$4 sm:$0xff]   ;;  %v7121_v44 = vld [vmem:[#allocation2 + $0x168] ss:$16 sps:$4 sm:$0xff]  }
 0x399   :  { %5365 = vmatprep.subr.bf16.mxu1 %v7048_v53  ;;  %v7124_v53 = vld [vmem:[#allocation2 + $0x368] ss:$16 sps:$4 sm:$0xff]  }
 0x39b   :  { %5325 = vmatpush2.bf16.msra.mxu0 %v7043_v14  ;;  %v7129_v14 = vld [vmem:[#allocation2 + $0x14c] ss:$16 sps:$4 sm:$0xff]  }
 0x39c   :  { %5366 = vmatpush2.bf16.msra.mxu1 %v7046_v25  ;;  %5376 = vmatprep.subr.bf16.mxu0 %v7051_v60  ;;  %v7132_v25 = vld [vmem:[#allocation2 + $0x34c] ss:$16 sps:$4 sm:$0xff]   ;;  %v7127_v60 = vld [vmem:[#allocation2 + $0x148] ss:$16 sps:$4 sm:$0xff]  }
 0x39d   :  { %5417 = vmatprep.subr.bf16.mxu1 %v7054_v40  ;;  %v7130_v40 = vld [vmem:[#allocation2 + $0x348] ss:$16 sps:$4 sm:$0xff]  }
 0x39e   :  { %5327 = vmatmul.mubr.bf16.vlgmr.msra.gmra.mxu0 %v7956_v47 }
 0x39f   :  { %5368 = vmatmul.mubr.bf16.vlgmr.msra.gmra.mxu1 %v7960_v33  ;;  %5377 = vmatpush1.bf16.msra.mxu0 %v7049_v29  ;;  %v7135_v29 = vld [vmem:[#allocation2 + $0x12c] ss:$16 sps:$4 sm:$0xff]  }
 0x3a0   :  { %5418 = vmatpush1.bf16.msra.mxu1 %v7052_v32  ;;  %5378 = vmatprep.subr.bf16.mxu0 %v7057_v38  ;;  %v7138_v32 = vld [vmem:[#allocation2 + $0x32c] ss:$16 sps:$4 sm:$0xff]   ;;  %v7133_v38 = vld [vmem:[#allocation2 + $0x128] ss:$16 sps:$4 sm:$0xff]  }
 0x3a1   :  { %5419 = vmatprep.subr.bf16.mxu1 %v7060_v26  ;;  %5408 = vmatprep.mubr.bf16.mxu0 %v7928_v1  ;;  %v7076_v1 = vld [vmem:[#allocation2 + $0x268] ss:$16 sps:$4 sm:$0xff]  }
 0x3a2   :  { %5449 = vmatprep.mubr.bf16.mxu1 %v7930_v2  ;;  %v7081_v2 = vld [vmem:[#allocation2 + $0x4c] ss:$16 sps:$4 sm:$0xff]   ;;  %v7136_v26 = vld [vmem:[#allocation2 + $0x328] ss:$16 sps:$4 sm:$0xff]  }
 0x3a3   :  { %5379 = vmatpush1.bf16.msra.mxu0 %v7055_v34  ;;  %v7141_v34 = vld [vmem:[#allocation2 + $0x10c] ss:$16 sps:$4 sm:$0xff]  }
 0x3a4   :  { %5420 = vmatpush1.bf16.msra.mxu1 %v7058_v36  ;;  %5380 = vmatprep.subr.bf16.mxu0 %v7063_v12  ;;  %v7144_v36 = vld [vmem:[#allocation2 + $0x30c] ss:$16 sps:$4 sm:$0xff]   ;;  %v7139_v12 = vld [vmem:[#allocation2 + $0x108] ss:$16 sps:$4 sm:$0xff]  }
 0x3a5   :  { %5421 = vmatprep.subr.bf16.mxu1 %v7066_v55  ;;  %v7142_v55 = vld [vmem:[#allocation2 + $0x308] ss:$16 sps:$4 sm:$0xff]  }
 0x3a7   :  { %5381 = vmatpush1.bf16.msra.mxu0 %v7061_v8  ;;  %v7147_v8 = vld [vmem:[#allocation2 + $0x4ec] ss:$16 sps:$4 sm:$0xff]  }
 0x3a8   :  { %5422 = vmatpush1.bf16.msra.mxu1 %v7064_v57  ;;  %5382 = vmatprep.subr.bf16.mxu0 %v7069_v39  ;;  %v7150_v57 = vld [vmem:[#allocation2 + $0x6ec] ss:$16 sps:$4 sm:$0xff]   ;;  %v7145_v39 = vld [vmem:[#allocation2 + $0x4e8] ss:$16 sps:$4 sm:$0xff]  }
 0x3a9   :  { %5423 = vmatprep.subr.bf16.mxu1 %v7072_v42  ;;  %v7148_v42 = vld [vmem:[#allocation2 + $0x6e8] ss:$16 sps:$4 sm:$0xff]  }
 0x3ab   :  { %5383 = vmatpush1.bf16.msra.mxu0 %v7067_v0  ;;  %v7153_v0 = vld [vmem:[#allocation2 + $0x4cc] ss:$16 sps:$4 sm:$0xff]  }
 0x3ac   :  { %5424 = vmatpush1.bf16.msra.mxu1 %v7070_v43  ;;  %5384 = vmatprep.subr.bf16.mxu0 %v7075_v45  ;;  %v7156_v43 = vld [vmem:[#allocation2 + $0x6cc] ss:$16 sps:$4 sm:$0xff]   ;;  %v7151_v45 = vld [vmem:[#allocation2 + $0x4c8] ss:$16 sps:$4 sm:$0xff]  }
 0x3ad   :  { %5425 = vmatprep.subr.bf16.mxu1 %v7078_v48  ;;  %v7154_v48 = vld [vmem:[#allocation2 + $0x6c8] ss:$16 sps:$4 sm:$0xff]  }
 0x3af   :  { %5385 = vmatpush1.bf16.msra.mxu0 %v7073_v28  ;;  %v7159_v28 = vld [vmem:[#allocation2 + $0x4ac] ss:$16 sps:$4 sm:$0xff]  }
 0x3b0   :  { %5426 = vmatpush1.bf16.msra.mxu1 %v7076_v1  ;;  %5386 = vmatprep.subr.bf16.mxu0 %v7081_v2  ;;  %v7162_v1 = vld [vmem:[#allocation2 + $0x6ac] ss:$16 sps:$4 sm:$0xff]   ;;  %v7157_v2 = vld [vmem:[#allocation2 + $0x4a8] ss:$16 sps:$4 sm:$0xff]  }
 0x3b1   :  { %5427 = vmatprep.subr.bf16.mxu1 %v7084_v23  ;;  %v7160_v23 = vld [vmem:[#allocation2 + $0x6a8] ss:$16 sps:$4 sm:$0xff]  }
 0x3b3   :  { %5387 = vmatpush1.bf16.msra.mxu0 %v7079_v61  ;;  %v7163_v61 = vld [vmem:[#allocation2 + $0x488] ss:$16 sps:$4 sm:$0xff]  }
 0x3b4   :  { %5428 = vmatpush1.bf16.msra.mxu1 %v7082_v63  ;;  %5388 = vmatprep.subr.bf16.mxu0 %v7087_v46  ;;  %v7166_v63 = vld [vmem:[#allocation2 + $0x688] ss:$16 sps:$4 sm:$0xff]   ;;  %v7171_v46 = vld [vmem:[#allocation2 + $0x46c] ss:$16 sps:$4 sm:$0xff]  }
 0x3b5   :  { %5429 = vmatprep.subr.bf16.mxu1 %v7090_v49  ;;  %v7174_v49 = vld [vmem:[#allocation2 + $0x66c] ss:$16 sps:$4 sm:$0xff]  }
 0x3b7   :  { %5389 = vmatpush1.bf16.msra.mxu0 %v7085_v58  ;;  %v7177_v58 = vld [vmem:[#allocation2 + $0x44c] ss:$16 sps:$4 sm:$0xff]  }
 0x3b8   :  { %5430 = vmatpush1.bf16.msra.mxu1 %v7088_v19  ;;  %5390 = vmatprep.subr.bf16.mxu0 %v7093_v31  ;;  %v7180_v19 = vld [vmem:[#allocation2 + $0x64c] ss:$16 sps:$4 sm:$0xff]   ;;  %v7175_v31 = vld [vmem:[#allocation2 + $0x448] ss:$16 sps:$4 sm:$0xff]  }
 0x3b9   :  { %5431 = vmatprep.subr.bf16.mxu1 %v7096_v11  ;;  %v7178_v11 = vld [vmem:[#allocation2 + $0x648] ss:$16 sps:$4 sm:$0xff]  }
 0x3bb   :  { %5391 = vmatpush1.bf16.msra.mxu0 %v7091_v4  ;;  %v7183_v4 = vld [vmem:[#allocation2 + $0x42c] ss:$16 sps:$4 sm:$0xff]  }
 0x3bc   :  { %5432 = vmatpush1.bf16.msra.mxu1 %v7094_v37  ;;  %5392 = vmatprep.subr.bf16.mxu0 %v7099_v6  ;;  %v7186_v37 = vld [vmem:[#allocation2 + $0x62c] ss:$16 sps:$4 sm:$0xff]   ;;  %v7181_v6 = vld [vmem:[#allocation2 + $0x428] ss:$16 sps:$4 sm:$0xff]  }
 0x3bd   :  { %5433 = vmatprep.subr.bf16.mxu1 %v7102_v7  ;;  %v7184_v7 = vld [vmem:[#allocation2 + $0x628] ss:$16 sps:$4 sm:$0xff]  }
 0x3bf   :  { %5393 = vmatpush2.bf16.msra.mxu0 %v7097_v9  ;;  %v7189_v9 = vld [vmem:[#allocation2 + $0x40c] ss:$16 sps:$4 sm:$0xff]  }
 0x3c0   :  { %5434 = vmatpush2.bf16.msra.mxu1 %v7100_v16  ;;  %5394 = vmatprep.subr.bf16.mxu0 %v7105_v17  ;;  %v7192_v16 = vld [vmem:[#allocation2 + $0x60c] ss:$16 sps:$4 sm:$0xff]   ;;  %v7187_v17 = vld [vmem:[#allocation2 + $0x408] ss:$16 sps:$4 sm:$0xff]  }
 0x3c1   :  { %5435 = vmatprep.subr.bf16.mxu1 %v7108_v21  ;;  %v7190_v21 = vld [vmem:[#allocation2 + $0x608] ss:$16 sps:$4 sm:$0xff]  }
 0x3c3   :  { %5395 = vmatpush2.bf16.msra.mxu0 %v7103_v59  ;;  %v7195_v59 = vld [vmem:[#allocation2 + $0x5ec] ss:$16 sps:$4 sm:$0xff]  }
 0x3c4   :  { %5436 = vmatpush2.bf16.msra.mxu1 %v7106_v35  ;;  %5396 = vmatprep.subr.bf16.mxu0 %v7111_v50  ;;  %v7198_v35 = vld [vmem:[#allocation2 + $0x7ec] ss:$16 sps:$4 sm:$0xff]   ;;  %v7193_v50 = vld [vmem:[#allocation2 + $0x5e8] ss:$16 sps:$4 sm:$0xff]  }
 0x3c5   :  { %5437 = vmatprep.subr.bf16.mxu1 %v7114_v56  ;;  %v7196_v56 = vld [vmem:[#allocation2 + $0x7e8] ss:$16 sps:$4 sm:$0xff]  }
 0x3c7   :  { %5397 = vmatpush2.bf16.msra.mxu0 %v7109_v41  ;;  %v7201_v41 = vld [vmem:[#allocation2 + $0x5cc] ss:$16 sps:$4 sm:$0xff]  }
 0x3c8   :  { %5438 = vmatpush2.bf16.msra.mxu1 %v7112_v30  ;;  %5398 = vmatprep.subr.bf16.mxu0 %v7117_v15  ;;  %v7204_v30 = vld [vmem:[#allocation2 + $0x7cc] ss:$16 sps:$4 sm:$0xff]   ;;  %v7199_v15 = vld [vmem:[#allocation2 + $0x5c8] ss:$16 sps:$4 sm:$0xff]  }
 0x3c9   :  { %5439 = vmatprep.subr.bf16.mxu1 %v7120_v24  ;;  %v7202_v24 = vld [vmem:[#allocation2 + $0x7c8] ss:$16 sps:$4 sm:$0xff]  }
 0x3cb   :  { %5399 = vmatpush2.bf16.msra.mxu0 %v7115_v22  ;;  %v7207_v22 = vld [vmem:[#allocation2 + $0x5ac] ss:$16 sps:$4 sm:$0xff]  }
 0x3cc   :  { %5440 = vmatpush2.bf16.msra.mxu1 %v7118_v51  ;;  %5400 = vmatprep.subr.bf16.mxu0 %v7123_v54  ;;  %v7210_v51 = vld [vmem:[#allocation2 + $0x7ac] ss:$16 sps:$4 sm:$0xff]   ;;  %v7205_v54 = vld [vmem:[#allocation2 + $0x5a8] ss:$16 sps:$4 sm:$0xff]  }
 0x3cd   :  { %5441 = vmatprep.subr.bf16.mxu1 %v7126_v18  ;;  %v7208_v18 = vld [vmem:[#allocation2 + $0x7a8] ss:$16 sps:$4 sm:$0xff]  }
 0x3cf   :  { %5401 = vmatpush2.bf16.msra.mxu0 %v7121_v44  ;;  %v7213_v44 = vld [vmem:[#allocation2 + $0x58c] ss:$16 sps:$4 sm:$0xff]  }
 0x3d0   :  { %5442 = vmatpush2.bf16.msra.mxu1 %v7124_v53  ;;  %5402 = vmatprep.subr.bf16.mxu0 %v7129_v14  ;;  %v7216_v53 = vld [vmem:[#allocation2 + $0x78c] ss:$16 sps:$4 sm:$0xff]   ;;  %v7211_v14 = vld [vmem:[#allocation2 + $0x588] ss:$16 sps:$4 sm:$0xff]  }
 0x3d1   :  { %5443 = vmatprep.subr.bf16.mxu1 %v7132_v25  ;;  %v7214_v25 = vld [vmem:[#allocation2 + $0x788] ss:$16 sps:$4 sm:$0xff]  }
 0x3d3   :  { %5403 = vmatpush2.bf16.msra.mxu0 %v7127_v60  ;;  %v7219_v60 = vld [vmem:[#allocation2 + $0x56c] ss:$16 sps:$4 sm:$0xff]  }
 0x3d4   :  { %5444 = vmatpush2.bf16.msra.mxu1 %v7130_v40  ;;  %5404 = vmatprep.subr.bf16.mxu0 %v7135_v29  ;;  %v7222_v40 = vld [vmem:[#allocation2 + $0x76c] ss:$16 sps:$4 sm:$0xff]   ;;  %v7217_v29 = vld [vmem:[#allocation2 + $0x568] ss:$16 sps:$4 sm:$0xff]  }
 0x3d5   :  { %5445 = vmatprep.subr.bf16.mxu1 %v7138_v32  ;;  %v7220_v32 = vld [vmem:[#allocation2 + $0x768] ss:$16 sps:$4 sm:$0xff]  }
 0x3d7   :  { %5405 = vmatpush2.bf16.msra.mxu0 %v7133_v38  ;;  %v7225_v38 = vld [vmem:[#allocation2 + $0x54c] ss:$16 sps:$4 sm:$0xff]  }
 0x3d8   :  { %5446 = vmatpush2.bf16.msra.mxu1 %v7136_v26  ;;  %5406 = vmatprep.subr.bf16.mxu0 %v7141_v34  ;;  %v7228_v26 = vld [vmem:[#allocation2 + $0x74c] ss:$16 sps:$4 sm:$0xff]   ;;  %v7223_v34 = vld [vmem:[#allocation2 + $0x548] ss:$16 sps:$4 sm:$0xff]  }
 0x3d9   :  { %5447 = vmatprep.subr.bf16.mxu1 %v7144_v36  ;;  %v7226_v36 = vld [vmem:[#allocation2 + $0x748] ss:$16 sps:$4 sm:$0xff]  }
 0x3db   :  { %5407 = vmatpush2.bf16.msra.mxu0 %v7139_v12  ;;  %v7231_v12 = vld [vmem:[#allocation2 + $0x52c] ss:$16 sps:$4 sm:$0xff]  }
 0x3dc   :  { %5448 = vmatpush2.bf16.msra.mxu1 %v7142_v55  ;;  %5458 = vmatprep.subr.bf16.mxu0 %v7147_v8  ;;  %v7234_v55 = vld [vmem:[#allocation2 + $0x72c] ss:$16 sps:$4 sm:$0xff]   ;;  %v7229_v8 = vld [vmem:[#allocation2 + $0x528] ss:$16 sps:$4 sm:$0xff]  }
 0x3dd   :  { %5499 = vmatprep.subr.bf16.mxu1 %v7150_v57  ;;  %v7232_v57 = vld [vmem:[#allocation2 + $0x728] ss:$16 sps:$4 sm:$0xff]  }
 0x3de   :  { %5409 = vmatmul.mubr.bf16.vlgmr.msra.gmra.mxu0 %v7936_v5  ;;  %v7165_v5 = vld [vmem:[#allocation2 + $0x48c] ss:$16 sps:$4 sm:$0xff]  }
 0x3df   :  { %5450 = vmatmul.mubr.bf16.vlgmr.msra.gmra.mxu1 %v7940_v27  ;;  %5459 = vmatpush1.bf16.msra.mxu0 %v7145_v39  ;;  %v7168_v27 = vld [vmem:[#allocation2 + $0x68c] ss:$16 sps:$4 sm:$0xff]  }
 0x3e0   :  { %5500 = vmatpush1.bf16.msra.mxu1 %v7148_v42  ;;  %5460 = vmatprep.subr.bf16.mxu0 %v7153_v0  ;;  %v7237_v39 = vld [vmem:[#allocation2 + $0x50c] ss:$16 sps:$4 sm:$0xff]   ;;  %v7235_v0 = vld [vmem:[#allocation2 + $0x508] ss:$16 sps:$4 sm:$0xff]  }
 0x3e1   :  { %5501 = vmatprep.subr.bf16.mxu1 %v7156_v43  ;;  %5490 = vmatprep.mubr.bf16.mxu0 %v7944_v10  ;;  %v7169_v10 = vld [vmem:[#allocation2 + $0x468] ss:$16 sps:$4 sm:$0xff]   ;;  %v7240_v42 = vld [vmem:[#allocation2 + $0x70c] ss:$16 sps:$4 sm:$0xff]  }
 0x3e2   :  { %5531 = vmatprep.mubr.bf16.mxu1 %v7948_v52  ;;  %v7172_v52 = vld [vmem:[#allocation2 + $0x668] ss:$16 sps:$4 sm:$0xff]  }
 0x3e3   :  { %5461 = vmatpush1.bf16.msra.mxu0 %v7151_v45  ;;  %v7238_v43 = vld [vmem:[#allocation2 + $0x708] ss:$16 sps:$4 sm:$0xff]   ;;  %v3910_v45 = vld [vmem:[#allocation15] sm:$0xf] }
 0x3e4   :  { %5502 = vmatpush1.bf16.msra.mxu1 %v7154_v48  ;;  %5462 = vmatprep.subr.bf16.mxu0 %v7159_v28  ;;  %v3915_v48 = vrot.slane %v3910_v45, %v7678_v62  ;;  %v3919_v28 = vrot.slane %v3910_v45, %v7683_v3 }
 0x3e5   :  { %5503 = vmatprep.subr.bf16.mxu1 %v7162_v1 }
 0x3e7   :  { %5463 = vmatpush1.bf16.msra.mxu0 %v7157_v2 }
 0x3e8   :  { %5504 = vmatpush1.bf16.msra.mxu1 %v7160_v23  ;;  %5464 = vmatprep.subr.bf16.mxu0 %v7165_v5 }
 0x3e9   :  { %5505 = vmatprep.subr.bf16.mxu1 %v7168_v27 }
 0x3eb   :  { %5465 = vmatpush1.bf16.msra.mxu0 %v7163_v61 }
 0x3ec   :  { %5506 = vmatpush1.bf16.msra.mxu1 %v7166_v63  ;;  %5466 = vmatprep.subr.bf16.mxu0 %v7171_v46 }
 0x3ed   :  { %5507 = vmatprep.subr.bf16.mxu1 %v7174_v49 }
 0x3ef   :  { %5467 = vmatpush1.bf16.msra.mxu0 %v7169_v10 }
 0x3f0   :  { %5508 = vmatpush1.bf16.msra.mxu1 %v7172_v52  ;;  %5468 = vmatprep.subr.bf16.mxu0 %v7177_v58 }
 0x3f1   :  { %5509 = vmatprep.subr.bf16.mxu1 %v7180_v19 }
 0x3f3   :  { %5469 = vmatpush1.bf16.msra.mxu0 %v7175_v31 }
 0x3f4   :  { %5510 = vmatpush1.bf16.msra.mxu1 %v7178_v11  ;;  %5470 = vmatprep.subr.bf16.mxu0 %v7183_v4 }
 0x3f5   :  { %5511 = vmatprep.subr.bf16.mxu1 %v7186_v37 }
 0x3f7   :  { %5471 = vmatpush1.bf16.msra.mxu0 %v7181_v6 }
 0x3f8   :  { %5512 = vmatpush1.bf16.msra.mxu1 %v7184_v7  ;;  %5472 = vmatprep.subr.bf16.mxu0 %v7189_v9 }
 0x3f9   :  { %5513 = vmatprep.subr.bf16.mxu1 %v7192_v16 }
 0x3fb   :  { %5473 = vmatpush1.bf16.msra.mxu0 %v7187_v17 }
 0x3fc   :  { %5514 = vmatpush1.bf16.msra.mxu1 %v7190_v21  ;;  %5474 = vmatprep.subr.bf16.mxu0 %v7195_v59 }
 0x3fd   :  { %5515 = vmatprep.subr.bf16.mxu1 %v7198_v35 }
 0x3ff   :  { %5475 = vmatpush2.bf16.msra.mxu0 %v7193_v50 }
 0x400   :  { %5516 = vmatpush2.bf16.msra.mxu1 %v7196_v56  ;;  %5476 = vmatprep.subr.bf16.mxu0 %v7201_v41 }
 0x401   :  { %5517 = vmatprep.subr.bf16.mxu1 %v7204_v30 }
 0x403   :  { %5477 = vmatpush2.bf16.msra.mxu0 %v7199_v15 }
 0x404   :  { %5518 = vmatpush2.bf16.msra.mxu1 %v7202_v24  ;;  %5478 = vmatprep.subr.bf16.mxu0 %v7207_v22  ;;  %v3923_v24 = vrot.slane %v3910_v45, %v7743_v13  ;;  %v3927_v22 = vrot.slane %v3910_v45, %v7746_v20 }
 0x405   :  { %5519 = vmatprep.subr.bf16.mxu1 %v7210_v51 }
 0x407   :  { %5479 = vmatpush2.bf16.msra.mxu0 %v7205_v54 }
 0x408   :  { %5520 = vmatpush2.bf16.msra.mxu1 %v7208_v18  ;;  %5480 = vmatprep.subr.bf16.mxu0 %v7213_v44 }
 0x409   :  { %5521 = vmatprep.subr.bf16.mxu1 %v7216_v53 }
 0x40b   :  { %5481 = vmatpush2.bf16.msra.mxu0 %v7211_v14 }
 0x40c   :  { %5522 = vmatpush2.bf16.msra.mxu1 %v7214_v25  ;;  %5482 = vmatprep.subr.bf16.mxu0 %v7219_v60 }
 0x40d   :  { %5523 = vmatprep.subr.bf16.mxu1 %v7222_v40 }
 0x40f   :  { %5483 = vmatpush2.bf16.msra.mxu0 %v7217_v29 }
 0x410   :  { %5524 = vmatpush2.bf16.msra.mxu1 %v7220_v32  ;;  %5484 = vmatprep.subr.bf16.mxu0 %v7225_v38 }
 0x411   :  { %5525 = vmatprep.subr.bf16.mxu1 %v7228_v26 }
 0x413   :  { %5485 = vmatpush2.bf16.msra.mxu0 %v7223_v34 }
 0x414   :  { %5526 = vmatpush2.bf16.msra.mxu1 %v7226_v36  ;;  %5486 = vmatprep.subr.bf16.mxu0 %v7231_v12 }
 0x415   :  { %5527 = vmatprep.subr.bf16.mxu1 %v7234_v55 }
 0x417   :  { %5487 = vmatpush2.bf16.msra.mxu0 %v7229_v8 }
 0x418   :  { %5528 = vmatpush2.bf16.msra.mxu1 %v7232_v57  ;;  %5488 = vmatprep.subr.bf16.mxu0 %v7237_v39 }
 0x419   :  { %5529 = vmatprep.subr.bf16.mxu1 %v7240_v42 }
 0x41b   :  { %5489 = vmatpush2.bf16.msra.mxu0 %v7235_v0 }
 0x41c   :  { %5530 = vmatpush2.bf16.msra.mxu1 %v7238_v43 }
 0x41e   :  { %v5246_v1 = vpop.f32.mrf.mxu0  ;;  %5491 = vmatmul.mubr.bf16.vlgmr.msra.gmra.mxu0 %v7956_v47 }
 0x41f   :  { %v5287_v2 = vpop.f32.mrf.mxu1  ;;  %5532 = vmatmul.mubr.bf16.vlgmr.msra.gmra.mxu1 %v7960_v33  ;;  %v5247_v23 = vadd.f32 %v5246_v1, %v3915_v48 }
 0x420   :  { %v5248_v5 = vpop.f32.mrf.mxu0 }
 0x421   :  { %v5289_v27 = vpop.f32.mrf.mxu1  ;;  %v5288_v61 = vadd.f32 %v5287_v2, %v5247_v23  ;;  %v5249_v63 = vadd.f32 %v5248_v5, %v3919_v28 }
 0x422   :  { %v5250_v46 = vpop.f32.mrf.mxu0 }
 0x423   :  { %v5291_v49 = vpop.f32.mrf.mxu1  ;;  %v5290_v10 = vadd.f32 %v5289_v27, %v5249_v63 }
 0x424   :  { %v5251_v52 = vpop.f32.mrf.mxu0 }
 0x425   :  { %v5292_v58 = vpop.f32.mrf.mxu1 }
 0x45e   :  { %v5328_v19 = vpop.f32.mrf.mxu0 }
 0x45f   :  { %v5369_v62 = vpop.f32.mrf.mxu1  ;;  %v5329_v31 = vadd.f32 %v5328_v19, %v5288_v61 }
 0x460   :  { %v5330_v3 = vpop.f32.mrf.mxu0 }
 0x461   :  { %v5371_v11 = vpop.f32.mrf.mxu1  ;;  %v7974_v4 = vadd.f32 %v5369_v62, %v5329_v31  ;;  %v5331_v47 = vadd.f32 %v5330_v3, %v5290_v10 }
 0x462   :  { %v5332_v37 = vpop.f32.mrf.mxu0 }
 0x463   :  { %v5373_v33 = vpop.f32.mrf.mxu1  ;;  %v5540_v6 = vmax.f32 %v7974_v4, 0.0  ;;  %v5372_v7 = vadd.f32 %v5371_v11, %v5331_v47 }
 0x464   :  { %v5333_v9 = vpop.f32.mrf.mxu0 }
 0x465   :  { %v5374_v16 = vpop.f32.mrf.mxu1  ;;  %v5541_v17 = vmax.f32 %v5372_v7, 0.0 }
 0x49e   :  { %v5410_v21 = vpop.f32.mrf.mxu0 }
 0x49f   :  { %v5451_v59 = vpop.f32.mrf.mxu1  ;;  %v5411_v51 = vadd.f32 %v5410_v21, %v3923_v24 }
 0x4a0   :  { %v5412_v35 = vpop.f32.mrf.mxu0 }
 0x4a1   :  { %v5453_v50 = vpop.f32.mrf.mxu1  ;;  %v5413_v54 = vadd.f32 %v5412_v35, %v3927_v22  ;;  %v5452_v18 = vadd.f32 %v5451_v59, %v5411_v51 }
 0x4a2   :  { %v5414_v56 = vpop.f32.mrf.mxu0 }
 0x4a3   :  { %v5455_v41 = vpop.f32.mrf.mxu1  ;;  %v5454_v14 = vadd.f32 %v5453_v50, %v5413_v54 }
 0x4a4   :  { %v5415_v30 = vpop.f32.mrf.mxu0 }
 0x4a5   :  { %v5456_v15 = vpop.f32.mrf.mxu1 }
 0x4de   :  { %v5492_v44 = vpop.f32.mrf.mxu0 }
 0x4df   :  { %v5533_v53 = vpop.f32.mrf.mxu1  ;;  %v5493_v25 = vadd.f32 %v5492_v44, %v5452_v18 }
 0x4e0   :  { %v5494_v60 = vpop.f32.mrf.mxu0 }
 0x4e1   :  { %v5535_v40 = vpop.f32.mrf.mxu1  ;;  %v7979_v29 = vadd.f32 %v5533_v53, %v5493_v25  ;;  %v5495_v32 = vadd.f32 %v5494_v60, %v5454_v14 }
 0x4e2   :  { %v5496_v38 = vpop.f32.mrf.mxu0 }
 0x4e3   :  { %v5537_v26 = vpop.f32.mrf.mxu1  ;;  %v5542_v34 = vmax.f32 %v7979_v29, 0.0  ;;  %v5536_v36 = vadd.f32 %v5535_v40, %v5495_v32 }
 0x4e4   :  { %v5497_v13 = vpop.f32.mrf.mxu0 }
 0x4e5   :  { %v5538_v12 = vpop.f32.mrf.mxu1  ;;  %v5543_v20 = vmax.f32 %v5536_v36, 0.0 }
 0x4e6   :  { %7533 = dma.done.wait [#allocation5 + $0x1], 4096 }
 0x4e7   :  { %7534 = vsyncadd [#allocation5 + $0x1], 4294963200  ;;  %v5549_v55 = vpack.c.bf16 %v5541_v17, %v5541_v17  ;;  %v5551_v8 = vpack.c.bf16 %v5543_v20, %v5543_v20  ;;  %v7241_v57 = vld [vmem:[#allocation3 + $0x78] sm:$0xff]   ;;  %v7245_v43 = vld [vmem:[#allocation3 + $0x70] sm:$0xff]   ;;  %v5548_v21 = vpack.c.bf16 %v5540_v6, %v5540_v6  ;;  %v5550_v59 = vpack.c.bf16 %v5542_v34, %v5542_v34 }
 0x4e8   :  { %v7242_v39 = vld [vmem:[#allocation3 + $0xf8] sm:$0xff]   ;;  %6749 = vmatprep.subr.bf16.mxu0 %v7241_v57  ;;  %v7246_v45 = vld [vmem:[#allocation3 + $0xf0] sm:$0xff]   ;;  %v7249_v1 = vld [vmem:[#allocation3 + $0x68] sm:$0xff]  }
 0x4e9   :  { %5847 = vmatprep.mubr.bf16.mxu0 %v5549_v55  ;;  %5887 = vmatprep.mubr.bf16.mxu1 %v5551_v8  ;;  %v7243_v42 = vld [vmem:[#allocation3 + $0x38] sm:$0xff]   ;;  %v7247_v48 = vld [vmem:[#allocation3 + $0x30] sm:$0xff]   ;;  %v7250_v2 = vld [vmem:[#allocation3 + $0xe8] sm:$0xff]  }
 0x4ea   :  { %6771 = vmatprep.subr.bf16.mxu1 %v7242_v39  ;;  %v7244_v0 = vld [vmem:[#allocation3 + $0xb8] sm:$0xff]   ;;  %6750 = vmatpush3.bf16.msra.mxu0 %v7243_v42  ;;  %v7248_v28 = vld [vmem:[#allocation3 + $0xb0] sm:$0xff]   ;;  %v7251_v23 = vld [vmem:[#allocation3 + $0x28] sm:$0xff]  }
 0x4eb   :  { %6772 = vmatpush3.bf16.msra.mxu1 %v7244_v0  ;;  %6751 = vmatprep.subr.bf16.mxu0 %v7245_v43  ;;  %v7252_v5 = vld [vmem:[#allocation3 + $0xa8] sm:$0xff]   ;;  %v7253_v27 = vld [vmem:[#allocation3 + $0x60] sm:$0xff]   ;;  %v7257_v49 = vld [vmem:[#allocation3 + $0x58] sm:$0xff]  }
 0x4ec   :  { %6773 = vmatprep.subr.bf16.mxu1 %v7246_v45  ;;  %v7254_v61 = vld [vmem:[#allocation3 + $0xe0] sm:$0xff]   ;;  %v7258_v10 = vld [vmem:[#allocation3 + $0xd8] sm:$0xff]   ;;  %v7261_v19 = vld [vmem:[#allocation3 + $0x50] sm:$0xff]  }
 0x4ed   :  { %v7255_v63 = vld [vmem:[#allocation3 + $0x20] sm:$0xff]   ;;  %v7259_v52 = vld [vmem:[#allocation3 + $0x18] sm:$0xff]   ;;  %v7262_v62 = vld [vmem:[#allocation3 + $0xd0] sm:$0xff]  }
 0x4ee   :  { %6752 = vmatpush3.bf16.msra.mxu0 %v7247_v48  ;;  %v7256_v46 = vld [vmem:[#allocation3 + $0xa0] sm:$0xff]   ;;  %v7260_v58 = vld [vmem:[#allocation3 + $0x98] sm:$0xff]   ;;  %v7263_v31 = vld [vmem:[#allocation3 + $0x10] sm:$0xff]  }
 0x4ef   :  { %6774 = vmatpush3.bf16.msra.mxu1 %v7248_v28  ;;  %6753 = vmatprep.subr.bf16.mxu0 %v7249_v1  ;;  %v7264_v3 = vld [vmem:[#allocation3 + $0x90] sm:$0xff]   ;;  %v7265_v11 = vld [vmem:[#allocation3 + $0x48] sm:$0xff]   ;;  %v7269_v7 = vld [vmem:[#allocation3 + $0x40] sm:$0xff]  }
 0x4f0   :  { %6775 = vmatprep.subr.bf16.mxu1 %v7250_v2  ;;  %v7266_v47 = vld [vmem:[#allocation3 + $0xc8] sm:$0xff]   ;;  %v7270_v9 = vld [vmem:[#allocation3 + $0xc0] sm:$0xff]   ;;  %v6704_v56 = vld [vmem:[#allocation17] ss:$0 sm:$0xff] }
 0x4f1   :  { %v7267_v37 = vld [vmem:[#allocation3 + $0x8] sm:$0xff]   ;;  %v7271_v16 = vld [vmem:[#allocation3] sm:$0xff]  }
 0x4f2   :  { %6754 = vmatpush3.bf16.msra.mxu0 %v7251_v23  ;;  %v7268_v33 = vld [vmem:[#allocation3 + $0x88] sm:$0xff]   ;;  %v7272_v17 = vld [vmem:[#allocation3 + $0x80] sm:$0xff]  }
 0x4f3   :  { %6776 = vmatpush3.bf16.msra.mxu1 %v7252_v5  ;;  %6755 = vmatprep.subr.bf16.mxu0 %v7253_v27 }
 0x4f4   :  { %6777 = vmatprep.subr.bf16.mxu1 %v7254_v61 }
 0x4f6   :  { %6756 = vmatpush3.bf16.msra.mxu0 %v7255_v63 }
 0x4f7   :  { %6778 = vmatpush3.bf16.msra.mxu1 %v7256_v46  ;;  %6757 = vmatprep.subr.bf16.mxu0 %v7257_v49 }
 0x4f8   :  { %6779 = vmatprep.subr.bf16.mxu1 %v7258_v10 }
 0x4fa   :  { %6758 = vmatpush3.bf16.msra.mxu0 %v7259_v52 }
 0x4fb   :  { %6780 = vmatpush3.bf16.msra.mxu1 %v7260_v58  ;;  %6759 = vmatprep.subr.bf16.mxu0 %v7261_v19 }
 0x4fc   :  { %6781 = vmatprep.subr.bf16.mxu1 %v7262_v62 }
 0x4fe   :  { %6760 = vmatpush3.bf16.msra.mxu0 %v7263_v31 }
 0x4ff   :  { %6782 = vmatpush3.bf16.msra.mxu1 %v7264_v3  ;;  %6761 = vmatprep.subr.bf16.mxu0 %v7265_v11 }
 0x500   :  { %6783 = vmatprep.subr.bf16.mxu1 %v7266_v47 }
 0x502   :  { %6762 = vmatpush3.bf16.msra.mxu0 %v7267_v37 }
 0x503   :  { %6784 = vmatpush3.bf16.msra.mxu1 %v7268_v33  ;;  %6763 = vmatprep.subr.bf16.mxu0 %v7269_v7 }
 0x504   :  { %6785 = vmatprep.subr.bf16.mxu1 %v7270_v9 }
 0x506   :  { %6764 = vmatpush3.bf16.msra.mxu0 %v7271_v16 }
 0x507   :  { %6786 = vmatpush3.bf16.msra.mxu1 %v7272_v17 }
 0x509   :  { %5848 = vmatmul.mubr.bf16.vlgmr.msra.gmra.mxu0 %v5548_v21 }
 0x50a   :  { %5888 = vmatmul.mubr.bf16.vlgmr.msra.gmra.mxu1 %v5550_v59 }
 0x5c9   :  { %v6765_v35 = vpop.f32.mrf.mxu0 }
 0x5ca   :  { %v6787_v50 = vpop.f32.mrf.mxu1 }
 0x5cb   :  { %v6766_v41 = vpop.f32.mrf.mxu0 }
 0x5cc   :  { %v6767_v30 = vadd.f32 %v6766_v41, %v6765_v35  ;;  %v6788_v15 = vpop.f32.mrf.mxu1 }
 0x5cd   :  { %v6768_v24 = vpop.f32.mrf.mxu0  ;;  %v6789_v51 = vadd.f32 %v6788_v15, %v6787_v50 }
 0x5ce   :  { %v5850_v22 = vadd.f32 %v6767_v30, %v6704_v56  ;;  %v6790_v4 = vpop.f32.mrf.mxu1 }
 0x5cf   :  { %v6769_v54 = vpop.f32.mrf.mxu0 }
 0x5d0   :  { %v5890_v6 = vadd.f32 %v6789_v51, %v5850_v22  ;;  %v6791_v18 = vpop.f32.mrf.mxu1 }
 0x5d2   :  { %v5895_v44 = vmax.f32 %v5890_v6, 0.0 }
 0x5d3   :  { %7535 = dma.done.wait [#allocation5 + $0x2], 1024 }
 0x5d4   :  { %7536 = vsyncadd [#allocation5 + $0x2], 4294966272  ;;  %v7554_v53 = vmov 0.0   ;;  %vm7555_vm9 = vmmov 0   ;;  %v7273_v14 = vld [vmem:[#allocation4 + $0x38] sm:$0xff]   ;;  %v7274_v25 = vld [vmem:[#allocation4 + $0x30] sm:$0xff]   ;;  %v5900_v34 = vpack.c.bf16 %v5895_v44, %v5895_v44 }
 0x5d5   :  { %6802 = vmatprep.subr.bf16.mxu0 %v7554_v53  ;;  %6818 = vmatprep.mubr.msk.bf16.mxu0 %vm7555_vm9, %v7554_v53  ;;  %v7275_v60 = vld [vmem:[#allocation4 + $0x28] sm:$0xff]   ;;  %v7276_v40 = vld [vmem:[#allocation4 + $0x20] sm:$0xff]   ;;  %v7277_v29 = vld [vmem:[#allocation4 + $0x18] sm:$0xff]   ;;  %s7556_s7 = smov [#allocation20]  }
 0x5d6   :  { %6803 = vmatpush3.bf16.msra.mxu0 %v7273_v14  ;;  %v7278_v32 = vld [vmem:[#allocation4 + $0x10] sm:$0xff]   ;;  %v7279_v38 = vld [vmem:[#allocation4 + $0x8] sm:$0xff]   ;;  %v7280_v26 = vld [vmem:[#allocation4] sm:$0xff]   ;;  %s6019_s9 = sshll.u32 %s7556_s7, 4  ;;  %s6020_s9 = int_to_ptr.vmem [resolvable:$true] %s6019_s9 }
 0x5d7   :  { %6804 = vmatprep.subr.bf16.mxu0 %v7554_v53  ;;  %v6737_v36 = vld [vmem:[#allocation18] ss:$0 sm:$0xff]  ;;  %s7501_s26 = scalar_lea.vmem %s6020_s9, 128  ;;  %p7506_p0 = scmp.lt.s32.totalorder %s6020_s9, %s6020_s9 }
 0x5d8   :  { %p7502_p13 = scmp.ne.s32.totalorder %s6020_s9, %s7501_s26  ;;  %p7507_p1 = scmp.lt.s32.totalorder %s7501_s26, %s7501_s26 }
 0x5da   :  { %6805 = vmatpush3.bf16.msra.mxu0 %v7274_v25  ;;  %p7508_p2 = por %p7507_p1, %p7506_p0 }
 0x5db   :  { %6806 = vmatprep.subr.bf16.mxu0 %v7554_v53 }
 0x5dc   :  { %p7509_p3 = pnand %p7508_p2, %p7502_p13 }
 0x5de   :  { %6807 = vmatpush3.bf16.msra.mxu0 %v7275_v60 }
 0x5df   :  { %6808 = vmatprep.subr.bf16.mxu0 %v7554_v53 }
 0x5e2   :  { %6809 = vmatpush3.bf16.msra.mxu0 %v7276_v40 }
 0x5e3   :  { %6810 = vmatprep.subr.bf16.mxu0 %v7554_v53 }
 0x5e6   :  { %6811 = vmatpush3.bf16.msra.mxu0 %v7277_v29 }
 0x5e7   :  { %6812 = vmatprep.subr.bf16.mxu0 %v7554_v53 }
 0x5ea   :  { %6813 = vmatpush3.bf16.msra.mxu0 %v7278_v32 }
 0x5eb   :  { %6814 = vmatprep.subr.bf16.mxu0 %v7554_v53 }
 0x5ee   :  { %6815 = vmatpush3.bf16.msra.mxu0 %v7279_v38 }
 0x5ef   :  { %6816 = vmatprep.subr.bf16.mxu0 %v7554_v53 }
 0x5f2   :  { %6817 = vmatpush3.bf16.msra.mxu0 %v7280_v26 }
 0x5f5   :  { %6819 = vmatmul.mubr.bf16.vlgmr.msra.gmra.mxu0 %v5900_v34 }
 0x6b5   :  { %v6006_v13 = vpop.f32.mrf.mxu0 }
 0x6b6   :  { %v6007_v12 = vadd.f32 %v6737_v36, %v6006_v13 }
 0x6b7   :  { %v6820_v20 = vpop.f32.mrf.mxu0 }
 0x6b8   :  { %6012 = vst [vmem:[#allocation20] sm:$0xff] %v6007_v12 }
 0x6b9   :  { %v6009_v55 = vpop.f32.mrf.mxu0 }
 0x6ba   :  { %7512 = shalt.err (!%p7509_p3)
}
 0x6bb   :  { %6022 = dma.vmem_to_hbm [thread:$0]  %s6020_s9, 128, %s8002_s11, [#allocation8]   ;;  %v6821_v8 = vpop.f32.mrf.mxu0 }
 0x6bc   :  { %7537 = dma.done.wait [#allocation8], 128  }
 0x6bd   :  { %7538 = vsyncadd [#allocation8], 4294967168 }
 0x6be   :  { %6026 = vsyncpa [#allocation7], 1 }
 0x6bf   :  { %6027 = vsyncpa [#allocation10], 1 }
 0x6c0   :  { %6028 = vsyncpa [#allocation13], 1 }
 0x6c1   :  { %6029 = vsyncpa [#allocation16], 1 }
 0x6c2   :  { %6030 = vsyncpa [#allocation19], 1 }
 0x6c3   :  { %6031 = vsyncpa [#allocation8], 1 }
 0x6c4   :  { %6032 = vsyncmov [#allocation5] }
 0x6c7   :  { %s6033_s28 = vpop.sfrf %6032 }
 0x6c8   :  { %p6746_p4 = scmp.ne.s32.totalorder %s6033_s28, 0 }
 0x6ca   :  { %6037 = shalt.err (%p6746_p4)  }
 0x6cb   :  { %6039 = vsyncmov [#allocation5 + $0x1] }
 0x6ce   :  { %s6040_s2 = vpop.sfrf %6039 }
 0x6cf   :  { %p6747_p5 = scmp.ne.s32.totalorder %s6040_s2, 0 }
 0x6d1   :  { %6044 = shalt.err (%p6747_p5)  }
 0x6d2   :  { %6046 = vsyncmov [#allocation5 + $0x2] }
 0x6d5   :  { %s6047_s29 = vpop.sfrf %6046 }
 0x6d6   :  { %p6748_p6 = scmp.ne.s32.totalorder %s6047_s29, 0 }
 0x6d8   :  { %6051 = shalt.err (%p6748_p6)  }

</bundles_post_ra>
